<compile_context>
chip_gen: v7x
topology: tpu7x:2x2x1
jax: 0.10.0
libtpu: 0.0.40
codegen_flags: <defaults>
</compile_context>

<pallas_src>
import jax
import jax.numpy as jnp
from jax import lax
from jax.experimental import pallas as pl
from jax.experimental.pallas import tpu as pltpu


# ----------------------------- ComplexConv2d ------------------------------- #

def _complex_conv_kernel(x_ref, w_ref, b_ref, o_ref):
    """In-kernel K*K shifted-window accumulation for one batch element.

    x_ref: (1, Hp, Ci, Wp)   bf16  padded input (channels on sublanes, width on lanes)
    w_ref: (K, K, 2*Co, Ci)  bf16  per-tap weights, [real; imag] stacked along 2*Co
    b_ref: (2*Co, 1)         f32   real_bias stacked twice (module adds it to BOTH parts)
    o_ref: (1, Ho, 2*Co, Wo) f32
    """
    K = w_ref.shape[0]
    Ho = o_ref.shape[1]
    two_co = o_ref.shape[2]
    Wo = o_ref.shape[3]

    bias = b_ref[...]                                            # (2Co, 1) f32
    # Hoist the tiny per-tap weight loads out of the row loop.
    w_taps = [[w_ref[kh, kw] for kw in range(K)] for kh in range(K)]

    # Static unroll over output rows (Ho is small here).
    # TODO(synk): for production-sized images (e.g. 1000x1000) switch to pl.loop over
    # row tiles with a halo'd manual DMA instead of a full static unroll.
    for h in range(Ho):
        acc = jnp.zeros((two_co, Wo), jnp.float32)
        for kh in range(K):
            row = x_ref[0, h + kh]                               # (Ci, Wp) bf16
            for kw in range(K):
                xs = row[:, kw:kw + Wo]                          # (Ci, Wo) shifted window
                acc = acc + jnp.dot(w_taps[kh][kw], xs,
                                    preferred_element_type=jnp.float32)
        o_ref[0, h] = acc + bias


def complex_conv2d_real(x, wr, wi, br, K, pad):
    """Complex conv of a REAL input (imag part is identically zero, so the two
    cross-term convolutions vanish):
        real = conv(x, wr) + real_bias
        imag = conv(x, wi) + real_bias    # real_bias on BOTH parts: faithful to module
    Returns (real, imag), each (B, Co, Ho, Wo) in f32.
    """
    B, Ci, H, W = x.shape
    Co = wr.shape[0]
    Hp, Wp = H + 2 * pad, W + 2 * pad
    Ho, Wo = Hp - K + 1, Wp - K + 1

    # Pad once; relayout to (B, Hp, Ci, Wp) so every per-tap RHS is a contiguous
    # (Ci, Wo) slab (channels on sublanes, width on lanes).  bf16 inputs / f32 acc.
    xp = jnp.pad(x, ((0, 0), (0, 0), (pad, pad), (pad, pad)))
    xt = jnp.transpose(xp, (0, 2, 1, 3)).astype(jnp.bfloat16)        # (B, Hp, Ci, Wp)

    w2 = jnp.concatenate([wr, wi], axis=0)                           # (2Co, Ci, K, K)
    wt = jnp.transpose(w2, (2, 3, 0, 1)).astype(jnp.bfloat16)        # (K, K, 2Co, Ci)
    b2 = jnp.concatenate([br, br]).reshape(2 * Co, 1).astype(jnp.float32)

    flops = 2 * (2 * Co) * (Ci * K * K) * (B * Ho * Wo)
    bytes_accessed = (xt.size * 2 + wt.size * 2 + b2.size * 4
                      + B * Ho * 2 * Co * Wo * 4)

    out = pl.pallas_call(
        _complex_conv_kernel,
        out_shape=jax.ShapeDtypeStruct((B, Ho, 2 * Co, Wo), jnp.float32),
        grid=(B,),                                   # pipelined input DMA per batch
        in_specs=[
            pl.BlockSpec((1, Hp, Ci, Wp), lambda b: (b, 0, 0, 0)),
            pl.BlockSpec((K, K, 2 * Co, Ci), lambda b: (0, 0, 0, 0)),   # resident
            pl.BlockSpec((2 * Co, 1), lambda b: (0, 0)),                # resident
        ],
        out_specs=pl.BlockSpec((1, Ho, 2 * Co, Wo), lambda b: (b, 0, 0, 0)),
        compiler_params=pltpu.CompilerParams(
            dimension_semantics=("parallel",),       # shards across TCs on v7x megacore
            vmem_limit_bytes=64 * 1024 * 1024,       # above 16/32 MiB scoped defaults
        ),
        cost_estimate=pl.CostEstimate(flops=flops, transcendentals=0,
                                      bytes_accessed=bytes_accessed),
    )(xt, wt, b2)

    out = jnp.transpose(out, (0, 2, 1, 3))           # (B, 2Co, Ho, Wo)
    return out[:, :Co], out[:, Co:]


# ------------------------------ FourierLayer -------------------------------- #

def _fourier_weight_kernel(s_ref, w_ref, y_ref):
    """Complex elementwise spectral weighting on one lane-dense tile.
    s_ref: (2, BC, T) f32 stacked [real; imag] spectrum
    w_ref: (2, 1,  T) f32 stacked [real; imag] weights (broadcast along sublanes)
    y_ref: (2, BC, T) f32 stacked weighted spectrum
    """
    xr, xi = s_ref[0], s_ref[1]
    wr, wi = w_ref[0], w_ref[1]
    y_ref[0] = xr * wr - xi * wi
    y_ref[1] = xr * wi + xi * wr


def _pick_lane_tile(hw, cap=1024):
    """Largest multiple of 128 dividing hw, capped (v7x live-vreg guidance)."""
    if hw <= cap:
        return hw
    t = cap - (cap % 128)
    while t >= 128:
        if hw % t == 0:
            return t
        t -= 128
    return hw    # nothing divides: fall back to a single full block


def fourier_layer(x, wr, wi):
    B, C, H, W = x.shape
    BC, HW = B * C, H * W

    # TODO(synk): fft2/ifft2 have no Pallas equivalent; computed with XLA's FFT.
    xf = jnp.fft.fft2(x)
    spec = jnp.stack([jnp.real(xf), jnp.imag(xf)], axis=0)
    spec = spec.reshape(2, BC, HW).astype(jnp.float32)               # one stacked input
    wst = jnp.stack([wr, wi], axis=0).reshape(2, 1, HW).astype(jnp.float32)

    tile = _pick_lane_tile(HW)
    grid = (HW // tile,)
    flops = 6 * BC * HW
    bytes_accessed = spec.size * 4 + wst.size * 4 + spec.size * 4

    y = pl.pallas_call(
        _fourier_weight_kernel,
        out_shape=jax.ShapeDtypeStruct((2, BC, HW), jnp.float32),
        grid=grid,
        in_specs=[
            pl.BlockSpec((2, BC, tile), lambda n: (0, 0, n)),
            pl.BlockSpec((2, 1, tile), lambda n: (0, 0, n)),
        ],
        out_specs=pl.BlockSpec((2, BC, tile), lambda n: (0, 0, n)),
        compiler_params=pltpu.CompilerParams(
            dimension_semantics=("parallel",),
            vmem_limit_bytes=64 * 1024 * 1024,
        ),
        cost_estimate=pl.CostEstimate(flops=flops, transcendentals=0,
                                      bytes_accessed=bytes_accessed),
    )(spec, wst)

    yr = y[0].reshape(B, C, H, W)
    yi = y[1].reshape(B, C, H, W)
    return jnp.fft.ifft2(lax.complex(yr, yi))


# ------------------------------- HybridLayer -------------------------------- #

def hybrid_layer(x, params, K):
    pad = K // 2
    cr, ci = complex_conv2d_real(x, params["conv_wr"], params["conv_wi"],
                                 params["conv_br"], K, pad)
    x_conv = lax.complex(cr, ci)
    x_fft = fourier_layer(x, params["fft_wr"], params["fft_wi"])
    return jnp.concatenate([x_conv, x_fft], axis=1)


# --------------------------- plain-JAX reference ---------------------------- #

def _ref_conv(x, w, pad):
    return lax.conv_general_dilated(
        x, w, window_strides=(1, 1),
        padding=[(pad, pad), (pad, pad)],
        dimension_numbers=("NCHW", "OIHW", "NCHW"),
        precision=lax.Precision.HIGHEST)


def hybrid_layer_ref(x, params, K):
    pad = K // 2
    br = params["conv_br"][None, :, None, None]
    xr, xi = x, jnp.zeros_like(x)
    real = (_ref_conv(xr, params["conv_wr"], pad) + br
            - _ref_conv(xi, params["conv_wi"], pad))
    imag = (_ref_conv(xr, params["conv_wi"], pad) + br
            + _ref_conv(xi, params["conv_wr"], pad))
    x_conv = lax.complex(real, imag)

    x_fft = jnp.fft.fft2(x)
    wr, wi = params["fft_wr"], params["fft_wi"]
    r = jnp.real(x_fft) * wr - jnp.imag(x_fft) * wi
    i = jnp.real(x_fft) * wi + jnp.imag(x_fft) * wr
    x_f = jnp.fft.ifft2(lax.complex(r, i))
    return jnp.concatenate([x_conv, x_f], axis=1)


# ----------------------------------- main ------------------------------------ #

if __name__ == "__main__":
    B, Ci, Co, K, H, W = 2, 4, 4, 3, 16, 16

    key = jax.random.PRNGKey(0)
    k1, k2, k3, k4, k5, kx = jax.random.split(key, 6)
    params = {
        "conv_wr": jax.random.normal(k1, (Co, Ci, K, K), jnp.float32),
        "conv_wi": jax.random.normal(k2, (Co, Ci, K, K), jnp.float32),
        # Module inits biases to zero; use small nonzero values here to actually
        # exercise the bias path (forward semantics identical).
        "conv_br": 0.1 * jax.random.normal(k5, (Co,), jnp.float32),
        "conv_bi": jnp.zeros((Co,), jnp.float32),   # unused by forward (faithful)
        "fft_wr": jax.random.normal(k3, (H, W), jnp.float32),
        "fft_wi": jax.random.normal(k4, (H, W), jnp.float32),
    }
    x = jax.random.normal(kx, (B, Ci, H, W), jnp.float32)

    out = jax.jit(hybrid_layer, static_argnums=2)(x, params, K)
    out = jax.block_until_ready(out)
    assert out.shape == (B, Co + Ci, H, W) and jnp.iscomplexobj(out)

    ref = hybrid_layer_ref(x, params, K)
    err = float(jnp.max(jnp.abs(out - ref)))
    scale = float(jnp.max(jnp.abs(ref)))
    # Conv uses an explicit bf16 MXU contraction with f32 accumulation (documented);
    # compare relative to the output scale with a bf16-appropriate tolerance.
    assert err / scale < 3e-2, f"mismatch vs reference: abs {err}, rel {err / scale}"

    print("KERNEL_OK")
</pallas_src>

<mosaic_0001>
module attributes {stable_mosaic.version = 11 : i64} {
  func.func @_fourier_weight_kernel(%arg0: i32, %arg1: memref<2x8x256xf32, #tpu.memory_space<vmem>>, %arg2: memref<2x1x256xf32, #tpu.memory_space<vmem>>, %arg3: memref<2x8x256xf32, #tpu.memory_space<vmem>>) attributes {dimension_semantics = [#tpu.dimension_semantics<parallel>], iteration_bounds = array<i64: 1>, scalar_prefetch = 0 : i64, scratch_operands = 0 : i64, tpu.core_type = #tpu.core_type<tc>, window_params = [{transform_indices = @transform_0, window_bounds = array<i64: 2, 8, 256>}, {transform_indices = @transform_1, window_bounds = array<i64: 2, 1, 256>}, {transform_indices = @transform_2, window_bounds = array<i64: 2, 8, 256>}]} {
    %c0 = arith.constant 0 : index
    %c0_0 = arith.constant 0 : index
    %c0_1 = arith.constant 0 : index
    %0 = vector.load %arg1[%c0, %c0_0, %c0_1] : memref<2x8x256xf32, #tpu.memory_space<vmem>>, vector<1x8x256xf32>
    %1 = vector.shape_cast %0 : vector<1x8x256xf32> to vector<8x256xf32>
    %c1 = arith.constant 1 : index
    %c0_2 = arith.constant 0 : index
    %c0_3 = arith.constant 0 : index
    %2 = vector.load %arg1[%c1, %c0_2, %c0_3] : memref<2x8x256xf32, #tpu.memory_space<vmem>>, vector<1x8x256xf32>
    %3 = vector.shape_cast %2 : vector<1x8x256xf32> to vector<8x256xf32>
    %c0_4 = arith.constant 0 : index
    %c0_5 = arith.constant 0 : index
    %c0_6 = arith.constant 0 : index
    %4 = vector.load %arg2[%c0_4, %c0_5, %c0_6] : memref<2x1x256xf32, #tpu.memory_space<vmem>>, vector<1x1x256xf32>
    %5 = vector.shape_cast %4 : vector<1x1x256xf32> to vector<1x256xf32>
    %c1_7 = arith.constant 1 : index
    %c0_8 = arith.constant 0 : index
    %c0_9 = arith.constant 0 : index
    %6 = vector.load %arg2[%c1_7, %c0_8, %c0_9] : memref<2x1x256xf32, #tpu.memory_space<vmem>>, vector<1x1x256xf32>
    %7 = vector.shape_cast %6 : vector<1x1x256xf32> to vector<1x256xf32>
    %8 = vector.broadcast %5 : vector<1x256xf32> to vector<8x256xf32>
    %9 = arith.mulf %1, %8 : vector<8x256xf32>
    %10 = vector.broadcast %7 : vector<1x256xf32> to vector<8x256xf32>
    %11 = arith.mulf %3, %10 : vector<8x256xf32>
    %12 = arith.subf %9, %11 : vector<8x256xf32>
    %c0_10 = arith.constant 0 : index
    %c0_11 = arith.constant 0 : index
    %c0_12 = arith.constant 0 : index
    %13 = vector.load %arg3[%c0_10, %c0_11, %c0_12] : memref<2x8x256xf32, #tpu.memory_space<vmem>>, vector<1x8x256xf32>
    %14 = vector.shape_cast %13 : vector<1x8x256xf32> to vector<8x256xf32>
    %15 = vector.shape_cast %12 : vector<8x256xf32> to vector<1x8x256xf32>
    tpu.vector_store %arg3[%c0_10, %c0_11, %c0_12], %15 {strides = array<i32>} : memref<2x8x256xf32, #tpu.memory_space<vmem>>, vector<1x8x256xf32>,
    %16 = vector.broadcast %7 : vector<1x256xf32> to vector<8x256xf32>
    %17 = arith.mulf %1, %16 : vector<8x256xf32>
    %18 = vector.broadcast %5 : vector<1x256xf32> to vector<8x256xf32>
    %19 = arith.mulf %3, %18 : vector<8x256xf32>
    %20 = arith.addf %17, %19 : vector<8x256xf32>
    %c1_13 = arith.constant 1 : index
    %c0_14 = arith.constant 0 : index
    %c0_15 = arith.constant 0 : index
    %21 = vector.load %arg3[%c1_13, %c0_14, %c0_15] : memref<2x8x256xf32, #tpu.memory_space<vmem>>, vector<1x8x256xf32>
    %22 = vector.shape_cast %21 : vector<1x8x256xf32> to vector<8x256xf32>
    %23 = vector.shape_cast %20 : vector<8x256xf32> to vector<1x8x256xf32>
    tpu.vector_store %arg3[%c1_13, %c0_14, %c0_15], %23 {strides = array<i32>} : memref<2x8x256xf32, #tpu.memory_space<vmem>>, vector<1x8x256xf32>,
    return
  }
  func.func @transform_0(%arg0: i32) -> (i32, i32, i32) {
    %c0_i32 = arith.constant 0 : i32
    %c0_i32_0 = arith.constant 0 : i32
    %c0_i32_1 = arith.constant 0 : i32
    return %c0_i32, %c0_i32_0, %arg0 : i32, i32, i32
  }
  func.func @transform_1(%arg0: i32) -> (i32, i32, i32) {
    %c0_i32 = arith.constant 0 : i32
    %c0_i32_0 = arith.constant 0 : i32
    %c0_i32_1 = arith.constant 0 : i32
    return %c0_i32, %c0_i32_0, %arg0 : i32, i32, i32
  }
  func.func @transform_2(%arg0: i32) -> (i32, i32, i32) {
    %c0_i32 = arith.constant 0 : i32
    %c0_i32_0 = arith.constant 0 : i32
    %c0_i32_1 = arith.constant 0 : i32
    return %c0_i32, %c0_i32_0, %arg0 : i32, i32, i32
  }
}

module attributes {stable_mosaic.version = 11 : i64} {
  func.func @_complex_conv_kernel(%arg0: i32, %arg1: memref<1x18x4x18xbf16, #tpu.memory_space<vmem>>, %arg2: memref<3x3x8x4xbf16, #tpu.memory_space<vmem>>, %arg3: memref<8x1xf32, #tpu.memory_space<vmem>>, %arg4: memref<1x16x8x16xf32, #tpu.memory_space<vmem>>) attributes {dimension_semantics = [#tpu.dimension_semantics<parallel>], iteration_bounds = array<i64: 2>, scalar_prefetch = 0 : i64, scratch_operands = 0 : i64, tpu.core_type = #tpu.core_type<tc>, window_params = [{transform_indices = @transform_0, window_bounds = array<i64: 1, 18, 4, 18>}, {pipeline_mode = #tpu.pipeline_mode<synchronous>, transform_indices = @transform_1, window_bounds = array<i64: 3, 3, 8, 4>}, {pipeline_mode = #tpu.pipeline_mode<synchronous>, transform_indices = @transform_2, window_bounds = array<i64: 8, 1>}, {transform_indices = @transform_3, window_bounds = array<i64: 1, 16, 8, 16>}]} {
    %c0 = arith.constant 0 : index
    %c0_0 = arith.constant 0 : index
    %0 = vector.load %arg3[%c0, %c0_0] : memref<8x1xf32, #tpu.memory_space<vmem>>, vector<8x1xf32>
    %c0_1 = arith.constant 0 : index
    %c0_2 = arith.constant 0 : index
    %c0_3 = arith.constant 0 : index
    %c0_4 = arith.constant 0 : index
    %1 = vector.load %arg2[%c0_1, %c0_2, %c0_3, %c0_4] : memref<3x3x8x4xbf16, #tpu.memory_space<vmem>>, vector<1x1x8x4xbf16>
    %2 = vector.shape_cast %1 : vector<1x1x8x4xbf16> to vector<8x4xbf16>
    %c0_5 = arith.constant 0 : index
    %c1 = arith.constant 1 : index
    %c0_6 = arith.constant 0 : index
    %c0_7 = arith.constant 0 : index
    %3 = vector.load %arg2[%c0_5, %c1, %c0_6, %c0_7] : memref<3x3x8x4xbf16, #tpu.memory_space<vmem>>, vector<1x1x8x4xbf16>
    %4 = vector.shape_cast %3 : vector<1x1x8x4xbf16> to vector<8x4xbf16>
    %c0_8 = arith.constant 0 : index
    %c2 = arith.constant 2 : index
    %c0_9 = arith.constant 0 : index
    %c0_10 = arith.constant 0 : index
    %5 = vector.load %arg2[%c0_8, %c2, %c0_9, %c0_10] : memref<3x3x8x4xbf16, #tpu.memory_space<vmem>>, vector<1x1x8x4xbf16>
    %6 = vector.shape_cast %5 : vector<1x1x8x4xbf16> to vector<8x4xbf16>
    %c1_11 = arith.constant 1 : index
    %c0_12 = arith.constant 0 : index
    %c0_13 = arith.constant 0 : index
    %c0_14 = arith.constant 0 : index
    %7 = vector.load %arg2[%c1_11, %c0_12, %c0_13, %c0_14] : memref<3x3x8x4xbf16, #tpu.memory_space<vmem>>, vector<1x1x8x4xbf16>
    %8 = vector.shape_cast %7 : vector<1x1x8x4xbf16> to vector<8x4xbf16>
    %c1_15 = arith.constant 1 : index
    %c1_16 = arith.constant 1 : index
    %c0_17 = arith.constant 0 : index
    %c0_18 = arith.constant 0 : index
    %9 = vector.load %arg2[%c1_15, %c1_16, %c0_17, %c0_18] : memref<3x3x8x4xbf16, #tpu.memory_space<vmem>>, vector<1x1x8x4xbf16>
    %10 = vector.shape_cast %9 : vector<1x1x8x4xbf16> to vector<8x4xbf16>
    %c1_19 = arith.constant 1 : index
    %c2_20 = arith.constant 2 : index
    %c0_21 = arith.constant 0 : index
    %c0_22 = arith.constant 0 : index
    %11 = vector.load %arg2[%c1_19, %c2_20, %c0_21, %c0_22] : memref<3x3x8x4xbf16, #tpu.memory_space<vmem>>, vector<1x1x8x4xbf16>
    %12 = vector.shape_cast %11 : vector<1x1x8x4xbf16> to vector<8x4xbf16>
    %c2_23 = arith.constant 2 : index
    %c0_24 = arith.constant 0 : index
    %c0_25 = arith.constant 0 : index
    %c0_26 = arith.constant 0 : index
    %13 = vector.load %arg2[%c2_23, %c0_24, %c0_25, %c0_26] : memref<3x3x8x4xbf16, #tpu.memory_space<vmem>>, vector<1x1x8x4xbf16>
    %14 = vector.shape_cast %13 : vector<1x1x8x4xbf16> to vector<8x4xbf16>
    %c2_27 = arith.constant 2 : index
    %c1_28 = arith.constant 1 : index
    %c0_29 = arith.constant 0 : index
    %c0_30 = arith.constant 0 : index
    %15 = vector.load %arg2[%c2_27, %c1_28, %c0_29, %c0_30] : memref<3x3x8x4xbf16, #tpu.memory_space<vmem>>, vector<1x1x8x4xbf16>
    %16 = vector.shape_cast %15 : vector<1x1x8x4xbf16> to vector<8x4xbf16>
    %c2_31 = arith.constant 2 : index
    %c2_32 = arith.constant 2 : index
    %c0_33 = arith.constant 0 : index
    %c0_34 = arith.constant 0 : index
    %17 = vector.load %arg2[%c2_31, %c2_32, %c0_33, %c0_34] : memref<3x3x8x4xbf16, #tpu.memory_space<vmem>>, vector<1x1x8x4xbf16>
    %18 = vector.shape_cast %17 : vector<1x1x8x4xbf16> to vector<8x4xbf16>
    %cst = arith.constant 0.000000e+00 : f32
    %19 = vector.broadcast %cst : f32 to vector<8x16xf32>
    %c0_35 = arith.constant 0 : index
    %c0_36 = arith.constant 0 : index
    %c0_37 = arith.constant 0 : index
    %c0_38 = arith.constant 0 : index
    %20 = vector.load %arg1[%c0_35, %c0_36, %c0_37, %c0_38] : memref<1x18x4x18xbf16, #tpu.memory_space<vmem>>, vector<1x1x4x18xbf16>
    %21 = vector.shape_cast %20 : vector<1x1x4x18xbf16> to vector<4x18xbf16>
    %22 = vector.extract_strided_slice %21 {offsets = [0, 0], sizes = [4, 16], strides = [1, 1]} : vector<4x18xbf16> to vector<4x16xbf16>
    %cst_39 = arith.constant dense<0.000000e+00> : vector<8x16xf32>
    %23 = tpu.matmul %2, %22, %cst_39 {dimension_numbers = #tpu.dot_dimension_numbers<[1], [0], [0], [1], [0, 0, 1, 1], [], []>} : vector<8x4xbf16>, vector<4x16xbf16>, vector<8x16xf32> -> vector<8x16xf32>
    %24 = arith.addf %19, %23 : vector<8x16xf32>
    %25 = vector.extract_strided_slice %21 {offsets = [0, 1], sizes = [4, 16], strides = [1, 1]} : vector<4x18xbf16> to vector<4x16xbf16>
    %cst_40 = arith.constant dense<0.000000e+00> : vector<8x16xf32>
    %26 = tpu.matmul %4, %25, %cst_40 {dimension_numbers = #tpu.dot_dimension_numbers<[1], [0], [0], [1], [0, 0, 1, 1], [], []>} : vector<8x4xbf16>, vector<4x16xbf16>, vector<8x16xf32> -> vector<8x16xf32>
    %27 = arith.addf %24, %26 : vector<8x16xf32>
    %28 = vector.extract_strided_slice %21 {offsets = [0, 2], sizes = [4, 16], strides = [1, 1]} : vector<4x18xbf16> to vector<4x16xbf16>
    %cst_41 = arith.constant dense<0.000000e+00> : vector<8x16xf32>
    %29 = tpu.matmul %6, %28, %cst_41 {dimension_numbers = #tpu.dot_dimension_numbers<[1], [0], [0], [1], [0, 0, 1, 1], [], []>} : vector<8x4xbf16>, vector<4x16xbf16>, vector<8x16xf32> -> vector<8x16xf32>
    %30 = arith.addf %27, %29 : vector<8x16xf32>
    %c0_42 = arith.constant 0 : index
    %c1_43 = arith.constant 1 : index
    %c0_44 = arith.constant 0 : index
    %c0_45 = arith.constant 0 : index
    %31 = vector.load %arg1[%c0_42, %c1_43, %c0_44, %c0_45] : memref<1x18x4x18xbf16, #tpu.memory_space<vmem>>, vector<1x1x4x18xbf16>
    %32 = vector.shape_cast %31 : vector<1x1x4x18xbf16> to vector<4x18xbf16>
    %33 = vector.extract_strided_slice %32 {offsets = [0, 0], sizes = [4, 16], strides = [1, 1]} : vector<4x18xbf16> to vector<4x16xbf16>
    %cst_46 = arith.constant dense<0.000000e+00> : vector<8x16xf32>
    %34 = tpu.matmul %8, %33, %cst_46 {dimension_numbers = #tpu.dot_dimension_numbers<[1], [0], [0], [1], [0, 0, 1, 1], [], []>} : vector<8x4xbf16>, vector<4x16xbf16>, vector<8x16xf32> -> vector<8x16xf32>
    %35 = arith.addf %30, %34 : vector<8x16xf32>
    %36 = vector.extract_strided_slice %32 {offsets = [0, 1], sizes = [4, 16], strides = [1, 1]} : vector<4x18xbf16> to vector<4x16xbf16>
    %cst_47 = arith.constant dense<0.000000e+00> : vector<8x16xf32>
    %37 = tpu.matmul %10, %36, %cst_47 {dimension_numbers = #tpu.dot_dimension_numbers<[1], [0], [0], [1], [0, 0, 1, 1], [], []>} : vector<8x4xbf16>, vector<4x16xbf16>, vector<8x16xf32> -> vector<8x16xf32>
    %38 = arith.addf %35, %37 : vector<8x16xf32>
    %39 = vector.extract_strided_slice %32 {offsets = [0, 2], sizes = [4, 16], strides = [1, 1]} : vector<4x18xbf16> to vector<4x16xbf16>
    %cst_48 = arith.constant dense<0.000000e+00> : vector<8x16xf32>
    %40 = tpu.matmul %12, %39, %cst_48 {dimension_numbers = #tpu.dot_dimension_numbers<[1], [0], [0], [1], [0, 0, 1, 1], [], []>} : vector<8x4xbf16>, vector<4x16xbf16>, vector<8x16xf32> -> vector<8x16xf32>
    %41 = arith.addf %38, %40 : vector<8x16xf32>
    %c0_49 = arith.constant 0 : index
    %c2_50 = arith.constant 2 : index
    %c0_51 = arith.constant 0 : index
    %c0_52 = arith.constant 0 : index
    %42 = vector.load %arg1[%c0_49, %c2_50, %c0_51, %c0_52] : memref<1x18x4x18xbf16, #tpu.memory_space<vmem>>, vector<1x1x4x18xbf16>
    %43 = vector.shape_cast %42 : vector<1x1x4x18xbf16> to vector<4x18xbf16>
    %44 = vector.extract_strided_slice %43 {offsets = [0, 0], sizes = [4, 16], strides = [1, 1]} : vector<4x18xbf16> to vector<4x16xbf16>
    %cst_53 = arith.constant dense<0.000000e+00> : vector<8x16xf32>
    %45 = tpu.matmul %14, %44, %cst_53 {dimension_numbers = #tpu.dot_dimension_numbers<[1], [0], [0], [1], [0, 0, 1, 1], [], []>} : vector<8x4xbf16>, vector<4x16xbf16>, vector<8x16xf32> -> vector<8x16xf32>
    %46 = arith.addf %41, %45 : vector<8x16xf32>
    %47 = vector.extract_strided_slice %43 {offsets = [0, 1], sizes = [4, 16], strides = [1, 1]} : vector<4x18xbf16> to vector<4x16xbf16>
    %cst_54 = arith.constant dense<0.000000e+00> : vector<8x16xf32>
    %48 = tpu.matmul %16, %47, %cst_54 {dimension_numbers = #tpu.dot_dimension_numbers<[1], [0], [0], [1], [0, 0, 1, 1], [], []>} : vector<8x4xbf16>, vector<4x16xbf16>, vector<8x16xf32> -> vector<8x16xf32>
    %49 = arith.addf %46, %48 : vector<8x16xf32>
    %50 = vector.extract_strided_slice %43 {offsets = [0, 2], sizes = [4, 16], strides = [1, 1]} : vector<4x18xbf16> to vector<4x16xbf16>
    %cst_55 = arith.constant dense<0.000000e+00> : vector<8x16xf32>
    %51 = tpu.matmul %18, %50, %cst_55 {dimension_numbers = #tpu.dot_dimension_numbers<[1], [0], [0], [1], [0, 0, 1, 1], [], []>} : vector<8x4xbf16>, vector<4x16xbf16>, vector<8x16xf32> -> vector<8x16xf32>
    %52 = arith.addf %49, %51 : vector<8x16xf32>
    %53 = vector.broadcast %0 : vector<8x1xf32> to vector<8x16xf32>
    %54 = arith.addf %52, %53 : vector<8x16xf32>
    %c0_56 = arith.constant 0 : index
    %c0_57 = arith.constant 0 : index
    %c0_58 = arith.constant 0 : index
    %c0_59 = arith.constant 0 : index
    %55 = vector.load %arg4[%c0_56, %c0_57, %c0_58, %c0_59] : memref<1x16x8x16xf32, #tpu.memory_space<vmem>>, vector<1x1x8x16xf32>
    %56 = vector.shape_cast %55 : vector<1x1x8x16xf32> to vector<8x16xf32>
    %57 = vector.shape_cast %54 : vector<8x16xf32> to vector<1x1x8x16xf32>
    tpu.vector_store %arg4[%c0_56, %c0_57, %c0_58, %c0_59], %57 {strides = array<i32>} : memref<1x16x8x16xf32, #tpu.memory_space<vmem>>, vector<1x1x8x16xf32>,
    %cst_60 = arith.constant 0.000000e+00 : f32
    %58 = vector.broadcast %cst_60 : f32 to vector<8x16xf32>
    %c0_61 = arith.constant 0 : index
    %c1_62 = arith.constant 1 : index
    %c0_63 = arith.constant 0 : index
    %c0_64 = arith.constant 0 : index
    %59 = vector.load %arg1[%c0_61, %c1_62, %c0_63, %c0_64] : memref<1x18x4x18xbf16, #tpu.memory_space<vmem>>, vector<1x1x4x18xbf16>
    %60 = vector.shape_cast %59 : vector<1x1x4x18xbf16> to vector<4x18xbf16>
    %61 = vector.extract_strided_slice %60 {offsets = [0, 0], sizes = [4, 16], strides = [1, 1]} : vector<4x18xbf16> to vector<4x16xbf16>
    %cst_65 = arith.constant dense<0.000000e+00> : vector<8x16xf32>
    %62 = tpu.matmul %2, %61, %cst_65 {dimension_numbers = #tpu.dot_dimension_numbers<[1], [0], [0], [1], [0, 0, 1, 1], [], []>} : vector<8x4xbf16>, vector<4x16xbf16>, vector<8x16xf32> -> vector<8x16xf32>
    %63 = arith.addf %58, %62 : vector<8x16xf32>
    %64 = vector.extract_strided_slice %60 {offsets = [0, 1], sizes = [4, 16], strides = [1, 1]} : vector<4x18xbf16> to vector<4x16xbf16>
    %cst_66 = arith.constant dense<0.000000e+00> : vector<8x16xf32>
    %65 = tpu.matmul %4, %64, %cst_66 {dimension_numbers = #tpu.dot_dimension_numbers<[1], [0], [0], [1], [0, 0, 1, 1], [], []>} : vector<8x4xbf16>, vector<4x16xbf16>, vector<8x16xf32> -> vector<8x16xf32>
    %66 = arith.addf %63, %65 : vector<8x16xf32>
    %67 = vector.extract_strided_slice %60 {offsets = [0, 2], sizes = [4, 16], strides = [1, 1]} : vector<4x18xbf16> to vector<4x16xbf16>
    %cst_67 = arith.constant dense<0.000000e+00> : vector<8x16xf32>
    %68 = tpu.matmul %6, %67, %cst_67 {dimension_numbers = #tpu.dot_dimension_numbers<[1], [0], [0], [1], [0, 0, 1, 1], [], []>} : vector<8x4xbf16>, vector<4x16xbf16>, vector<8x16xf32> -> vector<8x16xf32>
    %69 = arith.addf %66, %68 : vector<8x16xf32>
    %c0_68 = arith.constant 0 : index
    %c2_69 = arith.constant 2 : index
    %c0_70 = arith.constant 0 : index
    %c0_71 = arith.constant 0 : index
    %70 = vector.load %arg1[%c0_68, %c2_69, %c0_70, %c0_71] : memref<1x18x4x18xbf16, #tpu.memory_space<vmem>>, vector<1x1x4x18xbf16>
    %71 = vector.shape_cast %70 : vector<1x1x4x18xbf16> to vector<4x18xbf16>
    %72 = vector.extract_strided_slice %71 {offsets = [0, 0], sizes = [4, 16], strides = [1, 1]} : vector<4x18xbf16> to vector<4x16xbf16>
    %cst_72 = arith.constant dense<0.000000e+00> : vector<8x16xf32>
    %73 = tpu.matmul %8, %72, %cst_72 {dimension_numbers = #tpu.dot_dimension_numbers<[1], [0], [0], [1], [0, 0, 1, 1], [], []>} : vector<8x4xbf16>, vector<4x16xbf16>, vector<8x16xf32> -> vector<8x16xf32>
    %74 = arith.addf %69, %73 : vector<8x16xf32>
    %75 = vector.extract_strided_slice %71 {offsets = [0, 1], sizes = [4, 16], strides = [1, 1]} : vector<4x18xbf16> to vector<4x16xbf16>
    %cst_73 = arith.constant dense<0.000000e+00> : vector<8x16xf32>
    %76 = tpu.matmul %10, %75, %cst_73 {dimension_numbers = #tpu.dot_dimension_numbers<[1], [0], [0], [1], [0, 0, 1, 1], [], []>} : vector<8x4xbf16>, vector<4x16xbf16>, vector<8x16xf32> -> vector<8x16xf32>
    %77 = arith.addf %74, %76 : vector<8x16xf32>
    %78 = vector.extract_strided_slice %71 {offsets = [0, 2], sizes = [4, 16], strides = [1, 1]} : vector<4x18xbf16> to vector<4x16xbf16>
    %cst_74 = arith.constant dense<0.000000e+00> : vector<8x16xf32>
    %79 = tpu.matmul %12, %78, %cst_74 {dimension_numbers = #tpu.dot_dimension_numbers<[1], [0], [0], [1], [0, 0, 1, 1], [], []>} : vector<8x4xbf16>, vector<4x16xbf16>, vector<8x16xf32> -> vector<8x16xf32>
    %80 = arith.addf %77, %79 : vector<8x16xf32>
    %c0_75 = arith.constant 0 : index
    %c3 = arith.constant 3 : index
    %c0_76 = arith.constant 0 : index
    %c0_77 = arith.constant 0 : index
    %81 = vector.load %arg1[%c0_75, %c3, %c0_76, %c0_77] : memref<1x18x4x18xbf16, #tpu.memory_space<vmem>>, vector<1x1x4x18xbf16>
    %82 = vector.shape_cast %81 : vector<1x1x4x18xbf16> to vector<4x18xbf16>
    %83 = vector.extract_strided_slice %82 {offsets = [0, 0], sizes = [4, 16], strides = [1, 1]} : vector<4x18xbf16> to vector<4x16xbf16>
    %cst_78 = arith.constant dense<0.000000e+00> : vector<8x16xf32>
    %84 = tpu.matmul %14, %83, %cst_78 {dimension_numbers = #tpu.dot_dimension_numbers<[1], [0], [0], [1], [0, 0, 1, 1], [], []>} : vector<8x4xbf16>, vector<4x16xbf16>, vector<8x16xf32> -> vector<8x16xf32>
    %85 = arith.addf %80, %84 : vector<8x16xf32>
    %86 = vector.extract_strided_slice %82 {offsets = [0, 1], sizes = [4, 16], strides = [1, 1]} : vector<4x18xbf16> to vector<4x16xbf16>
    %cst_79 = arith.constant dense<0.000000e+00> : vector<8x16xf32>
    %87 = tpu.matmul %16, %86, %cst_79 {dimension_numbers = #tpu.dot_dimension_numbers<[1], [0], [0], [1], [0, 0, 1, 1], [], []>} : vector<8x4xbf16>, vector<4x16xbf16>, vector<8x16xf32> -> vector<8x16xf32>
    %88 = arith.addf %85, %87 : vector<8x16xf32>
    %89 = vector.extract_strided_slice %82 {offsets = [0, 2], sizes = [4, 16], strides = [1, 1]} : vector<4x18xbf16> to vector<4x16xbf16>
    %cst_80 = arith.constant dense<0.000000e+00> : vector<8x16xf32>
    %90 = tpu.matmul %18, %89, %cst_80 {dimension_numbers = #tpu.dot_dimension_numbers<[1], [0], [0], [1], [0, 0, 1, 1], [], []>} : vector<8x4xbf16>, vector<4x16xbf16>, vector<8x16xf32> -> vector<8x16xf32>
    %91 = arith.addf %88, %90 : vector<8x16xf32>
    %92 = vector.broadcast %0 : vector<8x1xf32> to vector<8x16xf32>
    %93 = arith.addf %91, %92 : vector<8x16xf32>
    %c0_81 = arith.constant 0 : index
    %c1_82 = arith.constant 1 : index
    %c0_83 = arith.constant 0 : index
    %c0_84 = arith.constant 0 : index
    %94 = vector.load %arg4[%c0_81, %c1_82, %c0_83, %c0_84] : memref<1x16x8x16xf32, #tpu.memory_space<vmem>>, vector<1x1x8x16xf32>
    %95 = vector.shape_cast %94 : vector<1x1x8x16xf32> to vector<8x16xf32>
    %96 = vector.shape_cast %93 : vector<8x16xf32> to vector<1x1x8x16xf32>
    tpu.vector_store %arg4[%c0_81, %c1_82, %c0_83, %c0_84], %96 {strides = array<i32>} : memref<1x16x8x16xf32, #tpu.memory_space<vmem>>, vector<1x1x8x16xf32>,
    %cst_85 = arith.constant 0.000000e+00 : f32
    %97 = vector.broadcast %cst_85 : f32 to vector<8x16xf32>
    %c0_86 = arith.constant 0 : index
    %c2_87 = arith.constant 2 : index
    %c0_88 = arith.constant 0 : index
    %c0_89 = arith.constant 0 : index
    %98 = vector.load %arg1[%c0_86, %c2_87, %c0_88, %c0_89] : memref<1x18x4x18xbf16, #tpu.memory_space<vmem>>, vector<1x1x4x18xbf16>
    %99 = vector.shape_cast %98 : vector<1x1x4x18xbf16> to vector<4x18xbf16>
    %100 = vector.extract_strided_slice %99 {offsets = [0, 0], sizes = [4, 16], strides = [1, 1]} : vector<4x18xbf16> to vector<4x16xbf16>
    %cst_90 = arith.constant dense<0.000000e+00> : vector<8x16xf32>
    %101 = tpu.matmul %2, %100, %cst_90 {dimension_numbers = #tpu.dot_dimension_numbers<[1], [0], [0], [1], [0, 0, 1, 1], [], []>} : vector<8x4xbf16>, vector<4x16xbf16>, vector<8x16xf32> -> vector<8x16xf32>
    %102 = arith.addf %97, %101 : vector<8x16xf32>
    %103 = vector.extract_strided_slice %99 {offsets = [0, 1], sizes = [4, 16], strides = [1, 1]} : vector<4x18xbf16> to vector<4x16xbf16>
    %cst_91 = arith.constant dense<0.000000e+00> : vector<8x16xf32>
    %104 = tpu.matmul %4, %103, %cst_91 {dimension_numbers = #tpu.dot_dimension_numbers<[1], [0], [0], [1], [0, 0, 1, 1], [], []>} : vector<8x4xbf16>, vector<4x16xbf16>, vector<8x16xf32> -> vector<8x16xf32>
    %105 = arith.addf %102, %104 : vector<8x16xf32>
    %106 = vector.extract_strided_slice %99 {offsets = [0, 2], sizes = [4, 16], strides = [1, 1]} : vector<4x18xbf16> to vector<4x16xbf16>
    %cst_92 = arith.constant dense<0.000000e+00> : vector<8x16xf32>
    %107 = tpu.matmul %6, %106, %cst_92 {dimension_numbers = #tpu.dot_dimension_numbers<[1], [0], [0], [1], [0, 0, 1, 1], [], []>} : vector<8x4xbf16>, vector<4x16xbf16>, vector<8x16xf32> -> vector<8x16xf32>
    %108 = arith.addf %105, %107 : vector<8x16xf32>
    %c0_93 = arith.constant 0 : index
    %c3_94 = arith.constant 3 : index
    %c0_95 = arith.constant 0 : index
    %c0_96 = arith.constant 0 : index
    %109 = vector.load %arg1[%c0_93, %c3_94, %c0_95, %c0_96] : memref<1x18x4x18xbf16, #tpu.memory_space<vmem>>, vector<1x1x4x18xbf16>
    %110 = vector.shape_cast %109 : vector<1x1x4x18xbf16> to vector<4x18xbf16>
    %111 = vector.extract_strided_slice %110 {offsets = [0, 0], sizes = [4, 16], strides = [1, 1]} : vector<4x18xbf16> to vector<4x16xbf16>
    %cst_97 = arith.constant dense<0.000000e+00> : vector<8x16xf32>
    %112 = tpu.matmul %8, %111, %cst_97 {dimension_numbers = #tpu.dot_dimension_numbers<[1], [0], [0], [1], [0, 0, 1, 1], [], []>} : vector<8x4xbf16>, vector<4x16xbf16>, vector<8x16xf32> -> vector<8x16xf32>
    %113 = arith.addf %108, %112 : vector<8x16xf32>
    %114 = vector.extract_strided_slice %110 {offsets = [0, 1], sizes = [4, 16], strides = [1, 1]} : vector<4x18xbf16> to vector<4x16xbf16>
    %cst_98 = arith.constant dense<0.000000e+00> : vector<8x16xf32>
    %115 = tpu.matmul %10, %114, %cst_98 {dimension_numbers = #tpu.dot_dimension_numbers<[1], [0], [0], [1], [0, 0, 1, 1], [], []>} : vector<8x4xbf16>, vector<4x16xbf16>, vector<8x16xf32> -> vector<8x16xf32>
    %116 = arith.addf %113, %115 : vector<8x16xf32>
    %117 = vector.extract_strided_slice %110 {offsets = [0, 2], sizes = [4, 16], strides = [1, 1]} : vector<4x18xbf16> to vector<4x16xbf16>
    %cst_99 = arith.constant dense<0.000000e+00> : vector<8x16xf32>
    %118 = tpu.matmul %12, %117, %cst_99 {dimension_numbers = #tpu.dot_dimension_numbers<[1], [0], [0], [1], [0, 0, 1, 1], [], []>} : vector<8x4xbf16>, vector<4x16xbf16>, vector<8x16xf32> -> vector<8x16xf32>
    %119 = arith.addf %116, %118 : vector<8x16xf32>
    %c0_100 = arith.constant 0 : index
    %c4 = arith.constant 4 : index
    %c0_101 = arith.constant 0 : index
    %c0_102 = arith.constant 0 : index
    %120 = vector.load %arg1[%c0_100, %c4, %c0_101, %c0_102] : memref<1x18x4x18xbf16, #tpu.memory_space<vmem>>, vector<1x1x4x18xbf16>
    %121 = vector.shape_cast %120 : vector<1x1x4x18xbf16> to vector<4x18xbf16>
    %122 = vector.extract_strided_slice %121 {offsets = [0, 0], sizes = [4, 16], strides = [1, 1]} : vector<4x18xbf16> to vector<4x16xbf16>
    %cst_103 = arith.constant dense<0.000000e+00> : vector<8x16xf32>
    %123 = tpu.matmul %14, %122, %cst_103 {dimension_numbers = #tpu.dot_dimension_numbers<[1], [0], [0], [1], [0, 0, 1, 1], [], []>} : vector<8x4xbf16>, vector<4x16xbf16>, vector<8x16xf32> -> vector<8x16xf32>
    %124 = arith.addf %119, %123 : vector<8x16xf32>
    %125 = vector.extract_strided_slice %121 {offsets = [0, 1], sizes = [4, 16], strides = [1, 1]} : vector<4x18xbf16> to vector<4x16xbf16>
    %cst_104 = arith.constant dense<0.000000e+00> : vector<8x16xf32>
    %126 = tpu.matmul %16, %125, %cst_104 {dimension_numbers = #tpu.dot_dimension_numbers<[1], [0], [0], [1], [0, 0, 1, 1], [], []>} : vector<8x4xbf16>, vector<4x16xbf16>, vector<8x16xf32> -> vector<8x16xf32>
    %127 = arith.addf %124, %126 : vector<8x16xf32>
    %128 = vector.extract_strided_slice %121 {offsets = [0, 2], sizes = [4, 16], strides = [1, 1]} : vector<4x18xbf16> to vector<4x16xbf16>
    %cst_105 = arith.constant dense<0.000000e+00> : vector<8x16xf32>
    %129 = tpu.matmul %18, %128, %cst_105 {dimension_numbers = #tpu.dot_dimension_numbers<[1], [0], [0], [1], [0, 0, 1, 1], [], []>} : vector<8x4xbf16>, vector<4x16xbf16>, vector<8x16xf32> -> vector<8x16xf32>
    %130 = arith.addf %127, %129 : vector<8x16xf32>
    %131 = vector.broadcast %0 : vector<8x1xf32> to vector<8x16xf32>
    %132 = arith.addf %130, %131 : vector<8x16xf32>
    %c0_106 = arith.constant 0 : index
    %c2_107 = arith.constant 2 : index
    %c0_108 = arith.constant 0 : index
    %c0_109 = arith.constant 0 : index
    %133 = vector.load %arg4[%c0_106, %c2_107, %c0_108, %c0_109] : memref<1x16x8x16xf32, #tpu.memory_space<vmem>>, vector<1x1x8x16xf32>
    %134 = vector.shape_cast %133 : vector<1x1x8x16xf32> to vector<8x16xf32>
    %135 = vector.shape_cast %132 : vector<8x16xf32> to vector<1x1x8x16xf32>
    tpu.vector_store %arg4[%c0_106, %c2_107, %c0_108, %c0_109], %135 {strides = array<i32>} : memref<1x16x8x16xf32, #tpu.memory_space<vmem>>, vector<1x1x8x16xf32>,
    %cst_110 = arith.constant 0.000000e+00 : f32
    %136 = vector.broadcast %cst_110 : f32 to vector<8x16xf32>
    %c0_111 = arith.constant 0 : index
    %c3_112 = arith.constant 3 : index
    %c0_113 = arith.constant 0 : index
    %c0_114 = arith.constant 0 : index
    %137 = vector.load %arg1[%c0_111, %c3_112, %c0_113, %c0_114] : memref<1x18x4x18xbf16, #tpu.memory_space<vmem>>, vector<1x1x4x18xbf16>
    %138 = vector.shape_cast %137 : vector<1x1x4x18xbf16> to vector<4x18xbf16>
    %139 = vector.extract_strided_slice %138 {offsets = [0, 0], sizes = [4, 16], strides = [1, 1]} : vector<4x18xbf16> to vector<4x16xbf16>
    %cst_115 = arith.constant dense<0.000000e+00> : vector<8x16xf32>
    %140 = tpu.matmul %2, %139, %cst_115 {dimension_numbers = #tpu.dot_dimension_numbers<[1], [0], [0], [1], [0, 0, 1, 1], [], []>} : vector<8x4xbf16>, vector<4x16xbf16>, vector<8x16xf32> -> vector<8x16xf32>
    %141 = arith.addf %136, %140 : vector<8x16xf32>
    %142 = vector.extract_strided_slice %138 {offsets = [0, 1], sizes = [4, 16], strides = [1, 1]} : vector<4x18xbf16> to vector<4x16xbf16>
    %cst_116 = arith.constant dense<0.000000e+00> : vector<8x16xf32>
    %143 = tpu.matmul %4, %142, %cst_116 {dimension_numbers = #tpu.dot_dimension_numbers<[1], [0], [0], [1], [0, 0, 1, 1], [], []>} : vector<8x4xbf16>, vector<4x16xbf16>, vector<8x16xf32> -> vector<8x16xf32>
    %144 = arith.addf %141, %143 : vector<8x16xf32>
    %145 = vector.extract_strided_slice %138 {offsets = [0, 2], sizes = [4, 16], strides = [1, 1]} : vector<4x18xbf16> to vector<4x16xbf16>
    %cst_117 = arith.constant dense<0.000000e+00> : vector<8x16xf32>
    %146 = tpu.matmul %6, %145, %cst_117 {dimension_numbers = #tpu.dot_dimension_numbers<[1], [0], [0], [1], [0, 0, 1, 1], [], []>} : vector<8x4xbf16>, vector<4x16xbf16>, vector<8x16xf32> -> vector<8x16xf32>
    %147 = arith.addf %144, %146 : vector<8x16xf32>
    %c0_118 = arith.constant 0 : index
    %c4_119 = arith.constant 4 : index
    %c0_120 = arith.constant 0 : index
    %c0_121 = arith.constant 0 : index
    %148 = vector.load %arg1[%c0_118, %c4_119, %c0_120, %c0_121] : memref<1x18x4x18xbf16, #tpu.memory_space<vmem>>, vector<1x1x4x18xbf16>
    %149 = vector.shape_cast %148 : vector<1x1x4x18xbf16> to vector<4x18xbf16>
    %150 = vector.extract_strided_slice %149 {offsets = [0, 0], sizes = [4, 16], strides = [1, 1]} : vector<4x18xbf16> to vector<4x16xbf16>
    %cst_122 = arith.constant dense<0.000000e+00> : vector<8x16xf32>
    %151 = tpu.matmul %8, %150, %cst_122 {dimension_numbers = #tpu.dot_dimension_numbers<[1], [0], [0], [1], [0, 0, 1, 1], [], []>} : vector<8x4xbf16>, vector<4x16xbf16>, vector<8x16xf32> -> vector<8x16xf32>
    %152 = arith.addf %147, %151 : vector<8x16xf32>
    %153 = vector.extract_strided_slice %149 {offsets = [0, 1], sizes = [4, 16], strides = [1, 1]} : vector<4x18xbf16> to vector<4x16xbf16>
    %cst_123 = arith.constant dense<0.000000e+00> : vector<8x16xf32>
    %154 = tpu.matmul %10, %153, %cst_123 {dimension_numbers = #tpu.dot_dimension_numbers<[1], [0], [0], [1], [0, 0, 1, 1], [], []>} : vector<8x4xbf16>, vector<4x16xbf16>, vector<8x16xf32> -> vector<8x16xf32>
    %155 = arith.addf %152, %154 : vector<8x16xf32>
    %156 = vector.extract_strided_slice %149 {offsets = [0, 2], sizes = [4, 16], strides = [1, 1]} : vector<4x18xbf16> to vector<4x16xbf16>
    %cst_124 = arith.constant dense<0.000000e+00> : vector<8x16xf32>
    %157 = tpu.matmul %12, %156, %cst_124 {dimension_numbers = #tpu.dot_dimension_numbers<[1], [0], [0], [1], [0, 0, 1, 1], [], []>} : vector<8x4xbf16>, vector<4x16xbf16>, vector<8x16xf32> -> vector<8x16xf32>
    %158 = arith.addf %155, %157 : vector<8x16xf32>
    %c0_125 = arith.constant 0 : index
    %c5 = arith.constant 5 : index
    %c0_126 = arith.constant 0 : index
    %c0_127 = arith.constant 0 : index
    %159 = vector.load %arg1[%c0_125, %c5, %c0_126, %c0_127] : memref<1x18x4x18xbf16, #tpu.memory_space<vmem>>, vector<1x1x4x18xbf16>
    %160 = vector.shape_cast %159 : vector<1x1x4x18xbf16> to vector<4x18xbf16>
    %161 = vector.extract_strided_slice %160 {offsets = [0, 0], sizes = [4, 16], strides = [1, 1]} : vector<4x18xbf16> to vector<4x16xbf16>
    %cst_128 = arith.constant dense<0.000000e+00> : vector<8x16xf32>
    %162 = tpu.matmul %14, %161, %cst_128 {dimension_numbers = #tpu.dot_dimension_numbers<[1], [0], [0], [1], [0, 0, 1, 1], [], []>} : vector<8x4xbf16>, vector<4x16xbf16>, vector<8x16xf32> -> vector<8x16xf32>
    %163 = arith.addf %158, %162 : vector<8x16xf32>
    %164 = vector.extract_strided_slice %160 {offsets = [0, 1], sizes = [4, 16], strides = [1, 1]} : vector<4x18xbf16> to vector<4x16xbf16>
    %cst_129 = arith.constant dense<0.000000e+00> : vector<8x16xf32>
    %165 = tpu.matmul %16, %164, %cst_129 {dimension_numbers = #tpu.dot_dimension_numbers<[1], [0], [0], [1], [0, 0, 1, 1], [], []>} : vector<8x4xbf16>, vector<4x16xbf16>, vector<8x16xf32> -> vector<8x16xf32>
    %166 = arith.addf %163, %165 : vector<8x16xf32>
    %167 = vector.extract_strided_slice %160 {offsets = [0, 2], sizes = [4, 16], strides = [1, 1]} : vector<4x18xbf16> to vector<4x16xbf16>
    %cst_130 = arith.constant dense<0.000000e+00> : vector<8x16xf32>
    %168 = tpu.matmul %18, %167, %cst_130 {dimension_numbers = #tpu.dot_dimension_numbers<[1], [0], [0], [1], [0, 0, 1, 1], [], []>} : vector<8x4xbf16>, vector<4x16xbf16>, vector<8x16xf32> -> vector<8x16xf32>
    %169 = arith.addf %166, %168 : vector<8x16xf32>
    %170 = vector.broadcast %0 : vector<8x1xf32> to vector<8x16xf32>
    %171 = arith.addf %169, %170 : vector<8x16xf32>
    %c0_131 = arith.constant 0 : index
    %c3_132 = arith.constant 3 : index
    %c0_133 = arith.constant 0 : index
    %c0_134 = arith.constant 0 : index
    %172 = vector.load %arg4[%c0_131, %c3_132, %c0_133, %c0_134] : memref<1x16x8x16xf32, #tpu.memory_space<vmem>>, vector<1x1x8x16xf32>
    %173 = vector.shape_cast %172 : vector<1x1x8x16xf32> to vector<8x16xf32>
    %174 = vector.shape_cast %171 : vector<8x16xf32> to vector<1x1x8x16xf32>
    tpu.vector_store %arg4[%c0_131, %c3_132, %c0_133, %c0_134], %174 {strides = array<i32>} : memref<1x16x8x16xf32, #tpu.memory_space<vmem>>, vector<1x1x8x16xf32>,
    %cst_135 = arith.constant 0.000000e+00 : f32
    %175 = vector.broadcast %cst_135 : f32 to vector<8x16xf32>
    %c0_136 = arith.constant 0 : index
    %c4_137 = arith.constant 4 : index
    %c0_138 = arith.constant 0 : index
    %c0_139 = arith.constant 0 : index
    %176 = vector.load %arg1[%c0_136, %c4_137, %c0_138, %c0_139] : memref<1x18x4x18xbf16, #tpu.memory_space<vmem>>, vector<1x1x4x18xbf16>
    %177 = vector.shape_cast %176 : vector<1x1x4x18xbf16> to vector<4x18xbf16>
    %178 = vector.extract_strided_slice %177 {offsets = [0, 0], sizes = [4, 16], strides = [1, 1]} : vector<4x18xbf16> to vector<4x16xbf16>
    %cst_140 = arith.constant dense<0.000000e+00> : vector<8x16xf32>
    %179 = tpu.matmul %2, %178, %cst_140 {dimension_numbers = #tpu.dot_dimension_numbers<[1], [0], [0], [1], [0, 0, 1, 1], [], []>} : vector<8x4xbf16>, vector<4x16xbf16>, vector<8x16xf32> -> vector<8x16xf32>
    %180 = arith.addf %175, %179 : vector<8x16xf32>
    %181 = vector.extract_strided_slice %177 {offsets = [0, 1], sizes = [4, 16], strides = [1, 1]} : vector<4x18xbf16> to vector<4x16xbf16>
    %cst_141 = arith.constant dense<0.000000e+00> : vector<8x16xf32>
    %182 = tpu.matmul %4, %181, %cst_141 {dimension_numbers = #tpu.dot_dimension_numbers<[1], [0], [0], [1], [0, 0, 1, 1], [], []>} : vector<8x4xbf16>, vector<4x16xbf16>, vector<8x16xf32> -> vector<8x16xf32>
    %183 = arith.addf %180, %182 : vector<8x16xf32>
    %184 = vector.extract_strided_slice %177 {offsets = [0, 2], sizes = [4, 16], strides = [1, 1]} : vector<4x18xbf16> to vector<4x16xbf16>
    %cst_142 = arith.constant dense<0.000000e+00> : vector<8x16xf32>
    %185 = tpu.matmul %6, %184, %cst_142 {dimension_numbers = #tpu.dot_dimension_numbers<[1], [0], [0], [1], [0, 0, 1, 1], [], []>} : vector<8x4xbf16>, vector<4x16xbf16>, vector<8x16xf32> -> vector<8x16xf32>
    %186 = arith.addf %183, %185 : vector<8x16xf32>
    %c0_143 = arith.constant 0 : index
    %c5_144 = arith.constant 5 : index
    %c0_145 = arith.constant 0 : index
    %c0_146 = arith.constant 0 : index
    %187 = vector.load %arg1[%c0_143, %c5_144, %c0_145, %c0_146] : memref<1x18x4x18xbf16, #tpu.memory_space<vmem>>, vector<1x1x4x18xbf16>
    %188 = vector.shape_cast %187 : vector<1x1x4x18xbf16> to vector<4x18xbf16>
    %189 = vector.extract_strided_slice %188 {offsets = [0, 0], sizes = [4, 16], strides = [1, 1]} : vector<4x18xbf16> to vector<4x16xbf16>
    %cst_147 = arith.constant dense<0.000000e+00> : vector<8x16xf32>
    %190 = tpu.matmul %8, %189, %cst_147 {dimension_numbers = #tpu.dot_dimension_numbers<[1], [0], [0], [1], [0, 0, 1, 1], [], []>} : vector<8x4xbf16>, vector<4x16xbf16>, vector<8x16xf32> -> vector<8x16xf32>
    %191 = arith.addf %186, %190 : vector<8x16xf32>
    %192 = vector.extract_strided_slice %188 {offsets = [0, 1], sizes = [4, 16], strides = [1, 1]} : vector<4x18xbf16> to vector<4x16xbf16>
    %cst_148 = arith.constant dense<0.000000e+00> : vector<8x16xf32>
    %193 = tpu.matmul %10, %192, %cst_148 {dimension_numbers = #tpu.dot_dimension_numbers<[1], [0], [0], [1], [0, 0, 1, 1], [], []>} : vector<8x4xbf16>, vector<4x16xbf16>, vector<8x16xf32> -> vector<8x16xf32>
    %194 = arith.addf %191, %193 : vector<8x16xf32>
    %195 = vector.extract_strided_slice %188 {offsets = [0, 2], sizes = [4, 16], strides = [1, 1]} : vector<4x18xbf16> to vector<4x16xbf16>
    %cst_149 = arith.constant dense<0.000000e+00> : vector<8x16xf32>
    %196 = tpu.matmul %12, %195, %cst_149 {dimension_numbers = #tpu.dot_dimension_numbers<[1], [0], [0], [1], [0, 0, 1, 1], [], []>} : vector<8x4xbf16>, vector<4x16xbf16>, vector<8x16xf32> -> vector<8x16xf32>
    %197 = arith.addf %194, %196 : vector<8x16xf32>
    %c0_150 = arith.constant 0 : index
    %c6 = arith.constant 6 : index
    %c0_151 = arith.constant 0 : index
    %c0_152 = arith.constant 0 : index
    %198 = vector.load %arg1[%c0_150, %c6, %c0_151, %c0_152] : memref<1x18x4x18xbf16, #tpu.memory_space<vmem>>, vector<1x1x4x18xbf16>
    %199 = vector.shape_cast %198 : vector<1x1x4x18xbf16> to vector<4x18xbf16>
    %200 = vector.extract_strided_slice %199 {offsets = [0, 0], sizes = [4, 16], strides = [1, 1]} : vector<4x18xbf16> to vector<4x16xbf16>
    %cst_153 = arith.constant dense<0.000000e+00> : vector<8x16xf32>
    %201 = tpu.matmul %14, %200, %cst_153 {dimension_numbers = #tpu.dot_dimension_numbers<[1], [0], [0], [1], [0, 0, 1, 1], [], []>} : vector<8x4xbf16>, vector<4x16xbf16>, vector<8x16xf32> -> vector<8x16xf32>
    %202 = arith.addf %197, %201 : vector<8x16xf32>
    %203 = vector.extract_strided_slice %199 {offsets = [0, 1], sizes = [4, 16], strides = [1, 1]} : vector<4x18xbf16> to vector<4x16xbf16>
    %cst_154 = arith.constant dense<0.000000e+00> : vector<8x16xf32>
    %204 = tpu.matmul %16, %203, %cst_154 {dimension_numbers = #tpu.dot_dimension_numbers<[1], [0], [0], [1], [0, 0, 1, 1], [], []>} : vector<8x4xbf16>, vector<4x16xbf16>, vector<8x16xf32> -> vector<8x16xf32>
    %205 = arith.addf %202, %204 : vector<8x16xf32>
    %206 = vector.extract_strided_slice %199 {offsets = [0, 2], sizes = [4, 16], strides = [1, 1]} : vector<4x18xbf16> to vector<4x16xbf16>
    %cst_155 = arith.constant dense<0.000000e+00> : vector<8x16xf32>
    %207 = tpu.matmul %18, %206, %cst_155 {dimension_numbers = #tpu.dot_dimension_numbers<[1], [0], [0], [1], [0, 0, 1, 1], [], []>} : vector<8x4xbf16>, vector<4x16xbf16>, vector<8x16xf32> -> vector<8x16xf32>
    %208 = arith.addf %205, %207 : vector<8x16xf32>
    %209 = vector.broadcast %0 : vector<8x1xf32> to vector<8x16xf32>
    %210 = arith.addf %208, %209 : vector<8x16xf32>
    %c0_156 = arith.constant 0 : index
    %c4_157 = arith.constant 4 : index
    %c0_158 = arith.constant 0 : index
    %c0_159 = arith.constant 0 : index
    %211 = vector.load %arg4[%c0_156, %c4_157, %c0_158, %c0_159] : memref<1x16x8x16xf32, #tpu.memory_space<vmem>>, vector<1x1x8x16xf32>
    %212 = vector.shape_cast %211 : vector<1x1x8x16xf32> to vector<8x16xf32>
    %213 = vector.shape_cast %210 : vector<8x16xf32> to vector<1x1x8x16xf32>
    tpu.vector_store %arg4[%c0_156, %c4_157, %c0_158, %c0_159], %213 {strides = array<i32>} : memref<1x16x8x16xf32, #tpu.memory_space<vmem>>, vector<1x1x8x16xf32>,
    %cst_160 = arith.constant 0.000000e+00 : f32
    %214 = vector.broadcast %cst_160 : f32 to vector<8x16xf32>
    %c0_161 = arith.constant 0 : index
    %c5_162 = arith.constant 5 : index
    %c0_163 = arith.constant 0 : index
    %c0_164 = arith.constant 0 : index
    %215 = vector.load %arg1[%c0_161, %c5_162, %c0_163, %c0_164] : memref<1x18x4x18xbf16, #tpu.memory_space<vmem>>, vector<1x1x4x18xbf16>
    %216 = vector.shape_cast %215 : vector<1x1x4x18xbf16> to vector<4x18xbf16>
    %217 = vector.extract_strided_slice %216 {offsets = [0, 0], sizes = [4, 16], strides = [1, 1]} : vector<4x18xbf16> to vector<4x16xbf16>
    %cst_165 = arith.constant dense<0.000000e+00> : vector<8x16xf32>
    %218 = tpu.matmul %2, %217, %cst_165 {dimension_numbers = #tpu.dot_dimension_numbers<[1], [0], [0], [1], [0, 0, 1, 1], [], []>} : vector<8x4xbf16>, vector<4x16xbf16>, vector<8x16xf32> -> vector<8x16xf32>
    %219 = arith.addf %214, %218 : vector<8x16xf32>
    %220 = vector.extract_strided_slice %216 {offsets = [0, 1], sizes = [4, 16], strides = [1, 1]} : vector<4x18xbf16> to vector<4x16xbf16>
    %cst_166 = arith.constant dense<0.000000e+00> : vector<8x16xf32>
    %221 = tpu.matmul %4, %220, %cst_166 {dimension_numbers = #tpu.dot_dimension_numbers<[1], [0], [0], [1], [0, 0, 1, 1], [], []>} : vector<8x4xbf16>, vector<4x16xbf16>, vector<8x16xf32> -> vector<8x16xf32>
    %222 = arith.addf %219, %221 : vector<8x16xf32>
    %223 = vector.extract_strided_slice %216 {offsets = [0, 2], sizes = [4, 16], strides = [1, 1]} : vector<4x18xbf16> to vector<4x16xbf16>
    %cst_167 = arith.constant dense<0.000000e+00> : vector<8x16xf32>
    %224 = tpu.matmul %6, %223, %cst_167 {dimension_numbers = #tpu.dot_dimension_numbers<[1], [0], [0], [1], [0, 0, 1, 1], [], []>} : vector<8x4xbf16>, vector<4x16xbf16>, vector<8x16xf32> -> vector<8x16xf32>
    %225 = arith.addf %222, %224 : vector<8x16xf32>
    %c0_168 = arith.constant 0 : index
    %c6_169 = arith.constant 6 : index
    %c0_170 = arith.constant 0 : index
    %c0_171 = arith.constant 0 : index
    %226 = vector.load %arg1[%c0_168, %c6_169, %c0_170, %c0_171] : memref<1x18x4x18xbf16, #tpu.memory_space<vmem>>, vector<1x1x4x18xbf16>
    %227 = vector.shape_cast %226 : vector<1x1x4x18xbf16> to vector<4x18xbf16>
    %228 = vector.extract_strided_slice %227 {offsets = [0, 0], sizes = [4, 16], strides = [1, 1]} : vector<4x18xbf16> to vector<4x16xbf16>
    %cst_172 = arith.constant dense<0.000000e+00> : vector<8x16xf32>
    %229 = tpu.matmul %8, %228, %cst_172 {dimension_numbers = #tpu.dot_dimension_numbers<[1], [0], [0], [1], [0, 0, 1, 1], [], []>} : vector<8x4xbf16>, vector<4x16xbf16>, vector<8x16xf32> -> vector<8x16xf32>
    %230 = arith.addf %225, %229 : vector<8x16xf32>
    %231 = vector.extract_strided_slice %227 {offsets = [0, 1], sizes = [4, 16], strides = [1, 1]} : vector<4x18xbf16> to vector<4x16xbf16>
    %cst_173 = arith.constant dense<0.000000e+00> : vector<8x16xf32>
    %232 = tpu.matmul %10, %231, %cst_173 {dimension_numbers = #tpu.dot_dimension_numbers<[1], [0], [0], [1], [0, 0, 1, 1], [], []>} : vector<8x4xbf16>, vector<4x16xbf16>, vector<8x16xf32> -> vector<8x16xf32>
    %233 = arith.addf %230, %232 : vector<8x16xf32>
    %234 = vector.extract_strided_slice %227 {offsets = [0, 2], sizes = [4, 16], strides = [1, 1]} : vector<4x18xbf16> to vector<4x16xbf16>
    %cst_174 = arith.constant dense<0.000000e+00> : vector<8x16xf32>
    %235 = tpu.matmul %12, %234, %cst_174 {dimension_numbers = #tpu.dot_dimension_numbers<[1], [0], [0], [1], [0, 0, 1, 1], [], []>} : vector<8x4xbf16>, vector<4x16xbf16>, vector<8x16xf32> -> vector<8x16xf32>
    %236 = arith.addf %233, %235 : vector<8x16xf32>
    %c0_175 = arith.constant 0 : index
    %c7 = arith.constant 7 : index
    %c0_176 = arith.constant 0 : index
    %c0_177 = arith.constant 0 : index
    %237 = vector.load %arg1[%c0_175, %c7, %c0_176, %c0_177] : memref<1x18x4x18xbf16, #tpu.memory_space<vmem>>, vector<1x1x4x18xbf16>
    %238 = vector.shape_cast %237 : vector<1x1x4x18xbf16> to vector<4x18xbf16>
    %239 = vector.extract_strided_slice %238 {offsets = [0, 0], sizes = [4, 16], strides = [1, 1]} : vector<4x18xbf16> to vector<4x16xbf16>
    %cst_178 = arith.constant dense<0.000000e+00> : vector<8x16xf32>
    %240 = tpu.matmul %14, %239, %cst_178 {dimension_numbers = #tpu.dot_dimension_numbers<[1], [0], [0], [1], [0, 0, 1, 1], [], []>} : vector<8x4xbf16>, vector<4x16xbf16>, vector<8x16xf32> -> vector<8x16xf32>
    %241 = arith.addf %236, %240 : vector<8x16xf32>
    %242 = vector.extract_strided_slice %238 {offsets = [0, 1], sizes = [4, 16], strides = [1, 1]} : vector<4x18xbf16> to vector<4x16xbf16>
    %cst_179 = arith.constant dense<0.000000e+00> : vector<8x16xf32>
    %243 = tpu.matmul %16, %242, %cst_179 {dimension_numbers = #tpu.dot_dimension_numbers<[1], [0], [0], [1], [0, 0, 1, 1], [], []>} : vector<8x4xbf16>, vector<4x16xbf16>, vector<8x16xf32> -> vector<8x16xf32>
    %244 = arith.addf %241, %243 : vector<8x16xf32>
    %245 = vector.extract_strided_slice %238 {offsets = [0, 2], sizes = [4, 16], strides = [1, 1]} : vector<4x18xbf16> to vector<4x16xbf16>
    %cst_180 = arith.constant dense<0.000000e+00> : vector<8x16xf32>
    %246 = tpu.matmul %18, %245, %cst_180 {dimension_numbers = #tpu.dot_dimension_numbers<[1], [0], [0], [1], [0, 0, 1, 1], [], []>} : vector<8x4xbf16>, vector<4x16xbf16>, vector<8x16xf32> -> vector<8x16xf32>
    %247 = arith.addf %244, %246 : vector<8x16xf32>
    %248 = vector.broadcast %0 : vector<8x1xf32> to vector<8x16xf32>
    %249 = arith.addf %247, %248 : vector<8x16xf32>
    %c0_181 = arith.constant 0 : index
    %c5_182 = arith.constant 5 : index
    %c0_183 = arith.constant 0 : index
    %c0_184 = arith.constant 0 : index
    %250 = vector.load %arg4[%c0_181, %c5_182, %c0_183, %c0_184] : memref<1x16x8x16xf32, #tpu.memory_space<vmem>>, vector<1x1x8x16xf32>
    %251 = vector.shape_cast %250 : vector<1x1x8x16xf32> to vector<8x16xf32>
    %252 = vector.shape_cast %249 : vector<8x16xf32> to vector<1x1x8x16xf32>
    tpu.vector_store %arg4[%c0_181, %c5_182, %c0_183, %c0_184], %252 {strides = array<i32>} : memref<1x16x8x16xf32, #tpu.memory_space<vmem>>, vector<1x1x8x16xf32>,
    %cst_185 = arith.constant 0.000000e+00 : f32
    %253 = vector.broadcast %cst_185 : f32 to vector<8x16xf32>
    %c0_186 = arith.constant 0 : index
    %c6_187 = arith.constant 6 : index
    %c0_188 = arith.constant 0 : index
    %c0_189 = arith.constant 0 : index
    %254 = vector.load %arg1[%c0_186, %c6_187, %c0_188, %c0_189] : memref<1x18x4x18xbf16, #tpu.memory_space<vmem>>, vector<1x1x4x18xbf16>
    %255 = vector.shape_cast %254 : vector<1x1x4x18xbf16> to vector<4x18xbf16>
    %256 = vector.extract_strided_slice %255 {offsets = [0, 0], sizes = [4, 16], strides = [1, 1]} : vector<4x18xbf16> to vector<4x16xbf16>
    %cst_190 = arith.constant dense<0.000000e+00> : vector<8x16xf32>
    %257 = tpu.matmul %2, %256, %cst_190 {dimension_numbers = #tpu.dot_dimension_numbers<[1], [0], [0], [1], [0, 0, 1, 1], [], []>} : vector<8x4xbf16>, vector<4x16xbf16>, vector<8x16xf32> -> vector<8x16xf32>
    %258 = arith.addf %253, %257 : vector<8x16xf32>
    %259 = vector.extract_strided_slice %255 {offsets = [0, 1], sizes = [4, 16], strides = [1, 1]} : vector<4x18xbf16> to vector<4x16xbf16>
    %cst_191 = arith.constant dense<0.000000e+00> : vector<8x16xf32>
    %260 = tpu.matmul %4, %259, %cst_191 {dimension_numbers = #tpu.dot_dimension_numbers<[1], [0], [0], [1], [0, 0, 1, 1], [], []>} : vector<8x4xbf16>, vector<4x16xbf16>, vector<8x16xf32> -> vector<8x16xf32>
    %261 = arith.addf %258, %260 : vector<8x16xf32>
    %262 = vector.extract_strided_slice %255 {offsets = [0, 2], sizes = [4, 16], strides = [1, 1]} : vector<4x18xbf16> to vector<4x16xbf16>
    %cst_192 = arith.constant dense<0.000000e+00> : vector<8x16xf32>
    %263 = tpu.matmul %6, %262, %cst_192 {dimension_numbers = #tpu.dot_dimension_numbers<[1], [0], [0], [1], [0, 0, 1, 1], [], []>} : vector<8x4xbf16>, vector<4x16xbf16>, vector<8x16xf32> -> vector<8x16xf32>
    %264 = arith.addf %261, %263 : vector<8x16xf32>
    %c0_193 = arith.constant 0 : index
    %c7_194 = arith.constant 7 : index
    %c0_195 = arith.constant 0 : index
    %c0_196 = arith.constant 0 : index
    %265 = vector.load %arg1[%c0_193, %c7_194, %c0_195, %c0_196] : memref<1x18x4x18xbf16, #tpu.memory_space<vmem>>, vector<1x1x4x18xbf16>
    %266 = vector.shape_cast %265 : vector<1x1x4x18xbf16> to vector<4x18xbf16>
    %267 = vector.extract_strided_slice %266 {offsets = [0, 0], sizes = [4, 16], strides = [1, 1]} : vector<4x18xbf16> to vector<4x16xbf16>
    %cst_197 = arith.constant dense<0.000000e+00> : vector<8x16xf32>
    %268 = tpu.matmul %8, %267, %cst_197 {dimension_numbers = #tpu.dot_dimension_numbers<[1], [0], [0], [1], [0, 0, 1, 1], [], []>} : vector<8x4xbf16>, vector<4x16xbf16>, vector<8x16xf32> -> vector<8x16xf32>
    %269 = arith.addf %264, %268 : vector<8x16xf32>
    %270 = vector.extract_strided_slice %266 {offsets = [0, 1], sizes = [4, 16], strides = [1, 1]} : vector<4x18xbf16> to vector<4x16xbf16>
    %cst_198 = arith.constant dense<0.000000e+00> : vector<8x16xf32>
    %271 = tpu.matmul %10, %270, %cst_198 {dimension_numbers = #tpu.dot_dimension_numbers<[1], [0], [0], [1], [0, 0, 1, 1], [], []>} : vector<8x4xbf16>, vector<4x16xbf16>, vector<8x16xf32> -> vector<8x16xf32>
    %272 = arith.addf %269, %271 : vector<8x16xf32>
    %273 = vector.extract_strided_slice %266 {offsets = [0, 2], sizes = [4, 16], strides = [1, 1]} : vector<4x18xbf16> to vector<4x16xbf16>
    %cst_199 = arith.constant dense<0.000000e+00> : vector<8x16xf32>
    %274 = tpu.matmul %12, %273, %cst_199 {dimension_numbers = #tpu.dot_dimension_numbers<[1], [0], [0], [1], [0, 0, 1, 1], [], []>} : vector<8x4xbf16>, vector<4x16xbf16>, vector<8x16xf32> -> vector<8x16xf32>
    %275 = arith.addf %272, %274 : vector<8x16xf32>
    %c0_200 = arith.constant 0 : index
    %c8 = arith.constant 8 : index
    %c0_201 = arith.constant 0 : index
    %c0_202 = arith.constant 0 : index
    %276 = vector.load %arg1[%c0_200, %c8, %c0_201, %c0_202] : memref<1x18x4x18xbf16, #tpu.memory_space<vmem>>, vector<1x1x4x18xbf16>
    %277 = vector.shape_cast %276 : vector<1x1x4x18xbf16> to vector<4x18xbf16>
    %278 = vector.extract_strided_slice %277 {offsets = [0, 0], sizes = [4, 16], strides = [1, 1]} : vector<4x18xbf16> to vector<4x16xbf16>
    %cst_203 = arith.constant dense<0.000000e+00> : vector<8x16xf32>
    %279 = tpu.matmul %14, %278, %cst_203 {dimension_numbers = #tpu.dot_dimension_numbers<[1], [0], [0], [1], [0, 0, 1, 1], [], []>} : vector<8x4xbf16>, vector<4x16xbf16>, vector<8x16xf32> -> vector<8x16xf32>
    %280 = arith.addf %275, %279 : vector<8x16xf32>
    %281 = vector.extract_strided_slice %277 {offsets = [0, 1], sizes = [4, 16], strides = [1, 1]} : vector<4x18xbf16> to vector<4x16xbf16>
    %cst_204 = arith.constant dense<0.000000e+00> : vector<8x16xf32>
    %282 = tpu.matmul %16, %281, %cst_204 {dimension_numbers = #tpu.dot_dimension_numbers<[1], [0], [0], [1], [0, 0, 1, 1], [], []>} : vector<8x4xbf16>, vector<4x16xbf16>, vector<8x16xf32> -> vector<8x16xf32>
    %283 = arith.addf %280, %282 : vector<8x16xf32>
    %284 = vector.extract_strided_slice %277 {offsets = [0, 2], sizes = [4, 16], strides = [1, 1]} : vector<4x18xbf16> to vector<4x16xbf16>
    %cst_205 = arith.constant dense<0.000000e+00> : vector<8x16xf32>
    %285 = tpu.matmul %18, %284, %cst_205 {dimension_numbers = #tpu.dot_dimension_numbers<[1], [0], [0], [1], [0, 0, 1, 1], [], []>} : vector<8x4xbf16>, vector<4x16xbf16>, vector<8x16xf32> -> vector<8x16xf32>
    %286 = arith.addf %283, %285 : vector<8x16xf32>
    %287 = vector.broadcast %0 : vector<8x1xf32> to vector<8x16xf32>
    %288 = arith.addf %286, %287 : vector<8x16xf32>
    %c0_206 = arith.constant 0 : index
    %c6_207 = arith.constant 6 : index
    %c0_208 = arith.constant 0 : index
    %c0_209 = arith.constant 0 : index
    %289 = vector.load %arg4[%c0_206, %c6_207, %c0_208, %c0_209] : memref<1x16x8x16xf32, #tpu.memory_space<vmem>>, vector<1x1x8x16xf32>
    %290 = vector.shape_cast %289 : vector<1x1x8x16xf32> to vector<8x16xf32>
    %291 = vector.shape_cast %288 : vector<8x16xf32> to vector<1x1x8x16xf32>
    tpu.vector_store %arg4[%c0_206, %c6_207, %c0_208, %c0_209], %291 {strides = array<i32>} : memref<1x16x8x16xf32, #tpu.memory_space<vmem>>, vector<1x1x8x16xf32>,
    %cst_210 = arith.constant 0.000000e+00 : f32
    %292 = vector.broadcast %cst_210 : f32 to vector<8x16xf32>
    %c0_211 = arith.constant 0 : index
    %c7_212 = arith.constant 7 : index
    %c0_213 = arith.constant 0 : index
    %c0_214 = arith.constant 0 : index
    %293 = vector.load %arg1[%c0_211, %c7_212, %c0_213, %c0_214] : memref<1x18x4x18xbf16, #tpu.memory_space<vmem>>, vector<1x1x4x18xbf16>
    %294 = vector.shape_cast %293 : vector<1x1x4x18xbf16> to vector<4x18xbf16>
    %295 = vector.extract_strided_slice %294 {offsets = [0, 0], sizes = [4, 16], strides = [1, 1]} : vector<4x18xbf16> to vector<4x16xbf16>
    %cst_215 = arith.constant dense<0.000000e+00> : vector<8x16xf32>
    %296 = tpu.matmul %2, %295, %cst_215 {dimension_numbers = #tpu.dot_dimension_numbers<[1], [0], [0], [1], [0, 0, 1, 1], [], []>} : vector<8x4xbf16>, vector<4x16xbf16>, vector<8x16xf32> -> vector<8x16xf32>
    %297 = arith.addf %292, %296 : vector<8x16xf32>
    %298 = vector.extract_strided_slice %294 {offsets = [0, 1], sizes = [4, 16], strides = [1, 1]} : vector<4x18xbf16> to vector<4x16xbf16>
    %cst_216 = arith.constant dense<0.000000e+00> : vector<8x16xf32>
    %299 = tpu.matmul %4, %298, %cst_216 {dimension_numbers = #tpu.dot_dimension_numbers<[1], [0], [0], [1], [0, 0, 1, 1], [], []>} : vector<8x4xbf16>, vector<4x16xbf16>, vector<8x16xf32> -> vector<8x16xf32>
    %300 = arith.addf %297, %299 : vector<8x16xf32>
    %301 = vector.extract_strided_slice %294 {offsets = [0, 2], sizes = [4, 16], strides = [1, 1]} : vector<4x18xbf16> to vector<4x16xbf16>
    %cst_217 = arith.constant dense<0.000000e+00> : vector<8x16xf32>
    %302 = tpu.matmul %6, %301, %cst_217 {dimension_numbers = #tpu.dot_dimension_numbers<[1], [0], [0], [1], [0, 0, 1, 1], [], []>} : vector<8x4xbf16>, vector<4x16xbf16>, vector<8x16xf32> -> vector<8x16xf32>
    %303 = arith.addf %300, %302 : vector<8x16xf32>
    %c0_218 = arith.constant 0 : index
    %c8_219 = arith.constant 8 : index
    %c0_220 = arith.constant 0 : index
    %c0_221 = arith.constant 0 : index
    %304 = vector.load %arg1[%c0_218, %c8_219, %c0_220, %c0_221] : memref<1x18x4x18xbf16, #tpu.memory_space<vmem>>, vector<1x1x4x18xbf16>
    %305 = vector.shape_cast %304 : vector<1x1x4x18xbf16> to vector<4x18xbf16>
    %306 = vector.extract_strided_slice %305 {offsets = [0, 0], sizes = [4, 16], strides = [1, 1]} : vector<4x18xbf16> to vector<4x16xbf16>
    %cst_222 = arith.constant dense<0.000000e+00> : vector<8x16xf32>
    %307 = tpu.matmul %8, %306, %cst_222 {dimension_numbers = #tpu.dot_dimension_numbers<[1], [0], [0], [1], [0, 0, 1, 1], [], []>} : vector<8x4xbf16>, vector<4x16xbf16>, vector<8x16xf32> -> vector<8x16xf32>
    %308 = arith.addf %303, %307 : vector<8x16xf32>
    %309 = vector.extract_strided_slice %305 {offsets = [0, 1], sizes = [4, 16], strides = [1, 1]} : vector<4x18xbf16> to vector<4x16xbf16>
    %cst_223 = arith.constant dense<0.000000e+00> : vector<8x16xf32>
    %310 = tpu.matmul %10, %309, %cst_223 {dimension_numbers = #tpu.dot_dimension_numbers<[1], [0], [0], [1], [0, 0, 1, 1], [], []>} : vector<8x4xbf16>, vector<4x16xbf16>, vector<8x16xf32> -> vector<8x16xf32>
    %311 = arith.addf %308, %310 : vector<8x16xf32>
    %312 = vector.extract_strided_slice %305 {offsets = [0, 2], sizes = [4, 16], strides = [1, 1]} : vector<4x18xbf16> to vector<4x16xbf16>
    %cst_224 = arith.constant dense<0.000000e+00> : vector<8x16xf32>
    %313 = tpu.matmul %12, %312, %cst_224 {dimension_numbers = #tpu.dot_dimension_numbers<[1], [0], [0], [1], [0, 0, 1, 1], [], []>} : vector<8x4xbf16>, vector<4x16xbf16>, vector<8x16xf32> -> vector<8x16xf32>
    %314 = arith.addf %311, %313 : vector<8x16xf32>
    %c0_225 = arith.constant 0 : index
    %c9 = arith.constant 9 : index
    %c0_226 = arith.constant 0 : index
    %c0_227 = arith.constant 0 : index
    %315 = vector.load %arg1[%c0_225, %c9, %c0_226, %c0_227] : memref<1x18x4x18xbf16, #tpu.memory_space<vmem>>, vector<1x1x4x18xbf16>
    %316 = vector.shape_cast %315 : vector<1x1x4x18xbf16> to vector<4x18xbf16>
    %317 = vector.extract_strided_slice %316 {offsets = [0, 0], sizes = [4, 16], strides = [1, 1]} : vector<4x18xbf16> to vector<4x16xbf16>
    %cst_228 = arith.constant dense<0.000000e+00> : vector<8x16xf32>
    %318 = tpu.matmul %14, %317, %cst_228 {dimension_numbers = #tpu.dot_dimension_numbers<[1], [0], [0], [1], [0, 0, 1, 1], [], []>} : vector<8x4xbf16>, vector<4x16xbf16>, vector<8x16xf32> -> vector<8x16xf32>
    %319 = arith.addf %314, %318 : vector<8x16xf32>
    %320 = vector.extract_strided_slice %316 {offsets = [0, 1], sizes = [4, 16], strides = [1, 1]} : vector<4x18xbf16> to vector<4x16xbf16>
    %cst_229 = arith.constant dense<0.000000e+00> : vector<8x16xf32>
    %321 = tpu.matmul %16, %320, %cst_229 {dimension_numbers = #tpu.dot_dimension_numbers<[1], [0], [0], [1], [0, 0, 1, 1], [], []>} : vector<8x4xbf16>, vector<4x16xbf16>, vector<8x16xf32> -> vector<8x16xf32>
    %322 = arith.addf %319, %321 : vector<8x16xf32>
    %323 = vector.extract_strided_slice %316 {offsets = [0, 2], sizes = [4, 16], strides = [1, 1]} : vector<4x18xbf16> to vector<4x16xbf16>
    %cst_230 = arith.constant dense<0.000000e+00> : vector<8x16xf32>
    %324 = tpu.matmul %18, %323, %cst_230 {dimension_numbers = #tpu.dot_dimension_numbers<[1], [0], [0], [1], [0, 0, 1, 1], [], []>} : vector<8x4xbf16>, vector<4x16xbf16>, vector<8x16xf32> -> vector<8x16xf32>
    %325 = arith.addf %322, %324 : vector<8x16xf32>
    %326 = vector.broadcast %0 : vector<8x1xf32> to vector<8x16xf32>
    %327 = arith.addf %325, %326 : vector<8x16xf32>
    %c0_231 = arith.constant 0 : index
    %c7_232 = arith.constant 7 : index
    %c0_233 = arith.constant 0 : index
    %c0_234 = arith.constant 0 : index
    %328 = vector.load %arg4[%c0_231, %c7_232, %c0_233, %c0_234] : memref<1x16x8x16xf32, #tpu.memory_space<vmem>>, vector<1x1x8x16xf32>
    %329 = vector.shape_cast %328 : vector<1x1x8x16xf32> to vector<8x16xf32>
    %330 = vector.shape_cast %327 : vector<8x16xf32> to vector<1x1x8x16xf32>
    tpu.vector_store %arg4[%c0_231, %c7_232, %c0_233, %c0_234], %330 {strides = array<i32>} : memref<1x16x8x16xf32, #tpu.memory_space<vmem>>, vector<1x1x8x16xf32>,
    %cst_235 = arith.constant 0.000000e+00 : f32
    %331 = vector.broadcast %cst_235 : f32 to vector<8x16xf32>
    %c0_236 = arith.constant 0 : index
    %c8_237 = arith.constant 8 : index
    %c0_238 = arith.constant 0 : index
    %c0_239 = arith.constant 0 : index
    %332 = vector.load %arg1[%c0_236, %c8_237, %c0_238, %c0_239] : memref<1x18x4x18xbf16, #tpu.memory_space<vmem>>, vector<1x1x4x18xbf16>
    %333 = vector.shape_cast %332 : vector<1x1x4x18xbf16> to vector<4x18xbf16>
    %334 = vector.extract_strided_slice %333 {offsets = [0, 0], sizes = [4, 16], strides = [1, 1]} : vector<4x18xbf16> to vector<4x16xbf16>
    %cst_240 = arith.constant dense<0.000000e+00> : vector<8x16xf32>
    %335 = tpu.matmul %2, %334, %cst_240 {dimension_numbers = #tpu.dot_dimension_numbers<[1], [0], [0], [1], [0, 0, 1, 1], [], []>} : vector<8x4xbf16>, vector<4x16xbf16>, vector<8x16xf32> -> vector<8x16xf32>
    %336 = arith.addf %331, %335 : vector<8x16xf32>
    %337 = vector.extract_strided_slice %333 {offsets = [0, 1], sizes = [4, 16], strides = [1, 1]} : vector<4x18xbf16> to vector<4x16xbf16>
    %cst_241 = arith.constant dense<0.000000e+00> : vector<8x16xf32>
    %338 = tpu.matmul %4, %337, %cst_241 {dimension_numbers = #tpu.dot_dimension_numbers<[1], [0], [0], [1], [0, 0, 1, 1], [], []>} : vector<8x4xbf16>, vector<4x16xbf16>, vector<8x16xf32> -> vector<8x16xf32>
    %339 = arith.addf %336, %338 : vector<8x16xf32>
    %340 = vector.extract_strided_slice %333 {offsets = [0, 2], sizes = [4, 16], strides = [1, 1]} : vector<4x18xbf16> to vector<4x16xbf16>
    %cst_242 = arith.constant dense<0.000000e+00> : vector<8x16xf32>
    %341 = tpu.matmul %6, %340, %cst_242 {dimension_numbers = #tpu.dot_dimension_numbers<[1], [0], [0], [1], [0, 0, 1, 1], [], []>} : vector<8x4xbf16>, vector<4x16xbf16>, vector<8x16xf32> -> vector<8x16xf32>
    %342 = arith.addf %339, %341 : vector<8x16xf32>
    %c0_243 = arith.constant 0 : index
    %c9_244 = arith.constant 9 : index
    %c0_245 = arith.constant 0 : index
    %c0_246 = arith.constant 0 : index
    %343 = vector.load %arg1[%c0_243, %c9_244, %c0_245, %c0_246] : memref<1x18x4x18xbf16, #tpu.memory_space<vmem>>, vector<1x1x4x18xbf16>
    %344 = vector.shape_cast %343 : vector<1x1x4x18xbf16> to vector<4x18xbf16>
    %345 = vector.extract_strided_slice %344 {offsets = [0, 0], sizes = [4, 16], strides = [1, 1]} : vector<4x18xbf16> to vector<4x16xbf16>
    %cst_247 = arith.constant dense<0.000000e+00> : vector<8x16xf32>
    %346 = tpu.matmul %8, %345, %cst_247 {dimension_numbers = #tpu.dot_dimension_numbers<[1], [0], [0], [1], [0, 0, 1, 1], [], []>} : vector<8x4xbf16>, vector<4x16xbf16>, vector<8x16xf32> -> vector<8x16xf32>
    %347 = arith.addf %342, %346 : vector<8x16xf32>
    %348 = vector.extract_strided_slice %344 {offsets = [0, 1], sizes = [4, 16], strides = [1, 1]} : vector<4x18xbf16> to vector<4x16xbf16>
    %cst_248 = arith.constant dense<0.000000e+00> : vector<8x16xf32>
    %349 = tpu.matmul %10, %348, %cst_248 {dimension_numbers = #tpu.dot_dimension_numbers<[1], [0], [0], [1], [0, 0, 1, 1], [], []>} : vector<8x4xbf16>, vector<4x16xbf16>, vector<8x16xf32> -> vector<8x16xf32>
    %350 = arith.addf %347, %349 : vector<8x16xf32>
    %351 = vector.extract_strided_slice %344 {offsets = [0, 2], sizes = [4, 16], strides = [1, 1]} : vector<4x18xbf16> to vector<4x16xbf16>
    %cst_249 = arith.constant dense<0.000000e+00> : vector<8x16xf32>
    %352 = tpu.matmul %12, %351, %cst_249 {dimension_numbers = #tpu.dot_dimension_numbers<[1], [0], [0], [1], [0, 0, 1, 1], [], []>} : vector<8x4xbf16>, vector<4x16xbf16>, vector<8x16xf32> -> vector<8x16xf32>
    %353 = arith.addf %350, %352 : vector<8x16xf32>
    %c0_250 = arith.constant 0 : index
    %c10 = arith.constant 10 : index
    %c0_251 = arith.constant 0 : index
    %c0_252 = arith.constant 0 : index
    %354 = vector.load %arg1[%c0_250, %c10, %c0_251, %c0_252] : memref<1x18x4x18xbf16, #tpu.memory_space<vmem>>, vector<1x1x4x18xbf16>
    %355 = vector.shape_cast %354 : vector<1x1x4x18xbf16> to vector<4x18xbf16>
    %356 = vector.extract_strided_slice %355 {offsets = [0, 0], sizes = [4, 16], strides = [1, 1]} : vector<4x18xbf16> to vector<4x16xbf16>
    %cst_253 = arith.constant dense<0.000000e+00> : vector<8x16xf32>
    %357 = tpu.matmul %14, %356, %cst_253 {dimension_numbers = #tpu.dot_dimension_numbers<[1], [0], [0], [1], [0, 0, 1, 1], [], []>} : vector<8x4xbf16>, vector<4x16xbf16>, vector<8x16xf32> -> vector<8x16xf32>
    %358 = arith.addf %353, %357 : vector<8x16xf32>
    %359 = vector.extract_strided_slice %355 {offsets = [0, 1], sizes = [4, 16], strides = [1, 1]} : vector<4x18xbf16> to vector<4x16xbf16>
    %cst_254 = arith.constant dense<0.000000e+00> : vector<8x16xf32>
    %360 = tpu.matmul %16, %359, %cst_254 {dimension_numbers = #tpu.dot_dimension_numbers<[1], [0], [0], [1], [0, 0, 1, 1], [], []>} : vector<8x4xbf16>, vector<4x16xbf16>, vector<8x16xf32> -> vector<8x16xf32>
    %361 = arith.addf %358, %360 : vector<8x16xf32>
    %362 = vector.extract_strided_slice %355 {offsets = [0, 2], sizes = [4, 16], strides = [1, 1]} : vector<4x18xbf16> to vector<4x16xbf16>
    %cst_255 = arith.constant dense<0.000000e+00> : vector<8x16xf32>
    %363 = tpu.matmul %18, %362, %cst_255 {dimension_numbers = #tpu.dot_dimension_numbers<[1], [0], [0], [1], [0, 0, 1, 1], [], []>} : vector<8x4xbf16>, vector<4x16xbf16>, vector<8x16xf32> -> vector<8x16xf32>
    %364 = arith.addf %361, %363 : vector<8x16xf32>
    %365 = vector.broadcast %0 : vector<8x1xf32> to vector<8x16xf32>
    %366 = arith.addf %364, %365 : vector<8x16xf32>
    %c0_256 = arith.constant 0 : index
    %c8_257 = arith.constant 8 : index
    %c0_258 = arith.constant 0 : index
    %c0_259 = arith.constant 0 : index
    %367 = vector.load %arg4[%c0_256, %c8_257, %c0_258, %c0_259] : memref<1x16x8x16xf32, #tpu.memory_space<vmem>>, vector<1x1x8x16xf32>
    %368 = vector.shape_cast %367 : vector<1x1x8x16xf32> to vector<8x16xf32>
    %369 = vector.shape_cast %366 : vector<8x16xf32> to vector<1x1x8x16xf32>
    tpu.vector_store %arg4[%c0_256, %c8_257, %c0_258, %c0_259], %369 {strides = array<i32>} : memref<1x16x8x16xf32, #tpu.memory_space<vmem>>, vector<1x1x8x16xf32>,
    %cst_260 = arith.constant 0.000000e+00 : f32
    %370 = vector.broadcast %cst_260 : f32 to vector<8x16xf32>
    %c0_261 = arith.constant 0 : index
    %c9_262 = arith.constant 9 : index
    %c0_263 = arith.constant 0 : index
    %c0_264 = arith.constant 0 : index
    %371 = vector.load %arg1[%c0_261, %c9_262, %c0_263, %c0_264] : memref<1x18x4x18xbf16, #tpu.memory_space<vmem>>, vector<1x1x4x18xbf16>
    %372 = vector.shape_cast %371 : vector<1x1x4x18xbf16> to vector<4x18xbf16>
    %373 = vector.extract_strided_slice %372 {offsets = [0, 0], sizes = [4, 16], strides = [1, 1]} : vector<4x18xbf16> to vector<4x16xbf16>
    %cst_265 = arith.constant dense<0.000000e+00> : vector<8x16xf32>
    %374 = tpu.matmul %2, %373, %cst_265 {dimension_numbers = #tpu.dot_dimension_numbers<[1], [0], [0], [1], [0, 0, 1, 1], [], []>} : vector<8x4xbf16>, vector<4x16xbf16>, vector<8x16xf32> -> vector<8x16xf32>
    %375 = arith.addf %370, %374 : vector<8x16xf32>
    %376 = vector.extract_strided_slice %372 {offsets = [0, 1], sizes = [4, 16], strides = [1, 1]} : vector<4x18xbf16> to vector<4x16xbf16>
    %cst_266 = arith.constant dense<0.000000e+00> : vector<8x16xf32>
    %377 = tpu.matmul %4, %376, %cst_266 {dimension_numbers = #tpu.dot_dimension_numbers<[1], [0], [0], [1], [0, 0, 1, 1], [], []>} : vector<8x4xbf16>, vector<4x16xbf16>, vector<8x16xf32> -> vector<8x16xf32>
    %378 = arith.addf %375, %377 : vector<8x16xf32>
    %379 = vector.extract_strided_slice %372 {offsets = [0, 2], sizes = [4, 16], strides = [1, 1]} : vector<4x18xbf16> to vector<4x16xbf16>
    %cst_267 = arith.constant dense<0.000000e+00> : vector<8x16xf32>
    %380 = tpu.matmul %6, %379, %cst_267 {dimension_numbers = #tpu.dot_dimension_numbers<[1], [0], [0], [1], [0, 0, 1, 1], [], []>} : vector<8x4xbf16>, vector<4x16xbf16>, vector<8x16xf32> -> vector<8x16xf32>
    %381 = arith.addf %378, %380 : vector<8x16xf32>
    %c0_268 = arith.constant 0 : index
    %c10_269 = arith.constant 10 : index
    %c0_270 = arith.constant 0 : index
    %c0_271 = arith.constant 0 : index
    %382 = vector.load %arg1[%c0_268, %c10_269, %c0_270, %c0_271] : memref<1x18x4x18xbf16, #tpu.memory_space<vmem>>, vector<1x1x4x18xbf16>
    %383 = vector.shape_cast %382 : vector<1x1x4x18xbf16> to vector<4x18xbf16>
    %384 = vector.extract_strided_slice %383 {offsets = [0, 0], sizes = [4, 16], strides = [1, 1]} : vector<4x18xbf16> to vector<4x16xbf16>
    %cst_272 = arith.constant dense<0.000000e+00> : vector<8x16xf32>
    %385 = tpu.matmul %8, %384, %cst_272 {dimension_numbers = #tpu.dot_dimension_numbers<[1], [0], [0], [1], [0, 0, 1, 1], [], []>} : vector<8x4xbf16>, vector<4x16xbf16>, vector<8x16xf32> -> vector<8x16xf32>
    %386 = arith.addf %381, %385 : vector<8x16xf32>
    %387 = vector.extract_strided_slice %383 {offsets = [0, 1], sizes = [4, 16], strides = [1, 1]} : vector<4x18xbf16> to vector<4x16xbf16>
    %cst_273 = arith.constant dense<0.000000e+00> : vector<8x16xf32>
    %388 = tpu.matmul %10, %387, %cst_273 {dimension_numbers = #tpu.dot_dimension_numbers<[1], [0], [0], [1], [0, 0, 1, 1], [], []>} : vector<8x4xbf16>, vector<4x16xbf16>, vector<8x16xf32> -> vector<8x16xf32>
    %389 = arith.addf %386, %388 : vector<8x16xf32>
    %390 = vector.extract_strided_slice %383 {offsets = [0, 2], sizes = [4, 16], strides = [1, 1]} : vector<4x18xbf16> to vector<4x16xbf16>
    %cst_274 = arith.constant dense<0.000000e+00> : vector<8x16xf32>
    %391 = tpu.matmul %12, %390, %cst_274 {dimension_numbers = #tpu.dot_dimension_numbers<[1], [0], [0], [1], [0, 0, 1, 1], [], []>} : vector<8x4xbf16>, vector<4x16xbf16>, vector<8x16xf32> -> vector<8x16xf32>
    %392 = arith.addf %389, %391 : vector<8x16xf32>
    %c0_275 = arith.constant 0 : index
    %c11 = arith.constant 11 : index
    %c0_276 = arith.constant 0 : index
    %c0_277 = arith.constant 0 : index
    %393 = vector.load %arg1[%c0_275, %c11, %c0_276, %c0_277] : memref<1x18x4x18xbf16, #tpu.memory_space<vmem>>, vector<1x1x4x18xbf16>
    %394 = vector.shape_cast %393 : vector<1x1x4x18xbf16> to vector<4x18xbf16>
    %395 = vector.extract_strided_slice %394 {offsets = [0, 0], sizes = [4, 16], strides = [1, 1]} : vector<4x18xbf16> to vector<4x16xbf16>
    %cst_278 = arith.constant dense<0.000000e+00> : vector<8x16xf32>
    %396 = tpu.matmul %14, %395, %cst_278 {dimension_numbers = #tpu.dot_dimension_numbers<[1], [0], [0], [1], [0, 0, 1, 1], [], []>} : vector<8x4xbf16>, vector<4x16xbf16>, vector<8x16xf32> -> vector<8x16xf32>
    %397 = arith.addf %392, %396 : vector<8x16xf32>
    %398 = vector.extract_strided_slice %394 {offsets = [0, 1], sizes = [4, 16], strides = [1, 1]} : vector<4x18xbf16> to vector<4x16xbf16>
    %cst_279 = arith.constant dense<0.000000e+00> : vector<8x16xf32>
    %399 = tpu.matmul %16, %398, %cst_279 {dimension_numbers = #tpu.dot_dimension_numbers<[1], [0], [0], [1], [0, 0, 1, 1], [], []>} : vector<8x4xbf16>, vector<4x16xbf16>, vector<8x16xf32> -> vector<8x16xf32>
    %400 = arith.addf %397, %399 : vector<8x16xf32>
    %401 = vector.extract_strided_slice %394 {offsets = [0, 2], sizes = [4, 16], strides = [1, 1]} : vector<4x18xbf16> to vector<4x16xbf16>
    %cst_280 = arith.constant dense<0.000000e+00> : vector<8x16xf32>
    %402 = tpu.matmul %18, %401, %cst_280 {dimension_numbers = #tpu.dot_dimension_numbers<[1], [0], [0], [1], [0, 0, 1, 1], [], []>} : vector<8x4xbf16>, vector<4x16xbf16>, vector<8x16xf32> -> vector<8x16xf32>
    %403 = arith.addf %400, %402 : vector<8x16xf32>
    %404 = vector.broadcast %0 : vector<8x1xf32> to vector<8x16xf32>
    %405 = arith.addf %403, %404 : vector<8x16xf32>
    %c0_281 = arith.constant 0 : index
    %c9_282 = arith.constant 9 : index
    %c0_283 = arith.constant 0 : index
    %c0_284 = arith.constant 0 : index
    %406 = vector.load %arg4[%c0_281, %c9_282, %c0_283, %c0_284] : memref<1x16x8x16xf32, #tpu.memory_space<vmem>>, vector<1x1x8x16xf32>
    %407 = vector.shape_cast %406 : vector<1x1x8x16xf32> to vector<8x16xf32>
    %408 = vector.shape_cast %405 : vector<8x16xf32> to vector<1x1x8x16xf32>
    tpu.vector_store %arg4[%c0_281, %c9_282, %c0_283, %c0_284], %408 {strides = array<i32>} : memref<1x16x8x16xf32, #tpu.memory_space<vmem>>, vector<1x1x8x16xf32>,
    %cst_285 = arith.constant 0.000000e+00 : f32
    %409 = vector.broadcast %cst_285 : f32 to vector<8x16xf32>
    %c0_286 = arith.constant 0 : index
    %c10_287 = arith.constant 10 : index
    %c0_288 = arith.constant 0 : index
    %c0_289 = arith.constant 0 : index
    %410 = vector.load %arg1[%c0_286, %c10_287, %c0_288, %c0_289] : memref<1x18x4x18xbf16, #tpu.memory_space<vmem>>, vector<1x1x4x18xbf16>
    %411 = vector.shape_cast %410 : vector<1x1x4x18xbf16> to vector<4x18xbf16>
    %412 = vector.extract_strided_slice %411 {offsets = [0, 0], sizes = [4, 16], strides = [1, 1]} : vector<4x18xbf16> to vector<4x16xbf16>
    %cst_290 = arith.constant dense<0.000000e+00> : vector<8x16xf32>
    %413 = tpu.matmul %2, %412, %cst_290 {dimension_numbers = #tpu.dot_dimension_numbers<[1], [0], [0], [1], [0, 0, 1, 1], [], []>} : vector<8x4xbf16>, vector<4x16xbf16>, vector<8x16xf32> -> vector<8x16xf32>
    %414 = arith.addf %409, %413 : vector<8x16xf32>
    %415 = vector.extract_strided_slice %411 {offsets = [0, 1], sizes = [4, 16], strides = [1, 1]} : vector<4x18xbf16> to vector<4x16xbf16>
    %cst_291 = arith.constant dense<0.000000e+00> : vector<8x16xf32>
    %416 = tpu.matmul %4, %415, %cst_291 {dimension_numbers = #tpu.dot_dimension_numbers<[1], [0], [0], [1], [0, 0, 1, 1], [], []>} : vector<8x4xbf16>, vector<4x16xbf16>, vector<8x16xf32> -> vector<8x16xf32>
    %417 = arith.addf %414, %416 : vector<8x16xf32>
    %418 = vector.extract_strided_slice %411 {offsets = [0, 2], sizes = [4, 16], strides = [1, 1]} : vector<4x18xbf16> to vector<4x16xbf16>
    %cst_292 = arith.constant dense<0.000000e+00> : vector<8x16xf32>
    %419 = tpu.matmul %6, %418, %cst_292 {dimension_numbers = #tpu.dot_dimension_numbers<[1], [0], [0], [1], [0, 0, 1, 1], [], []>} : vector<8x4xbf16>, vector<4x16xbf16>, vector<8x16xf32> -> vector<8x16xf32>
    %420 = arith.addf %417, %419 : vector<8x16xf32>
    %c0_293 = arith.constant 0 : index
    %c11_294 = arith.constant 11 : index
    %c0_295 = arith.constant 0 : index
    %c0_296 = arith.constant 0 : index
    %421 = vector.load %arg1[%c0_293, %c11_294, %c0_295, %c0_296] : memref<1x18x4x18xbf16, #tpu.memory_space<vmem>>, vector<1x1x4x18xbf16>
    %422 = vector.shape_cast %421 : vector<1x1x4x18xbf16> to vector<4x18xbf16>
    %423 = vector.extract_strided_slice %422 {offsets = [0, 0], sizes = [4, 16], strides = [1, 1]} : vector<4x18xbf16> to vector<4x16xbf16>
    %cst_297 = arith.constant dense<0.000000e+00> : vector<8x16xf32>
    %424 = tpu.matmul %8, %423, %cst_297 {dimension_numbers = #tpu.dot_dimension_numbers<[1], [0], [0], [1], [0, 0, 1, 1], [], []>} : vector<8x4xbf16>, vector<4x16xbf16>, vector<8x16xf32> -> vector<8x16xf32>
    %425 = arith.addf %420, %424 : vector<8x16xf32>
    %426 = vector.extract_strided_slice %422 {offsets = [0, 1], sizes = [4, 16], strides = [1, 1]} : vector<4x18xbf16> to vector<4x16xbf16>
    %cst_298 = arith.constant dense<0.000000e+00> : vector<8x16xf32>
    %427 = tpu.matmul %10, %426, %cst_298 {dimension_numbers = #tpu.dot_dimension_numbers<[1], [0], [0], [1], [0, 0, 1, 1], [], []>} : vector<8x4xbf16>, vector<4x16xbf16>, vector<8x16xf32> -> vector<8x16xf32>
    %428 = arith.addf %425, %427 : vector<8x16xf32>
    %429 = vector.extract_strided_slice %422 {offsets = [0, 2], sizes = [4, 16], strides = [1, 1]} : vector<4x18xbf16> to vector<4x16xbf16>
    %cst_299 = arith.constant dense<0.000000e+00> : vector<8x16xf32>
    %430 = tpu.matmul %12, %429, %cst_299 {dimension_numbers = #tpu.dot_dimension_numbers<[1], [0], [0], [1], [0, 0, 1, 1], [], []>} : vector<8x4xbf16>, vector<4x16xbf16>, vector<8x16xf32> -> vector<8x16xf32>
    %431 = arith.addf %428, %430 : vector<8x16xf32>
    %c0_300 = arith.constant 0 : index
    %c12 = arith.constant 12 : index
    %c0_301 = arith.constant 0 : index
    %c0_302 = arith.constant 0 : index
    %432 = vector.load %arg1[%c0_300, %c12, %c0_301, %c0_302] : memref<1x18x4x18xbf16, #tpu.memory_space<vmem>>, vector<1x1x4x18xbf16>
    %433 = vector.shape_cast %432 : vector<1x1x4x18xbf16> to vector<4x18xbf16>
    %434 = vector.extract_strided_slice %433 {offsets = [0, 0], sizes = [4, 16], strides = [1, 1]} : vector<4x18xbf16> to vector<4x16xbf16>
    %cst_303 = arith.constant dense<0.000000e+00> : vector<8x16xf32>
    %435 = tpu.matmul %14, %434, %cst_303 {dimension_numbers = #tpu.dot_dimension_numbers<[1], [0], [0], [1], [0, 0, 1, 1], [], []>} : vector<8x4xbf16>, vector<4x16xbf16>, vector<8x16xf32> -> vector<8x16xf32>
    %436 = arith.addf %431, %435 : vector<8x16xf32>
    %437 = vector.extract_strided_slice %433 {offsets = [0, 1], sizes = [4, 16], strides = [1, 1]} : vector<4x18xbf16> to vector<4x16xbf16>
    %cst_304 = arith.constant dense<0.000000e+00> : vector<8x16xf32>
    %438 = tpu.matmul %16, %437, %cst_304 {dimension_numbers = #tpu.dot_dimension_numbers<[1], [0], [0], [1], [0, 0, 1, 1], [], []>} : vector<8x4xbf16>, vector<4x16xbf16>, vector<8x16xf32> -> vector<8x16xf32>
    %439 = arith.addf %436, %438 : vector<8x16xf32>
    %440 = vector.extract_strided_slice %433 {offsets = [0, 2], sizes = [4, 16], strides = [1, 1]} : vector<4x18xbf16> to vector<4x16xbf16>
    %cst_305 = arith.constant dense<0.000000e+00> : vector<8x16xf32>
    %441 = tpu.matmul %18, %440, %cst_305 {dimension_numbers = #tpu.dot_dimension_numbers<[1], [0], [0], [1], [0, 0, 1, 1], [], []>} : vector<8x4xbf16>, vector<4x16xbf16>, vector<8x16xf32> -> vector<8x16xf32>
    %442 = arith.addf %439, %441 : vector<8x16xf32>
    %443 = vector.broadcast %0 : vector<8x1xf32> to vector<8x16xf32>
    %444 = arith.addf %442, %443 : vector<8x16xf32>
    %c0_306 = arith.constant 0 : index
    %c10_307 = arith.constant 10 : index
    %c0_308 = arith.constant 0 : index
    %c0_309 = arith.constant 0 : index
    %445 = vector.load %arg4[%c0_306, %c10_307, %c0_308, %c0_309] : memref<1x16x8x16xf32, #tpu.memory_space<vmem>>, vector<1x1x8x16xf32>
    %446 = vector.shape_cast %445 : vector<1x1x8x16xf32> to vector<8x16xf32>
    %447 = vector.shape_cast %444 : vector<8x16xf32> to vector<1x1x8x16xf32>
    tpu.vector_store %arg4[%c0_306, %c10_307, %c0_308, %c0_309], %447 {strides = array<i32>} : memref<1x16x8x16xf32, #tpu.memory_space<vmem>>, vector<1x1x8x16xf32>,
    %cst_310 = arith.constant 0.000000e+00 : f32
    %448 = vector.broadcast %cst_310 : f32 to vector<8x16xf32>
    %c0_311 = arith.constant 0 : index
    %c11_312 = arith.constant 11 : index
    %c0_313 = arith.constant 0 : index
    %c0_314 = arith.constant 0 : index
    %449 = vector.load %arg1[%c0_311, %c11_312, %c0_313, %c0_314] : memref<1x18x4x18xbf16, #tpu.memory_space<vmem>>, vector<1x1x4x18xbf16>
    %450 = vector.shape_cast %449 : vector<1x1x4x18xbf16> to vector<4x18xbf16>
    %451 = vector.extract_strided_slice %450 {offsets = [0, 0], sizes = [4, 16], strides = [1, 1]} : vector<4x18xbf16> to vector<4x16xbf16>
    %cst_315 = arith.constant dense<0.000000e+00> : vector<8x16xf32>
    %452 = tpu.matmul %2, %451, %cst_315 {dimension_numbers = #tpu.dot_dimension_numbers<[1], [0], [0], [1], [0, 0, 1, 1], [], []>} : vector<8x4xbf16>, vector<4x16xbf16>, vector<8x16xf32> -> vector<8x16xf32>
    %453 = arith.addf %448, %452 : vector<8x16xf32>
    %454 = vector.extract_strided_slice %450 {offsets = [0, 1], sizes = [4, 16], strides = [1, 1]} : vector<4x18xbf16> to vector<4x16xbf16>
    %cst_316 = arith.constant dense<0.000000e+00> : vector<8x16xf32>
    %455 = tpu.matmul %4, %454, %cst_316 {dimension_numbers = #tpu.dot_dimension_numbers<[1], [0], [0], [1], [0, 0, 1, 1], [], []>} : vector<8x4xbf16>, vector<4x16xbf16>, vector<8x16xf32> -> vector<8x16xf32>
    %456 = arith.addf %453, %455 : vector<8x16xf32>
    %457 = vector.extract_strided_slice %450 {offsets = [0, 2], sizes = [4, 16], strides = [1, 1]} : vector<4x18xbf16> to vector<4x16xbf16>
    %cst_317 = arith.constant dense<0.000000e+00> : vector<8x16xf32>
    %458 = tpu.matmul %6, %457, %cst_317 {dimension_numbers = #tpu.dot_dimension_numbers<[1], [0], [0], [1], [0, 0, 1, 1], [], []>} : vector<8x4xbf16>, vector<4x16xbf16>, vector<8x16xf32> -> vector<8x16xf32>
    %459 = arith.addf %456, %458 : vector<8x16xf32>
    %c0_318 = arith.constant 0 : index
    %c12_319 = arith.constant 12 : index
    %c0_320 = arith.constant 0 : index
    %c0_321 = arith.constant 0 : index
    %460 = vector.load %arg1[%c0_318, %c12_319, %c0_320, %c0_321] : memref<1x18x4x18xbf16, #tpu.memory_space<vmem>>, vector<1x1x4x18xbf16>
    %461 = vector.shape_cast %460 : vector<1x1x4x18xbf16> to vector<4x18xbf16>
    %462 = vector.extract_strided_slice %461 {offsets = [0, 0], sizes = [4, 16], strides = [1, 1]} : vector<4x18xbf16> to vector<4x16xbf16>
    %cst_322 = arith.constant dense<0.000000e+00> : vector<8x16xf32>
    %463 = tpu.matmul %8, %462, %cst_322 {dimension_numbers = #tpu.dot_dimension_numbers<[1], [0], [0], [1], [0, 0, 1, 1], [], []>} : vector<8x4xbf16>, vector<4x16xbf16>, vector<8x16xf32> -> vector<8x16xf32>
    %464 = arith.addf %459, %463 : vector<8x16xf32>
    %465 = vector.extract_strided_slice %461 {offsets = [0, 1], sizes = [4, 16], strides = [1, 1]} : vector<4x18xbf16> to vector<4x16xbf16>
    %cst_323 = arith.constant dense<0.000000e+00> : vector<8x16xf32>
    %466 = tpu.matmul %10, %465, %cst_323 {dimension_numbers = #tpu.dot_dimension_numbers<[1], [0], [0], [1], [0, 0, 1, 1], [], []>} : vector<8x4xbf16>, vector<4x16xbf16>, vector<8x16xf32> -> vector<8x16xf32>
    %467 = arith.addf %464, %466 : vector<8x16xf32>
    %468 = vector.extract_strided_slice %461 {offsets = [0, 2], sizes = [4, 16], strides = [1, 1]} : vector<4x18xbf16> to vector<4x16xbf16>
    %cst_324 = arith.constant dense<0.000000e+00> : vector<8x16xf32>
    %469 = tpu.matmul %12, %468, %cst_324 {dimension_numbers = #tpu.dot_dimension_numbers<[1], [0], [0], [1], [0, 0, 1, 1], [], []>} : vector<8x4xbf16>, vector<4x16xbf16>, vector<8x16xf32> -> vector<8x16xf32>
    %470 = arith.addf %467, %469 : vector<8x16xf32>
    %c0_325 = arith.constant 0 : index
    %c13 = arith.constant 13 : index
    %c0_326 = arith.constant 0 : index
    %c0_327 = arith.constant 0 : index
    %471 = vector.load %arg1[%c0_325, %c13, %c0_326, %c0_327] : memref<1x18x4x18xbf16, #tpu.memory_space<vmem>>, vector<1x1x4x18xbf16>
    %472 = vector.shape_cast %471 : vector<1x1x4x18xbf16> to vector<4x18xbf16>
    %473 = vector.extract_strided_slice %472 {offsets = [0, 0], sizes = [4, 16], strides = [1, 1]} : vector<4x18xbf16> to vector<4x16xbf16>
    %cst_328 = arith.constant dense<0.000000e+00> : vector<8x16xf32>
    %474 = tpu.matmul %14, %473, %cst_328 {dimension_numbers = #tpu.dot_dimension_numbers<[1], [0], [0], [1], [0, 0, 1, 1], [], []>} : vector<8x4xbf16>, vector<4x16xbf16>, vector<8x16xf32> -> vector<8x16xf32>
    %475 = arith.addf %470, %474 : vector<8x16xf32>
    %476 = vector.extract_strided_slice %472 {offsets = [0, 1], sizes = [4, 16], strides = [1, 1]} : vector<4x18xbf16> to vector<4x16xbf16>
    %cst_329 = arith.constant dense<0.000000e+00> : vector<8x16xf32>
    %477 = tpu.matmul %16, %476, %cst_329 {dimension_numbers = #tpu.dot_dimension_numbers<[1], [0], [0], [1], [0, 0, 1, 1], [], []>} : vector<8x4xbf16>, vector<4x16xbf16>, vector<8x16xf32> -> vector<8x16xf32>
    %478 = arith.addf %475, %477 : vector<8x16xf32>
    %479 = vector.extract_strided_slice %472 {offsets = [0, 2], sizes = [4, 16], strides = [1, 1]} : vector<4x18xbf16> to vector<4x16xbf16>
    %cst_330 = arith.constant dense<0.000000e+00> : vector<8x16xf32>
    %480 = tpu.matmul %18, %479, %cst_330 {dimension_numbers = #tpu.dot_dimension_numbers<[1], [0], [0], [1], [0, 0, 1, 1], [], []>} : vector<8x4xbf16>, vector<4x16xbf16>, vector<8x16xf32> -> vector<8x16xf32>
    %481 = arith.addf %478, %480 : vector<8x16xf32>
    %482 = vector.broadcast %0 : vector<8x1xf32> to vector<8x16xf32>
    %483 = arith.addf %481, %482 : vector<8x16xf32>
    %c0_331 = arith.constant 0 : index
    %c11_332 = arith.constant 11 : index
    %c0_333 = arith.constant 0 : index
    %c0_334 = arith.constant 0 : index
    %484 = vector.load %arg4[%c0_331, %c11_332, %c0_333, %c0_334] : memref<1x16x8x16xf32, #tpu.memory_space<vmem>>, vector<1x1x8x16xf32>
    %485 = vector.shape_cast %484 : vector<1x1x8x16xf32> to vector<8x16xf32>
    %486 = vector.shape_cast %483 : vector<8x16xf32> to vector<1x1x8x16xf32>
    tpu.vector_store %arg4[%c0_331, %c11_332, %c0_333, %c0_334], %486 {strides = array<i32>} : memref<1x16x8x16xf32, #tpu.memory_space<vmem>>, vector<1x1x8x16xf32>,
    %cst_335 = arith.constant 0.000000e+00 : f32
    %487 = vector.broadcast %cst_335 : f32 to vector<8x16xf32>
    %c0_336 = arith.constant 0 : index
    %c12_337 = arith.constant 12 : index
    %c0_338 = arith.constant 0 : index
    %c0_339 = arith.constant 0 : index
    %488 = vector.load %arg1[%c0_336, %c12_337, %c0_338, %c0_339] : memref<1x18x4x18xbf16, #tpu.memory_space<vmem>>, vector<1x1x4x18xbf16>
    %489 = vector.shape_cast %488 : vector<1x1x4x18xbf16> to vector<4x18xbf16>
    %490 = vector.extract_strided_slice %489 {offsets = [0, 0], sizes = [4, 16], strides = [1, 1]} : vector<4x18xbf16> to vector<4x16xbf16>
    %cst_340 = arith.constant dense<0.000000e+00> : vector<8x16xf32>
    %491 = tpu.matmul %2, %490, %cst_340 {dimension_numbers = #tpu.dot_dimension_numbers<[1], [0], [0], [1], [0, 0, 1, 1], [], []>} : vector<8x4xbf16>, vector<4x16xbf16>, vector<8x16xf32> -> vector<8x16xf32>
    %492 = arith.addf %487, %491 : vector<8x16xf32>
    %493 = vector.extract_strided_slice %489 {offsets = [0, 1], sizes = [4, 16], strides = [1, 1]} : vector<4x18xbf16> to vector<4x16xbf16>
    %cst_341 = arith.constant dense<0.000000e+00> : vector<8x16xf32>
    %494 = tpu.matmul %4, %493, %cst_341 {dimension_numbers = #tpu.dot_dimension_numbers<[1], [0], [0], [1], [0, 0, 1, 1], [], []>} : vector<8x4xbf16>, vector<4x16xbf16>, vector<8x16xf32> -> vector<8x16xf32>
    %495 = arith.addf %492, %494 : vector<8x16xf32>
    %496 = vector.extract_strided_slice %489 {offsets = [0, 2], sizes = [4, 16], strides = [1, 1]} : vector<4x18xbf16> to vector<4x16xbf16>
    %cst_342 = arith.constant dense<0.000000e+00> : vector<8x16xf32>
    %497 = tpu.matmul %6, %496, %cst_342 {dimension_numbers = #tpu.dot_dimension_numbers<[1], [0], [0], [1], [0, 0, 1, 1], [], []>} : vector<8x4xbf16>, vector<4x16xbf16>, vector<8x16xf32> -> vector<8x16xf32>
    %498 = arith.addf %495, %497 : vector<8x16xf32>
    %c0_343 = arith.constant 0 : index
    %c13_344 = arith.constant 13 : index
    %c0_345 = arith.constant 0 : index
    %c0_346 = arith.constant 0 : index
    %499 = vector.load %arg1[%c0_343, %c13_344, %c0_345, %c0_346] : memref<1x18x4x18xbf16, #tpu.memory_space<vmem>>, vector<1x1x4x18xbf16>
    %500 = vector.shape_cast %499 : vector<1x1x4x18xbf16> to vector<4x18xbf16>
    %501 = vector.extract_strided_slice %500 {offsets = [0, 0], sizes = [4, 16], strides = [1, 1]} : vector<4x18xbf16> to vector<4x16xbf16>
    %cst_347 = arith.constant dense<0.000000e+00> : vector<8x16xf32>
    %502 = tpu.matmul %8, %501, %cst_347 {dimension_numbers = #tpu.dot_dimension_numbers<[1], [0], [0], [1], [0, 0, 1, 1], [], []>} : vector<8x4xbf16>, vector<4x16xbf16>, vector<8x16xf32> -> vector<8x16xf32>
    %503 = arith.addf %498, %502 : vector<8x16xf32>
    %504 = vector.extract_strided_slice %500 {offsets = [0, 1], sizes = [4, 16], strides = [1, 1]} : vector<4x18xbf16> to vector<4x16xbf16>
    %cst_348 = arith.constant dense<0.000000e+00> : vector<8x16xf32>
    %505 = tpu.matmul %10, %504, %cst_348 {dimension_numbers = #tpu.dot_dimension_numbers<[1], [0], [0], [1], [0, 0, 1, 1], [], []>} : vector<8x4xbf16>, vector<4x16xbf16>, vector<8x16xf32> -> vector<8x16xf32>
    %506 = arith.addf %503, %505 : vector<8x16xf32>
    %507 = vector.extract_strided_slice %500 {offsets = [0, 2], sizes = [4, 16], strides = [1, 1]} : vector<4x18xbf16> to vector<4x16xbf16>
    %cst_349 = arith.constant dense<0.000000e+00> : vector<8x16xf32>
    %508 = tpu.matmul %12, %507, %cst_349 {dimension_numbers = #tpu.dot_dimension_numbers<[1], [0], [0], [1], [0, 0, 1, 1], [], []>} : vector<8x4xbf16>, vector<4x16xbf16>, vector<8x16xf32> -> vector<8x16xf32>
    %509 = arith.addf %506, %508 : vector<8x16xf32>
    %c0_350 = arith.constant 0 : index
    %c14 = arith.constant 14 : index
    %c0_351 = arith.constant 0 : index
    %c0_352 = arith.constant 0 : index
    %510 = vector.load %arg1[%c0_350, %c14, %c0_351, %c0_352] : memref<1x18x4x18xbf16, #tpu.memory_space<vmem>>, vector<1x1x4x18xbf16>
    %511 = vector.shape_cast %510 : vector<1x1x4x18xbf16> to vector<4x18xbf16>
    %512 = vector.extract_strided_slice %511 {offsets = [0, 0], sizes = [4, 16], strides = [1, 1]} : vector<4x18xbf16> to vector<4x16xbf16>
    %cst_353 = arith.constant dense<0.000000e+00> : vector<8x16xf32>
    %513 = tpu.matmul %14, %512, %cst_353 {dimension_numbers = #tpu.dot_dimension_numbers<[1], [0], [0], [1], [0, 0, 1, 1], [], []>} : vector<8x4xbf16>, vector<4x16xbf16>, vector<8x16xf32> -> vector<8x16xf32>
    %514 = arith.addf %509, %513 : vector<8x16xf32>
    %515 = vector.extract_strided_slice %511 {offsets = [0, 1], sizes = [4, 16], strides = [1, 1]} : vector<4x18xbf16> to vector<4x16xbf16>
    %cst_354 = arith.constant dense<0.000000e+00> : vector<8x16xf32>
    %516 = tpu.matmul %16, %515, %cst_354 {dimension_numbers = #tpu.dot_dimension_numbers<[1], [0], [0], [1], [0, 0, 1, 1], [], []>} : vector<8x4xbf16>, vector<4x16xbf16>, vector<8x16xf32> -> vector<8x16xf32>
    %517 = arith.addf %514, %516 : vector<8x16xf32>
    %518 = vector.extract_strided_slice %511 {offsets = [0, 2], sizes = [4, 16], strides = [1, 1]} : vector<4x18xbf16> to vector<4x16xbf16>
    %cst_355 = arith.constant dense<0.000000e+00> : vector<8x16xf32>
    %519 = tpu.matmul %18, %518, %cst_355 {dimension_numbers = #tpu.dot_dimension_numbers<[1], [0], [0], [1], [0, 0, 1, 1], [], []>} : vector<8x4xbf16>, vector<4x16xbf16>, vector<8x16xf32> -> vector<8x16xf32>
    %520 = arith.addf %517, %519 : vector<8x16xf32>
    %521 = vector.broadcast %0 : vector<8x1xf32> to vector<8x16xf32>
    %522 = arith.addf %520, %521 : vector<8x16xf32>
    %c0_356 = arith.constant 0 : index
    %c12_357 = arith.constant 12 : index
    %c0_358 = arith.constant 0 : index
    %c0_359 = arith.constant 0 : index
    %523 = vector.load %arg4[%c0_356, %c12_357, %c0_358, %c0_359] : memref<1x16x8x16xf32, #tpu.memory_space<vmem>>, vector<1x1x8x16xf32>
    %524 = vector.shape_cast %523 : vector<1x1x8x16xf32> to vector<8x16xf32>
    %525 = vector.shape_cast %522 : vector<8x16xf32> to vector<1x1x8x16xf32>
    tpu.vector_store %arg4[%c0_356, %c12_357, %c0_358, %c0_359], %525 {strides = array<i32>} : memref<1x16x8x16xf32, #tpu.memory_space<vmem>>, vector<1x1x8x16xf32>,
    %cst_360 = arith.constant 0.000000e+00 : f32
    %526 = vector.broadcast %cst_360 : f32 to vector<8x16xf32>
    %c0_361 = arith.constant 0 : index
    %c13_362 = arith.constant 13 : index
    %c0_363 = arith.constant 0 : index
    %c0_364 = arith.constant 0 : index
    %527 = vector.load %arg1[%c0_361, %c13_362, %c0_363, %c0_364] : memref<1x18x4x18xbf16, #tpu.memory_space<vmem>>, vector<1x1x4x18xbf16>
    %528 = vector.shape_cast %527 : vector<1x1x4x18xbf16> to vector<4x18xbf16>
    %529 = vector.extract_strided_slice %528 {offsets = [0, 0], sizes = [4, 16], strides = [1, 1]} : vector<4x18xbf16> to vector<4x16xbf16>
    %cst_365 = arith.constant dense<0.000000e+00> : vector<8x16xf32>
    %530 = tpu.matmul %2, %529, %cst_365 {dimension_numbers = #tpu.dot_dimension_numbers<[1], [0], [0], [1], [0, 0, 1, 1], [], []>} : vector<8x4xbf16>, vector<4x16xbf16>, vector<8x16xf32> -> vector<8x16xf32>
    %531 = arith.addf %526, %530 : vector<8x16xf32>
    %532 = vector.extract_strided_slice %528 {offsets = [0, 1], sizes = [4, 16], strides = [1, 1]} : vector<4x18xbf16> to vector<4x16xbf16>
    %cst_366 = arith.constant dense<0.000000e+00> : vector<8x16xf32>
    %533 = tpu.matmul %4, %532, %cst_366 {dimension_numbers = #tpu.dot_dimension_numbers<[1], [0], [0], [1], [0, 0, 1, 1], [], []>} : vector<8x4xbf16>, vector<4x16xbf16>, vector<8x16xf32> -> vector<8x16xf32>
    %534 = arith.addf %531, %533 : vector<8x16xf32>
    %535 = vector.extract_strided_slice %528 {offsets = [0, 2], sizes = [4, 16], strides = [1, 1]} : vector<4x18xbf16> to vector<4x16xbf16>
    %cst_367 = arith.constant dense<0.000000e+00> : vector<8x16xf32>
    %536 = tpu.matmul %6, %535, %cst_367 {dimension_numbers = #tpu.dot_dimension_numbers<[1], [0], [0], [1], [0, 0, 1, 1], [], []>} : vector<8x4xbf16>, vector<4x16xbf16>, vector<8x16xf32> -> vector<8x16xf32>
    %537 = arith.addf %534, %536 : vector<8x16xf32>
    %c0_368 = arith.constant 0 : index
    %c14_369 = arith.constant 14 : index
    %c0_370 = arith.constant 0 : index
    %c0_371 = arith.constant 0 : index
    %538 = vector.load %arg1[%c0_368, %c14_369, %c0_370, %c0_371] : memref<1x18x4x18xbf16, #tpu.memory_space<vmem>>, vector<1x1x4x18xbf16>
    %539 = vector.shape_cast %538 : vector<1x1x4x18xbf16> to vector<4x18xbf16>
    %540 = vector.extract_strided_slice %539 {offsets = [0, 0], sizes = [4, 16], strides = [1, 1]} : vector<4x18xbf16> to vector<4x16xbf16>
    %cst_372 = arith.constant dense<0.000000e+00> : vector<8x16xf32>
    %541 = tpu.matmul %8, %540, %cst_372 {dimension_numbers = #tpu.dot_dimension_numbers<[1], [0], [0], [1], [0, 0, 1, 1], [], []>} : vector<8x4xbf16>, vector<4x16xbf16>, vector<8x16xf32> -> vector<8x16xf32>
    %542 = arith.addf %537, %541 : vector<8x16xf32>
    %543 = vector.extract_strided_slice %539 {offsets = [0, 1], sizes = [4, 16], strides = [1, 1]} : vector<4x18xbf16> to vector<4x16xbf16>
    %cst_373 = arith.constant dense<0.000000e+00> : vector<8x16xf32>
    %544 = tpu.matmul %10, %543, %cst_373 {dimension_numbers = #tpu.dot_dimension_numbers<[1], [0], [0], [1], [0, 0, 1, 1], [], []>} : vector<8x4xbf16>, vector<4x16xbf16>, vector<8x16xf32> -> vector<8x16xf32>
    %545 = arith.addf %542, %544 : vector<8x16xf32>
    %546 = vector.extract_strided_slice %539 {offsets = [0, 2], sizes = [4, 16], strides = [1, 1]} : vector<4x18xbf16> to vector<4x16xbf16>
    %cst_374 = arith.constant dense<0.000000e+00> : vector<8x16xf32>
    %547 = tpu.matmul %12, %546, %cst_374 {dimension_numbers = #tpu.dot_dimension_numbers<[1], [0], [0], [1], [0, 0, 1, 1], [], []>} : vector<8x4xbf16>, vector<4x16xbf16>, vector<8x16xf32> -> vector<8x16xf32>
    %548 = arith.addf %545, %547 : vector<8x16xf32>
    %c0_375 = arith.constant 0 : index
    %c15 = arith.constant 15 : index
    %c0_376 = arith.constant 0 : index
    %c0_377 = arith.constant 0 : index
    %549 = vector.load %arg1[%c0_375, %c15, %c0_376, %c0_377] : memref<1x18x4x18xbf16, #tpu.memory_space<vmem>>, vector<1x1x4x18xbf16>
    %550 = vector.shape_cast %549 : vector<1x1x4x18xbf16> to vector<4x18xbf16>
    %551 = vector.extract_strided_slice %550 {offsets = [0, 0], sizes = [4, 16], strides = [1, 1]} : vector<4x18xbf16> to vector<4x16xbf16>
    %cst_378 = arith.constant dense<0.000000e+00> : vector<8x16xf32>
    %552 = tpu.matmul %14, %551, %cst_378 {dimension_numbers = #tpu.dot_dimension_numbers<[1], [0], [0], [1], [0, 0, 1, 1], [], []>} : vector<8x4xbf16>, vector<4x16xbf16>, vector<8x16xf32> -> vector<8x16xf32>
    %553 = arith.addf %548, %552 : vector<8x16xf32>
    %554 = vector.extract_strided_slice %550 {offsets = [0, 1], sizes = [4, 16], strides = [1, 1]} : vector<4x18xbf16> to vector<4x16xbf16>
    %cst_379 = arith.constant dense<0.000000e+00> : vector<8x16xf32>
    %555 = tpu.matmul %16, %554, %cst_379 {dimension_numbers = #tpu.dot_dimension_numbers<[1], [0], [0], [1], [0, 0, 1, 1], [], []>} : vector<8x4xbf16>, vector<4x16xbf16>, vector<8x16xf32> -> vector<8x16xf32>
    %556 = arith.addf %553, %555 : vector<8x16xf32>
    %557 = vector.extract_strided_slice %550 {offsets = [0, 2], sizes = [4, 16], strides = [1, 1]} : vector<4x18xbf16> to vector<4x16xbf16>
    %cst_380 = arith.constant dense<0.000000e+00> : vector<8x16xf32>
    %558 = tpu.matmul %18, %557, %cst_380 {dimension_numbers = #tpu.dot_dimension_numbers<[1], [0], [0], [1], [0, 0, 1, 1], [], []>} : vector<8x4xbf16>, vector<4x16xbf16>, vector<8x16xf32> -> vector<8x16xf32>
    %559 = arith.addf %556, %558 : vector<8x16xf32>
    %560 = vector.broadcast %0 : vector<8x1xf32> to vector<8x16xf32>
    %561 = arith.addf %559, %560 : vector<8x16xf32>
    %c0_381 = arith.constant 0 : index
    %c13_382 = arith.constant 13 : index
    %c0_383 = arith.constant 0 : index
    %c0_384 = arith.constant 0 : index
    %562 = vector.load %arg4[%c0_381, %c13_382, %c0_383, %c0_384] : memref<1x16x8x16xf32, #tpu.memory_space<vmem>>, vector<1x1x8x16xf32>
    %563 = vector.shape_cast %562 : vector<1x1x8x16xf32> to vector<8x16xf32>
    %564 = vector.shape_cast %561 : vector<8x16xf32> to vector<1x1x8x16xf32>
    tpu.vector_store %arg4[%c0_381, %c13_382, %c0_383, %c0_384], %564 {strides = array<i32>} : memref<1x16x8x16xf32, #tpu.memory_space<vmem>>, vector<1x1x8x16xf32>,
    %cst_385 = arith.constant 0.000000e+00 : f32
    %565 = vector.broadcast %cst_385 : f32 to vector<8x16xf32>
    %c0_386 = arith.constant 0 : index
    %c14_387 = arith.constant 14 : index
    %c0_388 = arith.constant 0 : index
    %c0_389 = arith.constant 0 : index
    %566 = vector.load %arg1[%c0_386, %c14_387, %c0_388, %c0_389] : memref<1x18x4x18xbf16, #tpu.memory_space<vmem>>, vector<1x1x4x18xbf16>
    %567 = vector.shape_cast %566 : vector<1x1x4x18xbf16> to vector<4x18xbf16>
    %568 = vector.extract_strided_slice %567 {offsets = [0, 0], sizes = [4, 16], strides = [1, 1]} : vector<4x18xbf16> to vector<4x16xbf16>
    %cst_390 = arith.constant dense<0.000000e+00> : vector<8x16xf32>
    %569 = tpu.matmul %2, %568, %cst_390 {dimension_numbers = #tpu.dot_dimension_numbers<[1], [0], [0], [1], [0, 0, 1, 1], [], []>} : vector<8x4xbf16>, vector<4x16xbf16>, vector<8x16xf32> -> vector<8x16xf32>
    %570 = arith.addf %565, %569 : vector<8x16xf32>
    %571 = vector.extract_strided_slice %567 {offsets = [0, 1], sizes = [4, 16], strides = [1, 1]} : vector<4x18xbf16> to vector<4x16xbf16>
    %cst_391 = arith.constant dense<0.000000e+00> : vector<8x16xf32>
    %572 = tpu.matmul %4, %571, %cst_391 {dimension_numbers = #tpu.dot_dimension_numbers<[1], [0], [0], [1], [0, 0, 1, 1], [], []>} : vector<8x4xbf16>, vector<4x16xbf16>, vector<8x16xf32> -> vector<8x16xf32>
    %573 = arith.addf %570, %572 : vector<8x16xf32>
    %574 = vector.extract_strided_slice %567 {offsets = [0, 2], sizes = [4, 16], strides = [1, 1]} : vector<4x18xbf16> to vector<4x16xbf16>
    %cst_392 = arith.constant dense<0.000000e+00> : vector<8x16xf32>
    %575 = tpu.matmul %6, %574, %cst_392 {dimension_numbers = #tpu.dot_dimension_numbers<[1], [0], [0], [1], [0, 0, 1, 1], [], []>} : vector<8x4xbf16>, vector<4x16xbf16>, vector<8x16xf32> -> vector<8x16xf32>
    %576 = arith.addf %573, %575 : vector<8x16xf32>
    %c0_393 = arith.constant 0 : index
    %c15_394 = arith.constant 15 : index
    %c0_395 = arith.constant 0 : index
    %c0_396 = arith.constant 0 : index
    %577 = vector.load %arg1[%c0_393, %c15_394, %c0_395, %c0_396] : memref<1x18x4x18xbf16, #tpu.memory_space<vmem>>, vector<1x1x4x18xbf16>
    %578 = vector.shape_cast %577 : vector<1x1x4x18xbf16> to vector<4x18xbf16>
    %579 = vector.extract_strided_slice %578 {offsets = [0, 0], sizes = [4, 16], strides = [1, 1]} : vector<4x18xbf16> to vector<4x16xbf16>
    %cst_397 = arith.constant dense<0.000000e+00> : vector<8x16xf32>
    %580 = tpu.matmul %8, %579, %cst_397 {dimension_numbers = #tpu.dot_dimension_numbers<[1], [0], [0], [1], [0, 0, 1, 1], [], []>} : vector<8x4xbf16>, vector<4x16xbf16>, vector<8x16xf32> -> vector<8x16xf32>
    %581 = arith.addf %576, %580 : vector<8x16xf32>
    %582 = vector.extract_strided_slice %578 {offsets = [0, 1], sizes = [4, 16], strides = [1, 1]} : vector<4x18xbf16> to vector<4x16xbf16>
    %cst_398 = arith.constant dense<0.000000e+00> : vector<8x16xf32>
    %583 = tpu.matmul %10, %582, %cst_398 {dimension_numbers = #tpu.dot_dimension_numbers<[1], [0], [0], [1], [0, 0, 1, 1], [], []>} : vector<8x4xbf16>, vector<4x16xbf16>, vector<8x16xf32> -> vector<8x16xf32>
    %584 = arith.addf %581, %583 : vector<8x16xf32>
    %585 = vector.extract_strided_slice %578 {offsets = [0, 2], sizes = [4, 16], strides = [1, 1]} : vector<4x18xbf16> to vector<4x16xbf16>
    %cst_399 = arith.constant dense<0.000000e+00> : vector<8x16xf32>
    %586 = tpu.matmul %12, %585, %cst_399 {dimension_numbers = #tpu.dot_dimension_numbers<[1], [0], [0], [1], [0, 0, 1, 1], [], []>} : vector<8x4xbf16>, vector<4x16xbf16>, vector<8x16xf32> -> vector<8x16xf32>
    %587 = arith.addf %584, %586 : vector<8x16xf32>
    %c0_400 = arith.constant 0 : index
    %c16 = arith.constant 16 : index
    %c0_401 = arith.constant 0 : index
    %c0_402 = arith.constant 0 : index
    %588 = vector.load %arg1[%c0_400, %c16, %c0_401, %c0_402] : memref<1x18x4x18xbf16, #tpu.memory_space<vmem>>, vector<1x1x4x18xbf16>
    %589 = vector.shape_cast %588 : vector<1x1x4x18xbf16> to vector<4x18xbf16>
    %590 = vector.extract_strided_slice %589 {offsets = [0, 0], sizes = [4, 16], strides = [1, 1]} : vector<4x18xbf16> to vector<4x16xbf16>
    %cst_403 = arith.constant dense<0.000000e+00> : vector<8x16xf32>
    %591 = tpu.matmul %14, %590, %cst_403 {dimension_numbers = #tpu.dot_dimension_numbers<[1], [0], [0], [1], [0, 0, 1, 1], [], []>} : vector<8x4xbf16>, vector<4x16xbf16>, vector<8x16xf32> -> vector<8x16xf32>
    %592 = arith.addf %587, %591 : vector<8x16xf32>
    %593 = vector.extract_strided_slice %589 {offsets = [0, 1], sizes = [4, 16], strides = [1, 1]} : vector<4x18xbf16> to vector<4x16xbf16>
    %cst_404 = arith.constant dense<0.000000e+00> : vector<8x16xf32>
    %594 = tpu.matmul %16, %593, %cst_404 {dimension_numbers = #tpu.dot_dimension_numbers<[1], [0], [0], [1], [0, 0, 1, 1], [], []>} : vector<8x4xbf16>, vector<4x16xbf16>, vector<8x16xf32> -> vector<8x16xf32>
    %595 = arith.addf %592, %594 : vector<8x16xf32>
    %596 = vector.extract_strided_slice %589 {offsets = [0, 2], sizes = [4, 16], strides = [1, 1]} : vector<4x18xbf16> to vector<4x16xbf16>
    %cst_405 = arith.constant dense<0.000000e+00> : vector<8x16xf32>
    %597 = tpu.matmul %18, %596, %cst_405 {dimension_numbers = #tpu.dot_dimension_numbers<[1], [0], [0], [1], [0, 0, 1, 1], [], []>} : vector<8x4xbf16>, vector<4x16xbf16>, vector<8x16xf32> -> vector<8x16xf32>
    %598 = arith.addf %595, %597 : vector<8x16xf32>
    %599 = vector.broadcast %0 : vector<8x1xf32> to vector<8x16xf32>
    %600 = arith.addf %598, %599 : vector<8x16xf32>
    %c0_406 = arith.constant 0 : index
    %c14_407 = arith.constant 14 : index
    %c0_408 = arith.constant 0 : index
    %c0_409 = arith.constant 0 : index
    %601 = vector.load %arg4[%c0_406, %c14_407, %c0_408, %c0_409] : memref<1x16x8x16xf32, #tpu.memory_space<vmem>>, vector<1x1x8x16xf32>
    %602 = vector.shape_cast %601 : vector<1x1x8x16xf32> to vector<8x16xf32>
    %603 = vector.shape_cast %600 : vector<8x16xf32> to vector<1x1x8x16xf32>
    tpu.vector_store %arg4[%c0_406, %c14_407, %c0_408, %c0_409], %603 {strides = array<i32>} : memref<1x16x8x16xf32, #tpu.memory_space<vmem>>, vector<1x1x8x16xf32>,
    %cst_410 = arith.constant 0.000000e+00 : f32
    %604 = vector.broadcast %cst_410 : f32 to vector<8x16xf32>
    %c0_411 = arith.constant 0 : index
    %c15_412 = arith.constant 15 : index
    %c0_413 = arith.constant 0 : index
    %c0_414 = arith.constant 0 : index
    %605 = vector.load %arg1[%c0_411, %c15_412, %c0_413, %c0_414] : memref<1x18x4x18xbf16, #tpu.memory_space<vmem>>, vector<1x1x4x18xbf16>
    %606 = vector.shape_cast %605 : vector<1x1x4x18xbf16> to vector<4x18xbf16>
    %607 = vector.extract_strided_slice %606 {offsets = [0, 0], sizes = [4, 16], strides = [1, 1]} : vector<4x18xbf16> to vector<4x16xbf16>
    %cst_415 = arith.constant dense<0.000000e+00> : vector<8x16xf32>
    %608 = tpu.matmul %2, %607, %cst_415 {dimension_numbers = #tpu.dot_dimension_numbers<[1], [0], [0], [1], [0, 0, 1, 1], [], []>} : vector<8x4xbf16>, vector<4x16xbf16>, vector<8x16xf32> -> vector<8x16xf32>
    %609 = arith.addf %604, %608 : vector<8x16xf32>
    %610 = vector.extract_strided_slice %606 {offsets = [0, 1], sizes = [4, 16], strides = [1, 1]} : vector<4x18xbf16> to vector<4x16xbf16>
    %cst_416 = arith.constant dense<0.000000e+00> : vector<8x16xf32>
    %611 = tpu.matmul %4, %610, %cst_416 {dimension_numbers = #tpu.dot_dimension_numbers<[1], [0], [0], [1], [0, 0, 1, 1], [], []>} : vector<8x4xbf16>, vector<4x16xbf16>, vector<8x16xf32> -> vector<8x16xf32>
    %612 = arith.addf %609, %611 : vector<8x16xf32>
    %613 = vector.extract_strided_slice %606 {offsets = [0, 2], sizes = [4, 16], strides = [1, 1]} : vector<4x18xbf16> to vector<4x16xbf16>
    %cst_417 = arith.constant dense<0.000000e+00> : vector<8x16xf32>
    %614 = tpu.matmul %6, %613, %cst_417 {dimension_numbers = #tpu.dot_dimension_numbers<[1], [0], [0], [1], [0, 0, 1, 1], [], []>} : vector<8x4xbf16>, vector<4x16xbf16>, vector<8x16xf32> -> vector<8x16xf32>
    %615 = arith.addf %612, %614 : vector<8x16xf32>
    %c0_418 = arith.constant 0 : index
    %c16_419 = arith.constant 16 : index
    %c0_420 = arith.constant 0 : index
    %c0_421 = arith.constant 0 : index
    %616 = vector.load %arg1[%c0_418, %c16_419, %c0_420, %c0_421] : memref<1x18x4x18xbf16, #tpu.memory_space<vmem>>, vector<1x1x4x18xbf16>
    %617 = vector.shape_cast %616 : vector<1x1x4x18xbf16> to vector<4x18xbf16>
    %618 = vector.extract_strided_slice %617 {offsets = [0, 0], sizes = [4, 16], strides = [1, 1]} : vector<4x18xbf16> to vector<4x16xbf16>
    %cst_422 = arith.constant dense<0.000000e+00> : vector<8x16xf32>
    %619 = tpu.matmul %8, %618, %cst_422 {dimension_numbers = #tpu.dot_dimension_numbers<[1], [0], [0], [1], [0, 0, 1, 1], [], []>} : vector<8x4xbf16>, vector<4x16xbf16>, vector<8x16xf32> -> vector<8x16xf32>
    %620 = arith.addf %615, %619 : vector<8x16xf32>
    %621 = vector.extract_strided_slice %617 {offsets = [0, 1], sizes = [4, 16], strides = [1, 1]} : vector<4x18xbf16> to vector<4x16xbf16>
    %cst_423 = arith.constant dense<0.000000e+00> : vector<8x16xf32>
    %622 = tpu.matmul %10, %621, %cst_423 {dimension_numbers = #tpu.dot_dimension_numbers<[1], [0], [0], [1], [0, 0, 1, 1], [], []>} : vector<8x4xbf16>, vector<4x16xbf16>, vector<8x16xf32> -> vector<8x16xf32>
    %623 = arith.addf %620, %622 : vector<8x16xf32>
    %624 = vector.extract_strided_slice %617 {offsets = [0, 2], sizes = [4, 16], strides = [1, 1]} : vector<4x18xbf16> to vector<4x16xbf16>
    %cst_424 = arith.constant dense<0.000000e+00> : vector<8x16xf32>
    %625 = tpu.matmul %12, %624, %cst_424 {dimension_numbers = #tpu.dot_dimension_numbers<[1], [0], [0], [1], [0, 0, 1, 1], [], []>} : vector<8x4xbf16>, vector<4x16xbf16>, vector<8x16xf32> -> vector<8x16xf32>
    %626 = arith.addf %623, %625 : vector<8x16xf32>
    %c0_425 = arith.constant 0 : index
    %c17 = arith.constant 17 : index
    %c0_426 = arith.constant 0 : index
    %c0_427 = arith.constant 0 : index
    %627 = vector.load %arg1[%c0_425, %c17, %c0_426, %c0_427] : memref<1x18x4x18xbf16, #tpu.memory_space<vmem>>, vector<1x1x4x18xbf16>
    %628 = vector.shape_cast %627 : vector<1x1x4x18xbf16> to vector<4x18xbf16>
    %629 = vector.extract_strided_slice %628 {offsets = [0, 0], sizes = [4, 16], strides = [1, 1]} : vector<4x18xbf16> to vector<4x16xbf16>
    %cst_428 = arith.constant dense<0.000000e+00> : vector<8x16xf32>
    %630 = tpu.matmul %14, %629, %cst_428 {dimension_numbers = #tpu.dot_dimension_numbers<[1], [0], [0], [1], [0, 0, 1, 1], [], []>} : vector<8x4xbf16>, vector<4x16xbf16>, vector<8x16xf32> -> vector<8x16xf32>
    %631 = arith.addf %626, %630 : vector<8x16xf32>
    %632 = vector.extract_strided_slice %628 {offsets = [0, 1], sizes = [4, 16], strides = [1, 1]} : vector<4x18xbf16> to vector<4x16xbf16>
    %cst_429 = arith.constant dense<0.000000e+00> : vector<8x16xf32>
    %633 = tpu.matmul %16, %632, %cst_429 {dimension_numbers = #tpu.dot_dimension_numbers<[1], [0], [0], [1], [0, 0, 1, 1], [], []>} : vector<8x4xbf16>, vector<4x16xbf16>, vector<8x16xf32> -> vector<8x16xf32>
    %634 = arith.addf %631, %633 : vector<8x16xf32>
    %635 = vector.extract_strided_slice %628 {offsets = [0, 2], sizes = [4, 16], strides = [1, 1]} : vector<4x18xbf16> to vector<4x16xbf16>
    %cst_430 = arith.constant dense<0.000000e+00> : vector<8x16xf32>
    %636 = tpu.matmul %18, %635, %cst_430 {dimension_numbers = #tpu.dot_dimension_numbers<[1], [0], [0], [1], [0, 0, 1, 1], [], []>} : vector<8x4xbf16>, vector<4x16xbf16>, vector<8x16xf32> -> vector<8x16xf32>
    %637 = arith.addf %634, %636 : vector<8x16xf32>
    %638 = vector.broadcast %0 : vector<8x1xf32> to vector<8x16xf32>
    %639 = arith.addf %637, %638 : vector<8x16xf32>
    %c0_431 = arith.constant 0 : index
    %c15_432 = arith.constant 15 : index
    %c0_433 = arith.constant 0 : index
    %c0_434 = arith.constant 0 : index
    %640 = vector.load %arg4[%c0_431, %c15_432, %c0_433, %c0_434] : memref<1x16x8x16xf32, #tpu.memory_space<vmem>>, vector<1x1x8x16xf32>
    %641 = vector.shape_cast %640 : vector<1x1x8x16xf32> to vector<8x16xf32>
    %642 = vector.shape_cast %639 : vector<8x16xf32> to vector<1x1x8x16xf32>
    tpu.vector_store %arg4[%c0_431, %c15_432, %c0_433, %c0_434], %642 {strides = array<i32>} : memref<1x16x8x16xf32, #tpu.memory_space<vmem>>, vector<1x1x8x16xf32>,
    return
  }
  func.func @transform_0(%arg0: i32) -> (i32, i32, i32, i32) {
    %c0_i32 = arith.constant 0 : i32
    %c0_i32_0 = arith.constant 0 : i32
    %c0_i32_1 = arith.constant 0 : i32
    %c0_i32_2 = arith.constant 0 : i32
    return %arg0, %c0_i32, %c0_i32_0, %c0_i32_1 : i32, i32, i32, i32
  }
  func.func @transform_1(%arg0: i32) -> (i32, i32, i32, i32) {
    %c0_i32 = arith.constant 0 : i32
    %c0_i32_0 = arith.constant 0 : i32
    %c0_i32_1 = arith.constant 0 : i32
    %c0_i32_2 = arith.constant 0 : i32
    %c0_i32_3 = arith.constant 0 : i32
    return %c0_i32, %c0_i32_0, %c0_i32_1, %c0_i32_2 : i32, i32, i32, i32
  }
  func.func @transform_2(%arg0: i32) -> (i32, i32) {
    %c0_i32 = arith.constant 0 : i32
    %c0_i32_0 = arith.constant 0 : i32
    %c0_i32_1 = arith.constant 0 : i32
    return %c0_i32, %c0_i32_0 : i32, i32
  }
  func.func @transform_3(%arg0: i32) -> (i32, i32, i32, i32) {
    %c0_i32 = arith.constant 0 : i32
    %c0_i32_0 = arith.constant 0 : i32
    %c0_i32_1 = arith.constant 0 : i32
    %c0_i32_2 = arith.constant 0 : i32
    return %arg0, %c0_i32, %c0_i32_0, %c0_i32_1 : i32, i32, i32, i32
  }
}

</mosaic_0001>

<bundles_post_ra>
// kernel: squeeze.2
= control target key start
LH: loop header
LB: loop body
LE: loop exit
PB: predicated region body
PF: predicated region fallthrough
CT: control target
= control target key end

     0   :  { %s185_s8 = smov 96   ;;  %s186_s9 = smov 112   ;;  %vm3_vm0 = vcmask 130048   ;;  %s358_s0 = inlined_call_operand.vmem [shape: f32[1,8,256], index: 0, kind: input, shape index: {}]   ;;  %s359_s1 = inlined_call_operand.vmem [shape: f32[2,4,16,16], index: 1, kind: output, shape index: {}]  }
   0x1   :  { %v36_v0 = vld.sshfl [vmem:[%s358_s0] sm:$0xff pattern:$0xb3a29180]   ;;  %v150_v1 = vld.sshfl [vmem:[%s358_s0 + $0x4] sm:$0xff pattern:$0xb3a29180]  }
   0x2   :  { %37 = vrot.lane.b32.xlu1 %v36_v0, %s185_s8  ;;  %20 = vrot.lane.b32.xlu0 %v36_v0, %s186_s9  ;;  %s187_s12 = smov 80   ;;  %v2_v2 = vld [vmem:[%s358_s0] sm:$0xff]   ;;  %v138_v3 = vld [vmem:[%s358_s0 + $0x8] sm:$0xff]   ;;  %s188_s3 = smov 64  }
   0x3   :  { %4 = vst.msk [vmem:[%s359_s1] ss:$16 sm:$0x3] %vm3_vm0, %v2_v2   ;;  %5 = vst.msk [vmem:[%s359_s1] ss:$16 sm:$0xc] %vm3_vm0, %v2_v2  }
   0x4   :  { %6 = vst.msk [vmem:[%s359_s1] ss:$16 sm:$0x30] %vm3_vm0, %v2_v2   ;;  %7 = vst.msk [vmem:[%s359_s1] ss:$16 sm:$0xc0] %vm3_vm0, %v2_v2  }
   0x5   :  { %139 = vst.msk [vmem:[%s359_s1 + $0x8] ss:$16 sm:$0x3] %vm3_vm0, %v138_v3   ;;  %140 = vst.msk [vmem:[%s359_s1 + $0x8] ss:$16 sm:$0xc] %vm3_vm0, %v138_v3  }
   0x6   :  { %46 = vrot.lane.b32.xlu1 %v150_v1, %s185_s8  ;;  %29 = vrot.lane.b32.xlu0 %v150_v1, %s186_s9  ;;  %141 = vst.msk [vmem:[%s359_s1 + $0x8] ss:$16 sm:$0x30] %vm3_vm0, %v138_v3   ;;  %142 = vst.msk [vmem:[%s359_s1 + $0x8] ss:$16 sm:$0xc0] %vm3_vm0, %v138_v3  }
   0x7   :  { %s189_s4 = smov 48   ;;  %s190_s5 = smov 32  }
   0x8   :  { %s191_s6 = smov 16  }
   0xa   :  { %63 = vrot.lane.b32.xlu1 %v150_v1, %s187_s12  ;;  %54 = vrot.lane.b32.xlu0 %v36_v0, %s187_s12 }
   0xe   :  { %80 = vrot.lane.b32.xlu1 %v150_v1, %s188_s3  ;;  %71 = vrot.lane.b32.xlu0 %v36_v0, %s188_s3 }
  0x12   :  { %97 = vrot.lane.b32.xlu1 %v150_v1, %s189_s4  ;;  %88 = vrot.lane.b32.xlu0 %v36_v0, %s189_s4 }
  0x16   :  { %114 = vrot.lane.b32.xlu1 %v150_v1, %s190_s5  ;;  %105 = vrot.lane.b32.xlu0 %v36_v0, %s190_s5 }
  0x1a   :  { %131 = vrot.lane.b32.xlu1 %v150_v1, %s191_s6  ;;  %122 = vrot.lane.b32.xlu0 %v36_v0, %s191_s6 }
  0x74   :  { %v38_v4 = vpop.permute.xlu1 %37   ;;  %v21_v5 = vpop.permute.xlu0 %20  }
  0x75   :  { %148 = vst.msk [vmem:[%s359_s1 + $0x2] ss:$8 sm:$0xf] %vm3_vm0, %v38_v4   ;;  %149 = vst.msk [vmem:[%s359_s1 + $0x2] ss:$8 sm:$0xf0] %vm3_vm0, %v38_v4  }
  0x76   :  { %143 = vst.msk [vmem:[%s359_s1 + $0x1] ss:$8 sm:$0xf] %vm3_vm0, %v21_v5   ;;  %144 = vst.msk [vmem:[%s359_s1 + $0x1] ss:$8 sm:$0xf0] %vm3_vm0, %v21_v5  }
  0x78   :  { %v47_v6 = vpop.permute.xlu1 %46   ;;  %v30_v7 = vpop.permute.xlu0 %29  }
  0x79   :  { %151 = vst.msk [vmem:[%s359_s1 + $0x42] ss:$8 sm:$0xf] %vm3_vm0, %v47_v6   ;;  %152 = vst.msk [vmem:[%s359_s1 + $0x42] ss:$8 sm:$0xf0] %vm3_vm0, %v47_v6  }
  0x7a   :  { %146 = vst.msk [vmem:[%s359_s1 + $0x41] ss:$8 sm:$0xf] %vm3_vm0, %v30_v7   ;;  %147 = vst.msk [vmem:[%s359_s1 + $0x41] ss:$8 sm:$0xf0] %vm3_vm0, %v30_v7  }
  0x7c   :  { %v64_v8 = vpop.permute.xlu1 %63   ;;  %v55_v9 = vpop.permute.xlu0 %54  }
  0x7d   :  { %156 = vst.msk [vmem:[%s359_s1 + $0x43] ss:$8 sm:$0xf] %vm3_vm0, %v64_v8   ;;  %157 = vst.msk [vmem:[%s359_s1 + $0x43] ss:$8 sm:$0xf0] %vm3_vm0, %v64_v8  }
  0x7e   :  { %153 = vst.msk [vmem:[%s359_s1 + $0x3] ss:$8 sm:$0xf] %vm3_vm0, %v55_v9   ;;  %154 = vst.msk [vmem:[%s359_s1 + $0x3] ss:$8 sm:$0xf0] %vm3_vm0, %v55_v9  }
  0x80   :  { %v81_v10 = vpop.permute.xlu1 %80   ;;  %v72_v11 = vpop.permute.xlu0 %71  }
  0x81   :  { %161 = vst.msk [vmem:[%s359_s1 + $0x44] ss:$8 sm:$0xf] %vm3_vm0, %v81_v10   ;;  %162 = vst.msk [vmem:[%s359_s1 + $0x44] ss:$8 sm:$0xf0] %vm3_vm0, %v81_v10  }
  0x82   :  { %158 = vst.msk [vmem:[%s359_s1 + $0x4] ss:$8 sm:$0xf] %vm3_vm0, %v72_v11   ;;  %159 = vst.msk [vmem:[%s359_s1 + $0x4] ss:$8 sm:$0xf0] %vm3_vm0, %v72_v11  }
  0x84   :  { %v98_v12 = vpop.permute.xlu1 %97   ;;  %v89_v13 = vpop.permute.xlu0 %88  }
  0x85   :  { %166 = vst.msk [vmem:[%s359_s1 + $0x45] ss:$8 sm:$0xf] %vm3_vm0, %v98_v12   ;;  %167 = vst.msk [vmem:[%s359_s1 + $0x45] ss:$8 sm:$0xf0] %vm3_vm0, %v98_v12  }
  0x86   :  { %163 = vst.msk [vmem:[%s359_s1 + $0x5] ss:$8 sm:$0xf] %vm3_vm0, %v89_v13   ;;  %164 = vst.msk [vmem:[%s359_s1 + $0x5] ss:$8 sm:$0xf0] %vm3_vm0, %v89_v13  }
  0x88   :  { %v115_v14 = vpop.permute.xlu1 %114   ;;  %v106_v15 = vpop.permute.xlu0 %105  }
  0x89   :  { %171 = vst.msk [vmem:[%s359_s1 + $0x46] ss:$8 sm:$0xf] %vm3_vm0, %v115_v14   ;;  %172 = vst.msk [vmem:[%s359_s1 + $0x46] ss:$8 sm:$0xf0] %vm3_vm0, %v115_v14  }
  0x8a   :  { %168 = vst.msk [vmem:[%s359_s1 + $0x6] ss:$8 sm:$0xf] %vm3_vm0, %v106_v15   ;;  %169 = vst.msk [vmem:[%s359_s1 + $0x6] ss:$8 sm:$0xf0] %vm3_vm0, %v106_v15  }
  0x8c   :  { %v132_v16 = vpop.permute.xlu1 %131   ;;  %v123_v17 = vpop.permute.xlu0 %122  }
  0x8d   :  { %176 = vst.msk [vmem:[%s359_s1 + $0x47] ss:$8 sm:$0xf] %vm3_vm0, %v132_v16   ;;  %177 = vst.msk [vmem:[%s359_s1 + $0x47] ss:$8 sm:$0xf0] %vm3_vm0, %v132_v16  }
  0x8e   :  { %173 = vst.msk [vmem:[%s359_s1 + $0x7] ss:$8 sm:$0xf] %vm3_vm0, %v123_v17   ;;  %174 = vst.msk [vmem:[%s359_s1 + $0x7] ss:$8 sm:$0xf0] %vm3_vm0, %v123_v17  }

// kernel: hybrid_layer.3
= control target key start
LH: loop header
LB: loop body
LE: loop exit
PB: predicated region body
PF: predicated region fallthrough
CT: control target
= control target key end

     0   :  { %7 = vsyncpa [#allocation3], 0  ;;  %s248_s0 = inlined_call_operand.hbm [shape: f32[2,8,256], index: 0, kind: input, shape index: {}]   ;;  %s249_s1 = inlined_call_operand.hbm [shape: f32[2,1,256], index: 1, kind: input, shape index: {}]   ;;  %s250_s2 = inlined_call_operand.hbm [shape: f32[2,8,256], index: 2, kind: output, shape index: {}]  }
   0x1   :  { %8 = vsyncpa [#allocation6], 0 }
   0x2   :  { %9 = vsyncpa [#allocation4], 0  ;;  %s184_s9 = smov [#allocation2]   ;;  %s112_s13 = scalar_lea.hbm %s248_s0, 512 }
   0x3   :  { %s15_s10 = sshll.u32 %s184_s9, 4  ;;  %p113_p0 = scmp.ne.s32.totalorder %s248_s0, %s112_s13  ;;  %s16_s10 = int_to_ptr.vmem [resolvable:$true] %s15_s10 }
   0x4   :  { %p116_p1 = scmp.lt.u32.totalorder %s112_s13, %s248_s0 }
   0x6   :  { %p118_p2 = pnand %p116_p1, %p113_p0 }
   0x8   :  { %121 = shalt.err (!%p118_p2)
}
   0x9   :  { %s122_s18 = scalar_lea.vmem %s16_s10, 512  ;;  %p127_p4 = scmp.lt.s32.totalorder %s16_s10, %s16_s10 }
   0xa   :  { %p123_p3 = scmp.ne.s32.totalorder %s16_s10, %s122_s18  ;;  %p128_p5 = scmp.lt.s32.totalorder %s122_s18, %s122_s18 }
   0xc   :  { %p129_p6 = por %p128_p5, %p127_p4 }
   0xe   :  { %p130_p7 = pnand %p129_p6, %p123_p3 }
  0x10   :  { %133 = shalt.err (!%p130_p7)
}
  0x11   :  { %s185_s19 = smov 256   ;;  %s186_s20 = smov 16  }
  0x12   :  { %21 = dma.hbm_to_vmem [thread:$0]  %s248_s0, 512, %s16_s10, [#allocation3], %s185_s19, %s185_s19, %s186_s20  }
  0x13   :  { %s187_s23 = smov [#allocation5]   ;;  %s134_s27 = scalar_lea.hbm %s249_s1, 64 }
  0x14   :  { %s27_s24 = sshll.u32 %s187_s23, 4  ;;  %p135_p8 = scmp.ne.s32.totalorder %s249_s1, %s134_s27  ;;  %s28_s24 = int_to_ptr.vmem [resolvable:$true] %s27_s24 }
  0x15   :  { %p138_p9 = scmp.lt.u32.totalorder %s134_s27, %s249_s1 }
  0x17   :  { %p140_p10 = pnand %p138_p9, %p135_p8 }
  0x19   :  { %143 = shalt.err (!%p140_p10)
}
  0x1a   :  { %s144_s4 = scalar_lea.vmem %s28_s24, 64  ;;  %p149_p12 = scmp.lt.s32.totalorder %s28_s24, %s28_s24 }
  0x1b   :  { %p145_p11 = scmp.ne.s32.totalorder %s28_s24, %s144_s4  ;;  %p150_p13 = scmp.lt.s32.totalorder %s144_s4, %s144_s4 }
  0x1d   :  { %p151_p0 = por %p150_p13, %p149_p12 }
  0x1f   :  { %p152_p1 = pnand %p151_p0, %p145_p11 }
  0x21   :  { %155 = shalt.err (!%p152_p1)
}
  0x22   :  { %s188_s0 = smov 32   ;;  %s189_s5 = smov 2  }
  0x23   :  { %33 = dma.hbm_to_vmem [thread:$0]  %s249_s1, 64, %s28_s24, [#allocation6], %s188_s0, %s188_s0, %s189_s5  }
  0x24   :  { %178 = dma.done.wait [#allocation3], 512  }
  0x25   :  { %179 = vsyncadd [#allocation3], 4294966784 }
  0x26   :  { %180 = dma.done.wait [#allocation6], 64  }
  0x27   :  { %181 = vsyncadd [#allocation6], 4294967232  ;;  %v49_v0 = vlaneseq  ;;  %v40_v4 = vld [vmem:[#allocation2] sm:$0xff]  ;;  %v43_v5 = vld [vmem:[#allocation2 + $0x10] sm:$0xff]  ;;  %s190_s1 = smov [#allocation7]  }
  0x28   :  { %v45_v6 = vld [vmem:[#allocation5] sm:$0x3]  ;;  %v47_v7 = vld [vmem:[#allocation5 + $0x2] sm:$0x3]  ;;  %v41_v9 = vld [vmem:[#allocation2 + $0x8] sm:$0xff]  ;;  %s92_s8 = sshll.u32 %s190_s1, 4  ;;  %s93_s8 = int_to_ptr.vmem [resolvable:$true] %s92_s8 }
  0x29   :  { %v50_v1 = vshrl.u32 %v49_v0, 7  ;;  %v44_v10 = vld [vmem:[#allocation2 + $0x18] sm:$0xff]  ;;  %s156_s9 = scalar_lea.vmem %s93_s8, 512  ;;  %p161_p3 = scmp.lt.s32.totalorder %s93_s8, %s93_s8 }
  0x2a   :  { %p157_p2 = scmp.ne.s32.totalorder %s93_s8, %s156_s9  ;;  %p162_p4 = scmp.lt.s32.totalorder %s156_s9, %s156_s9 }
  0x2b   :  { %v51_v2 = vsub.s32 0, %v50_v1  ;;  %v55_v3 = vsub.s32 1, %v50_v1 }
  0x2c   :  { %p163_p5 = por %p162_p4, %p161_p3 }
  0x2d   :  { %v52_v8 = vrot.slane %v45_v6, %v51_v2  ;;  %v56_v11 = vrot.slane %v45_v6, %v55_v3  ;;  %v65_v12 = vrot.slane %v47_v7, %v51_v2  ;;  %v69_v13 = vrot.slane %v47_v7, %v55_v3 }
  0x2e   :  { %p164_p6 = pnand %p163_p5, %p157_p2 }
  0x2f   :  { %v59_v14 = vmul.f32 %v52_v8, %v40_v4  ;;  %v60_v15 = vmul.f32 %v56_v11, %v41_v9  ;;  %v80_v16 = vmul.f32 %v52_v8, %v43_v5  ;;  %v81_v17 = vmul.f32 %v56_v11, %v44_v10 }
  0x30   :  { %v72_v18 = vmul.f32 %v65_v12, %v43_v5  ;;  %v73_v19 = vmul.f32 %v69_v13, %v44_v10  ;;  %v78_v20 = vmul.f32 %v65_v12, %v40_v4  ;;  %v79_v21 = vmul.f32 %v69_v13, %v41_v9 }
  0x32   :  { %v74_v22 = vsub.f32 %v59_v14, %v72_v18  ;;  %v75_v23 = vsub.f32 %v60_v15, %v73_v19  ;;  %v82_v24 = vadd.f32 %v80_v16, %v78_v20  ;;  %v83_v25 = vadd.f32 %v81_v17, %v79_v21 }
  0x34   :  { %76 = vst [vmem:[#allocation7] sm:$0xff] %v74_v22  ;;  %77 = vst [vmem:[#allocation7 + $0x8] sm:$0xff] %v75_v23 }
  0x35   :  { %85 = vst [vmem:[#allocation7 + $0x10] sm:$0xff] %v82_v24  ;;  %86 = vst [vmem:[#allocation7 + $0x18] sm:$0xff] %v83_v25 }
  0x36   :  { %167 = shalt.err (!%p164_p6)
}
  0x37   :  { %s168_s12 = scalar_lea.hbm %s250_s2, 512 }
  0x38   :  { %p169_p7 = scmp.ne.s32.totalorder %s250_s2, %s168_s12  ;;  %p172_p8 = scmp.lt.u32.totalorder %s168_s12, %s250_s2 }
  0x3a   :  { %p174_p9 = pnand %p172_p8, %p169_p7 }
  0x3c   :  { %177 = shalt.err (!%p174_p9)
}
  0x3d   :  { %98 = dma.vmem_to_hbm [thread:$0]  %s93_s8, 512, %s250_s2, [#allocation4], %s185_s19, %s185_s19, %s186_s20  }
  0x3e   :  { %182 = dma.done.wait [#allocation4], 512  }
  0x3f   :  { %183 = vsyncadd [#allocation4], 4294966784 }
  0x40   :  { %102 = vsyncpa [#allocation3], 1 }
  0x41   :  { %103 = vsyncpa [#allocation6], 1 }
  0x42   :  { %104 = vsyncpa [#allocation4], 1 }

// kernel: custom-call
= control target key start
LH: loop header
LB: loop body
LE: loop exit
PB: predicated region body
PF: predicated region fallthrough
CT: control target
= control target key end

     0   :  { %s812_s0 = inlined_call_operand.vmem [shape: f32[2,8,16,16], index: 0, kind: input, shape index: {}]   ;;  %s813_s2 = inlined_call_operand.vmem [shape: c64[2,8,16,16], index: 2, kind: output, shape index: {}]   ;;  %s814_s1 = inlined_call_operand.vmem [shape: f32[2,8,16,16], index: 1, kind: input, shape index: {}]  }
   0x1   :  { %v5_v0 = vld [vmem:[%s812_s0] sm:$0xff]  ;;  %v288_v1 = vld [vmem:[%s812_s0 + $0x8] sm:$0xff]  ;;  %v290_v2 = vld [vmem:[%s812_s0 + $0x10] sm:$0xff] }
   0x2   :  { %6 = vst [vmem:[%s813_s2] sm:$0xff] %v5_v0  ;;  %289 = vst [vmem:[%s813_s2 + $0x8] sm:$0xff] %v288_v1  ;;  %v292_v3 = vld [vmem:[%s812_s0 + $0x18] sm:$0xff]  ;;  %v294_v4 = vld [vmem:[%s812_s0 + $0x20] sm:$0xff] }
   0x3   :  { %291 = vst [vmem:[%s813_s2 + $0x10] sm:$0xff] %v290_v2  ;;  %v296_v5 = vld [vmem:[%s812_s0 + $0x28] sm:$0xff]  ;;  %293 = vst [vmem:[%s813_s2 + $0x18] sm:$0xff] %v292_v3  ;;  %v298_v6 = vld [vmem:[%s812_s0 + $0x30] sm:$0xff] }
   0x4   :  { %295 = vst [vmem:[%s813_s2 + $0x20] sm:$0xff] %v294_v4  ;;  %297 = vst [vmem:[%s813_s2 + $0x28] sm:$0xff] %v296_v5  ;;  %v300_v7 = vld [vmem:[%s812_s0 + $0x38] sm:$0xff]  ;;  %v302_v8 = vld [vmem:[%s812_s0 + $0x40] sm:$0xff] }
   0x5   :  { %299 = vst [vmem:[%s813_s2 + $0x30] sm:$0xff] %v298_v6  ;;  %301 = vst [vmem:[%s813_s2 + $0x38] sm:$0xff] %v300_v7  ;;  %v304_v9 = vld [vmem:[%s812_s0 + $0x48] sm:$0xff]  ;;  %v306_v10 = vld [vmem:[%s812_s0 + $0x50] sm:$0xff] }
   0x6   :  { %303 = vst [vmem:[%s813_s2 + $0x40] sm:$0xff] %v302_v8  ;;  %v308_v11 = vld [vmem:[%s812_s0 + $0x58] sm:$0xff]  ;;  %305 = vst [vmem:[%s813_s2 + $0x48] sm:$0xff] %v304_v9  ;;  %v310_v12 = vld [vmem:[%s812_s0 + $0x60] sm:$0xff] }
   0x7   :  { %307 = vst [vmem:[%s813_s2 + $0x50] sm:$0xff] %v306_v10  ;;  %309 = vst [vmem:[%s813_s2 + $0x58] sm:$0xff] %v308_v11  ;;  %v312_v13 = vld [vmem:[%s812_s0 + $0x68] sm:$0xff]  ;;  %v314_v14 = vld [vmem:[%s812_s0 + $0x70] sm:$0xff] }
   0x8   :  { %311 = vst [vmem:[%s813_s2 + $0x60] sm:$0xff] %v310_v12  ;;  %313 = vst [vmem:[%s813_s2 + $0x68] sm:$0xff] %v312_v13  ;;  %v316_v15 = vld [vmem:[%s812_s0 + $0x78] sm:$0xff]  ;;  %v318_v16 = vld [vmem:[%s812_s0 + $0x80] sm:$0xff] }
   0x9   :  { %315 = vst [vmem:[%s813_s2 + $0x70] sm:$0xff] %v314_v14  ;;  %v320_v17 = vld [vmem:[%s812_s0 + $0x88] sm:$0xff]  ;;  %317 = vst [vmem:[%s813_s2 + $0x78] sm:$0xff] %v316_v15  ;;  %v322_v18 = vld [vmem:[%s812_s0 + $0x90] sm:$0xff] }
   0xa   :  { %319 = vst [vmem:[%s813_s2 + $0x80] sm:$0xff] %v318_v16  ;;  %321 = vst [vmem:[%s813_s2 + $0x88] sm:$0xff] %v320_v17  ;;  %v324_v19 = vld [vmem:[%s812_s0 + $0x98] sm:$0xff]  ;;  %v326_v20 = vld [vmem:[%s812_s0 + $0xa0] sm:$0xff] }
   0xb   :  { %323 = vst [vmem:[%s813_s2 + $0x90] sm:$0xff] %v322_v18  ;;  %325 = vst [vmem:[%s813_s2 + $0x98] sm:$0xff] %v324_v19  ;;  %v328_v21 = vld [vmem:[%s812_s0 + $0xa8] sm:$0xff]  ;;  %v330_v22 = vld [vmem:[%s812_s0 + $0xb0] sm:$0xff] }
   0xc   :  { %327 = vst [vmem:[%s813_s2 + $0xa0] sm:$0xff] %v326_v20  ;;  %v332_v23 = vld [vmem:[%s812_s0 + $0xb8] sm:$0xff]  ;;  %329 = vst [vmem:[%s813_s2 + $0xa8] sm:$0xff] %v328_v21  ;;  %v334_v24 = vld [vmem:[%s812_s0 + $0xc0] sm:$0xff] }
   0xd   :  { %331 = vst [vmem:[%s813_s2 + $0xb0] sm:$0xff] %v330_v22  ;;  %333 = vst [vmem:[%s813_s2 + $0xb8] sm:$0xff] %v332_v23  ;;  %v336_v25 = vld [vmem:[%s812_s0 + $0xc8] sm:$0xff]  ;;  %v338_v26 = vld [vmem:[%s812_s0 + $0xd0] sm:$0xff] }
   0xe   :  { %335 = vst [vmem:[%s813_s2 + $0xc0] sm:$0xff] %v334_v24  ;;  %337 = vst [vmem:[%s813_s2 + $0xc8] sm:$0xff] %v336_v25  ;;  %v340_v27 = vld [vmem:[%s812_s0 + $0xd8] sm:$0xff]  ;;  %v342_v28 = vld [vmem:[%s812_s0 + $0xe0] sm:$0xff] }
   0xf   :  { %339 = vst [vmem:[%s813_s2 + $0xd0] sm:$0xff] %v338_v26  ;;  %v344_v29 = vld [vmem:[%s812_s0 + $0xe8] sm:$0xff]  ;;  %341 = vst [vmem:[%s813_s2 + $0xd8] sm:$0xff] %v340_v27  ;;  %v346_v30 = vld [vmem:[%s812_s0 + $0xf0] sm:$0xff] }
  0x10   :  { %343 = vst [vmem:[%s813_s2 + $0xe0] sm:$0xff] %v342_v28  ;;  %345 = vst [vmem:[%s813_s2 + $0xe8] sm:$0xff] %v344_v29  ;;  %v348_v31 = vld [vmem:[%s812_s0 + $0xf8] sm:$0xff]  ;;  %v131_v32 = vld [vmem:[%s814_s1] sm:$0xff] }
  0x11   :  { %347 = vst [vmem:[%s813_s2 + $0xf0] sm:$0xff] %v346_v30  ;;  %349 = vst [vmem:[%s813_s2 + $0xf8] sm:$0xff] %v348_v31  ;;  %v351_v33 = vld [vmem:[%s814_s1 + $0x8] sm:$0xff]  ;;  %v353_v34 = vld [vmem:[%s814_s1 + $0x10] sm:$0xff] }
  0x12   :  { %350 = vst [vmem:[%s813_s2 + $0x100] sm:$0xff] %v131_v32  ;;  %v355_v35 = vld [vmem:[%s814_s1 + $0x18] sm:$0xff]  ;;  %352 = vst [vmem:[%s813_s2 + $0x108] sm:$0xff] %v351_v33  ;;  %v357_v36 = vld [vmem:[%s814_s1 + $0x20] sm:$0xff] }
  0x13   :  { %354 = vst [vmem:[%s813_s2 + $0x110] sm:$0xff] %v353_v34  ;;  %356 = vst [vmem:[%s813_s2 + $0x118] sm:$0xff] %v355_v35  ;;  %v359_v37 = vld [vmem:[%s814_s1 + $0x28] sm:$0xff]  ;;  %v361_v38 = vld [vmem:[%s814_s1 + $0x30] sm:$0xff] }
  0x14   :  { %358 = vst [vmem:[%s813_s2 + $0x120] sm:$0xff] %v357_v36  ;;  %360 = vst [vmem:[%s813_s2 + $0x128] sm:$0xff] %v359_v37  ;;  %v363_v39 = vld [vmem:[%s814_s1 + $0x38] sm:$0xff]  ;;  %v365_v40 = vld [vmem:[%s814_s1 + $0x40] sm:$0xff] }
  0x15   :  { %362 = vst [vmem:[%s813_s2 + $0x130] sm:$0xff] %v361_v38  ;;  %v367_v41 = vld [vmem:[%s814_s1 + $0x48] sm:$0xff]  ;;  %364 = vst [vmem:[%s813_s2 + $0x138] sm:$0xff] %v363_v39  ;;  %v369_v42 = vld [vmem:[%s814_s1 + $0x50] sm:$0xff] }
  0x16   :  { %366 = vst [vmem:[%s813_s2 + $0x140] sm:$0xff] %v365_v40  ;;  %368 = vst [vmem:[%s813_s2 + $0x148] sm:$0xff] %v367_v41  ;;  %v371_v43 = vld [vmem:[%s814_s1 + $0x58] sm:$0xff]  ;;  %v373_v44 = vld [vmem:[%s814_s1 + $0x60] sm:$0xff] }
  0x17   :  { %370 = vst [vmem:[%s813_s2 + $0x150] sm:$0xff] %v369_v42  ;;  %372 = vst [vmem:[%s813_s2 + $0x158] sm:$0xff] %v371_v43  ;;  %v375_v45 = vld [vmem:[%s814_s1 + $0x68] sm:$0xff]  ;;  %v377_v46 = vld [vmem:[%s814_s1 + $0x70] sm:$0xff] }
  0x18   :  { %374 = vst [vmem:[%s813_s2 + $0x160] sm:$0xff] %v373_v44  ;;  %v379_v47 = vld [vmem:[%s814_s1 + $0x78] sm:$0xff]  ;;  %376 = vst [vmem:[%s813_s2 + $0x168] sm:$0xff] %v375_v45  ;;  %v381_v48 = vld [vmem:[%s814_s1 + $0x80] sm:$0xff] }
  0x19   :  { %378 = vst [vmem:[%s813_s2 + $0x170] sm:$0xff] %v377_v46  ;;  %380 = vst [vmem:[%s813_s2 + $0x178] sm:$0xff] %v379_v47  ;;  %v383_v49 = vld [vmem:[%s814_s1 + $0x88] sm:$0xff]  ;;  %v385_v50 = vld [vmem:[%s814_s1 + $0x90] sm:$0xff] }
  0x1a   :  { %382 = vst [vmem:[%s813_s2 + $0x180] sm:$0xff] %v381_v48  ;;  %384 = vst [vmem:[%s813_s2 + $0x188] sm:$0xff] %v383_v49  ;;  %v387_v51 = vld [vmem:[%s814_s1 + $0x98] sm:$0xff]  ;;  %v389_v52 = vld [vmem:[%s814_s1 + $0xa0] sm:$0xff] }
  0x1b   :  { %386 = vst [vmem:[%s813_s2 + $0x190] sm:$0xff] %v385_v50  ;;  %v391_v53 = vld [vmem:[%s814_s1 + $0xa8] sm:$0xff]  ;;  %388 = vst [vmem:[%s813_s2 + $0x198] sm:$0xff] %v387_v51  ;;  %v393_v54 = vld [vmem:[%s814_s1 + $0xb0] sm:$0xff] }
  0x1c   :  { %390 = vst [vmem:[%s813_s2 + $0x1a0] sm:$0xff] %v389_v52  ;;  %392 = vst [vmem:[%s813_s2 + $0x1a8] sm:$0xff] %v391_v53  ;;  %v395_v55 = vld [vmem:[%s814_s1 + $0xb8] sm:$0xff]  ;;  %v397_v56 = vld [vmem:[%s814_s1 + $0xc0] sm:$0xff] }
  0x1d   :  { %394 = vst [vmem:[%s813_s2 + $0x1b0] sm:$0xff] %v393_v54  ;;  %396 = vst [vmem:[%s813_s2 + $0x1b8] sm:$0xff] %v395_v55  ;;  %v399_v57 = vld [vmem:[%s814_s1 + $0xc8] sm:$0xff]  ;;  %v401_v58 = vld [vmem:[%s814_s1 + $0xd0] sm:$0xff] }
  0x1e   :  { %398 = vst [vmem:[%s813_s2 + $0x1c0] sm:$0xff] %v397_v56  ;;  %v403_v59 = vld [vmem:[%s814_s1 + $0xd8] sm:$0xff]  ;;  %400 = vst [vmem:[%s813_s2 + $0x1c8] sm:$0xff] %v399_v57  ;;  %v405_v60 = vld [vmem:[%s814_s1 + $0xe0] sm:$0xff] }
  0x1f   :  { %402 = vst [vmem:[%s813_s2 + $0x1d0] sm:$0xff] %v401_v58  ;;  %404 = vst [vmem:[%s813_s2 + $0x1d8] sm:$0xff] %v403_v59  ;;  %v407_v61 = vld [vmem:[%s814_s1 + $0xe8] sm:$0xff]  ;;  %v409_v62 = vld [vmem:[%s814_s1 + $0xf0] sm:$0xff] }
  0x20   :  { %406 = vst [vmem:[%s813_s2 + $0x1e0] sm:$0xff] %v405_v60  ;;  %408 = vst [vmem:[%s813_s2 + $0x1e8] sm:$0xff] %v407_v61  ;;  %v411_v63 = vld [vmem:[%s814_s1 + $0xf8] sm:$0xff] }
  0x21   :  { %410 = vst [vmem:[%s813_s2 + $0x1f0] sm:$0xff] %v409_v62  ;;  %412 = vst [vmem:[%s813_s2 + $0x1f8] sm:$0xff] %v411_v63 }

// kernel: hybrid_layer.2
= control target key start
LH: loop header
LB: loop body
LE: loop exit
PB: predicated region body
PF: predicated region fallthrough
CT: control target
= control target key end

     0   :  { %8 = vsyncpa [#allocation3], 0  ;;  %s10682_s0 = inlined_call_operand.hbm [shape: bf16[2,18,4,18], index: 0, kind: input, shape index: {}]   ;;  %s10683_s1 = inlined_call_operand.hbm [shape: bf16[3,3,8,4], index: 1, kind: input, shape index: {}]   ;;  %s10684_s2 = inlined_call_operand.hbm [shape: f32[8,1], index: 2, kind: input, shape index: {}]   ;;  %s10685_s3 = inlined_call_operand.hbm [shape: f32[2,16,8,16], index: 3, kind: output, shape index: {}]  }
   0x1   :  { %10 = vsyncpa [#allocation3 + $0x1], 0 }
   0x2   :  { %11 = vsyncpa [#allocation6], 0 }
   0x3   :  { %12 = vsyncpa [#allocation4], 0 }
   0x4   :  { %14 = vsyncpa [#allocation4 + $0x1], 0  ;;  %s9093_s12 = smov 0   ;;  %s9095_s13 = smov 0  }
   0x5   :  { %s9097_s14 = smov 0   ;;  %s9099_s15 = smov 0  }
   0x6 LB: > { %s9114_s16 = sadd.s32 4294967295, %s9055_s15   ;;  %s7368_s17 = sadd.s32 4294967294, %s9055_s15   ;;  %s9055_s15 = sphi %s9099_s15, %s10705_s15   ;;  %s9051_s14 = sphi %s9097_s14, %s10704_s14   ;;  %s9047_s13 = sphi %s9095_s13, %s10703_s13   ;;  %s9043_s12 = sphi %s9093_s12, %s10702_s12  }
   0x7   : > { %p40_p0 = scmp.ne.s32.totalorder %s9047_s13, %s9043_s12  ;;  %p10686_p1 = scmp.eq.s32.totalorder %s9114_s16, 0 }
   0x8   : > { %p112_p3 = scmp.eq.s32.totalorder %s7368_s17, 1  ;;  %p7369_p5 = scmp.ge.s32.totalorder %s9055_s15, 1 }
   0x9   : > { %p9123_p4 = por %p10686_p1, %p40_p0  ;;  %p119_p7 = scmp.lt.s32.totalorder %s9055_s15, 3 }
   0xa   : > { %p9128_p6 = por %p112_p3, %p40_p0  ;;  %s9057_s21 = smov [#allocation5]  }
   0xb   : > { %s10689_s18 = scalar_select %p9123_p4, 1, 0 }
   0xc   : > { %s10690_s19 = scalar_select %p9128_p6, 1, 0 }
   0xd   : > { %p9133_p8 = pnand %p7369_p5, %p119_p7  ;;  %s131_s22 = sshll.u32 %s9057_s21, 4  ;;  %s9137_s22 = int_to_ptr.vmem [resolvable:$true] %s131_s22 }
   0xe   : > { %s9058_s24 = smov [#allocation7]   ;;  %s8899_s28 = scalar_lea.hbm %s10683_s1, 576 }
   0xf   : > { %p8757_p9 = pneg %p9133_p8  ;;  %s145_s25 = sshll.u32 %s9058_s24, 4  ;;  %s9148_s25 = int_to_ptr.vmem [resolvable:$true] %s145_s25 }
  0x10   : > { %p8900_p12 = scmp.ne.s32.totalorder %s10683_s1, %s8899_s28  ;;  %p8906_p5 = scmp.lt.u32.totalorder %s8899_s28, %s10683_s1 }
  0x11   : > { %p9144_p11 = pnand %p8757_p9, %p10686_p1 }
  0x13   : > { %p8901_p13 = pneg %p9144_p11 }
  0x15   : > { %p8902_p0 = pnand %p8901_p13, %p8900_p12 }
  0x17   : > { %p8903_p3 = pneg %p8902_p0 }
  0x19   : > { %p8908_p7 = pnand %p8906_p5, %p8903_p3 }
  0x1b   : > { %8911 = shalt.err (!%p8908_p7)
}
  0x1c   : > { %s8912_s6 = scalar_lea.vmem %s9137_s22, 576  ;;  %p8920_p2 = scmp.lt.s32.totalorder %s9137_s22, %s9137_s22 }
  0x1d   : > { %p8913_p9 = scmp.ne.s32.totalorder %s9137_s22, %s8912_s6  ;;  %p8921_p12 = scmp.lt.s32.totalorder %s8912_s6, %s8912_s6 }
  0x1f   : > { %p8915_p10 = pnand %p8913_p9, %p8901_p13  ;;  %p8922_p0 = por %p8921_p12, %p8920_p2 }
  0x21   : > { %p8916_p1 = pneg %p8915_p10 }
  0x23   : > { %p8923_p6 = pnand %p8922_p0, %p8916_p1 }
  0x25   : > { %8926 = shalt.err (!%p8923_p6)
}
  0x26   : > { %s9059_s7 = smov 64   ;;  %s9060_s8 = smov 4  }
  0x27   : > { %8760 = dma.hbm_to_vmem [thread:$0]  (!%p9144_p11), %s10683_s1, 576, %s9137_s22, [#allocation6], %s9059_s7, %s9059_s7, %s9060_s8  }
  0x28   : > { %s8927_s21 = scalar_lea.hbm %s10684_s2, 128 }
  0x29   : > { %p8928_p2 = scmp.ne.s32.totalorder %s10684_s2, %s8927_s21  ;;  %p8934_p10 = scmp.lt.u32.totalorder %s8927_s21, %s10684_s2 }
  0x2b   : > { %p8930_p1 = pnand %p8928_p2, %p8901_p13 }
  0x2d   : > { %p8931_p6 = pneg %p8930_p1 }
  0x2f   : > { %p8936_p3 = pnand %p8934_p10, %p8931_p6 }
  0x31   : > { %8939 = shalt.err (!%p8936_p3)
}
  0x32   : > { %s8940_s22 = scalar_lea.vmem %s9148_s25, 128  ;;  %p8948_p12 = scmp.lt.s32.totalorder %s9148_s25, %s9148_s25 }
  0x33   : > { %p8941_p5 = scmp.ne.s32.totalorder %s9148_s25, %s8940_s22  ;;  %p8949_p0 = scmp.lt.s32.totalorder %s8940_s22, %s8940_s22 }
  0x35   : > { %p8943_p7 = pnand %p8941_p5, %p8901_p13  ;;  %p8950_p2 = por %p8949_p0, %p8948_p12 }
  0x37   : > { %p8944_p9 = pneg %p8943_p7 }
  0x39   : > { %p8951_p1 = pnand %p8950_p2, %p8944_p9 }
  0x3b   : > { %8954 = shalt.err (!%p8951_p1)
}
  0x3c   : > { %8763 = dma.hbm_to_vmem [thread:$0]  (!%p9144_p11), %s10684_s2, 128, %s9148_s25, [#allocation6]  }
  0x3d   : > { %s9203_s4 = sadd.s32 1, %s9055_s15   ;;  %s27_s23 = sadd.s32 1, %s9051_s14 }
  0x3e   : > { %s24_s5 = ssub.s32 %s9055_s15, %s9203_s4  ;;  %p34_p13 = scmp.ne.s32.totalorder %s9051_s14, %s9047_s13 }
  0x3f   : > { %p25_p6 = scmp.eq.s32.totalorder %s24_s5, 0  ;;  %p35_p10 = scmp.eq.s32.totalorder %s9055_s15, 0 }
  0x40   : > { %p10693_p3 = scmp.eq.s32.totalorder %s9114_s16, 1  ;;  %p8774_p7 = scmp.lt.s32.totalorder %s9055_s15, 2 }
  0x41   : > { %s9219_s7 = scalar_select %p25_p6, %s9051_s14, %s27_s23  }
  0x42   : > { %p9213_p5 = por %p10693_p3, %p34_p13  ;;  %p36_p9 = por %p35_p10, %p34_p13 }
  0x43   : > { %s156_s8 = sand.u32 1, %s9051_s14   ;;  %s8743_s25 = smul.u32 576, %s9055_s15 }
  0x44   : > { %s10694_s6 = scalar_select %p9213_p5, 1, 0 }
  0x45   : > { %s8742_s9 = smul.u32 36, %s156_s8  ;;  %p9223_p11 = pnand %p8774_p7, %p36_p9 }
  0x46   : > { %s9230_s21 = scalar_lea.hbm %s10682_s0, %s8743_s25  ;;  %s9234_s27 = scalar_lea.sflag [#allocation3], %s156_s8 }
  0x47   : > { %s160_s24 = scalar_lea.vmem [#allocation2], %s8742_s9  ;;  %s8955_s28 = scalar_lea.hbm %s9230_s21, 576 }
  0x48   : > { %s167_s26 = sshll.u32 %s160_s24, 4  ;;  %p8956_p12 = scmp.ne.s32.totalorder %s9230_s21, %s8955_s28  ;;  %s9232_s26 = int_to_ptr.vmem [resolvable:$true] %s167_s26 }
  0x49   : > { %p8957_p0 = pneg %p9223_p11  ;;  %s8960_s30 = scalar_lea.hbm %s10682_s0, 1152 }
  0x4a   : > { %p8961_p13 = scmp.lt.u32.totalorder %s9230_s21, %s10682_s0  ;;  %p8962_p6 = scmp.lt.u32.totalorder %s8960_s30, %s8955_s28 }
  0x4b   : > { %p8958_p2 = pnand %p8957_p0, %p8956_p12  ;;  %p8964_p3 = scmp.lt.u32.totalorder %s8955_s28, %s9230_s21 }
  0x4c   : > { %p8963_p10 = por %p8962_p6, %p8961_p13 }
  0x4d   : > { %p8959_p1 = pneg %p8958_p2 }
  0x4e   : > { %p8965_p7 = por %p8964_p3, %p8963_p10 }
  0x50   : > { %p8966_p9 = pnand %p8965_p7, %p8959_p1 }
  0x52   : > { %8969 = shalt.err (!%p8966_p9)
}
  0x53   : > { %s8970_s8 = scalar_lea.vmem %s9232_s26, 576  ;;  %s9061_s9 = smov [#allocation2]  }
  0x54   : > { %p8971_p12 = scmp.ne.s32.totalorder %s9232_s26, %s8970_s8  ;;  %s8975_s25 = sshll.u32 %s9061_s9, 4  ;;  %s8976_s25 = int_to_ptr.vmem [resolvable:$false] %s8975_s25 }
  0x55   : > { %s8977_s11 = scalar_lea.vmem %s8976_s25, 1152  ;;  %p8978_p4 = scmp.lt.s32.totalorder %s9232_s26, %s8976_s25 }
  0x56   : > { %p8973_p2 = pnand %p8971_p12, %p8957_p0  ;;  %p8979_p13 = scmp.lt.s32.totalorder %s8977_s11, %s8970_s8 }
  0x58   : > { %p8974_p5 = pneg %p8973_p2  ;;  %p8980_p6 = por %p8979_p13, %p8978_p4 }
  0x5a   : > { %p8981_p10 = pnand %p8980_p6, %p8974_p5 }
  0x5c   : > { %8984 = shalt.err (!%p8981_p10)
}
  0x5d   : > { %s9062_s17 = smov 32   ;;  %s9063_s24 = smov 2  }
  0x5e   : > { %8767 = dma.hbm_to_vmem [thread:$0]  (!%p9223_p11), %s9230_s21, 576, %s9232_s26, %s9234_s27, %s9062_s17, %s9062_s17, %s9063_s24  }
  0x5f   : > { %179 = sbr.rel (%p9133_p8) target bundleno = 1035 (0x40b), region = 32  ;;  %s9265_s28 = sand.u32 (!%p9133_p8), 1, %s9047_s13  }
  0x60   : > { %s8744_s22 = smul.u32 (!%p9133_p8), 36, %s9265_s28  ;;  %s182_s29 = scalar_lea.sflag (!%p9133_p8), [#allocation3], %s9265_s28 }
  0x61   : > { %p10696_p4 = scmp.ne.s32.totalorder (!%p9133_p8), %s10689_s18, 0 }
  0x62   : > { %s9269_s30 = scalar_lea.vmem (!%p9133_p8), [#allocation2], %s8744_s22 }
  0x66   : > { %9030 = dma.done.wait (%p10696_p4), %s182_s29, 576  }
  0x67   : > { %9032 = vsyncadd (%p10696_p4), %s182_s29, 4294966720  ;;  %p10697_p5 = scmp.eq.s32.totalorder %s9114_s16, 0 }
  0x69   : > { %9034 = dma.done.wait (%p10697_p5), [#allocation6], 704   ;;  %p10698_p8 = pmov %p10697_p5 }
  0x6a   : > { %v240_v0 = vlaneseq  ;;  %v9064_v1 = vmov 1983009808   ;;  %v9065_v4 = vmov 0.0   ;;  %vm9066_vm0 = vmmov 0   ;;  %v235_v7 = vld [vmem:[%s9269_s30] sm:$0x3] }
  0x6b   : > { %9036 = vsyncadd (%p10698_p8), [#allocation6], 4294966592  ;;  %v238_v2 = vunpack.c.l.s4 %v9064_v1  ;;  %7878 = vmatprep.subr.bf16.mxu0 %v9065_v4  ;;  %7884 = vmatprep.subr.bf16.mxu1 %v9065_v4  ;;  %v7381_v8 = vld [vmem:[%s9269_s30 + $0x2] sm:$0x3]  ;;  %vm250_vm1 = vcmask 1041408   ;;  %s9067_s18 = smov 127  }
  0x6c   : > { %v241_v3 = vshrl.u32 %v240_v0, 7  ;;  %7880 = vmatprep.mubr.msk.bf16.mxu0 %vm9066_vm0, %v9065_v4  ;;  %7886 = vmatprep.mubr.msk.bf16.mxu1 %vm9066_vm0, %v9065_v4  ;;  %v298_v11 = vsel %vm250_vm1, %v235_v7, 0  ;;  %v9295_v12 = vld [vmem:[%s9269_s30 + $0x4] sm:$0x3]  ;;  %vm246_vm2 = vcmask 31744   ;;  %s9068_s20 = smov 126  }
  0x6d   : > { %v239_v5 = vunpack.c.0.s8 %v238_v2  ;;  %7885 = vmatpush3.bf16.msra.mxu1 %v298_v11  ;;  %v9302_v14 = vld [vmem:[#allocation5] sm:$0xf]  ;;  %v395_v15 = vsel %vm250_vm1, %v7381_v8, 0  ;;  %v9306_v16 = vld [vmem:[%s9269_s30 + $0x2] sm:$0x3]  ;;  %v9069_v60 = vmov 0  }
  0x6e   : > { %7896 = vmatprep.subr.bf16.mxu1 %v9065_v4  ;;  %v9318_v18 = vld [vmem:[%s9269_s30 + $0x4] sm:$0x3]  ;;  %v9320_v19 = vld [vmem:[#allocation5 + $0xc] sm:$0xf]  ;;  %v9327_v21 = vld [vmem:[%s9269_s30 + $0x6] sm:$0x3]  ;;  %8824 = vset.pattern.permute.xlu0 %v9069_v60 }
  0x6f   : > { %v9285_v6 = vsub.s32 %v239_v5, %v241_v3  ;;  %v9338_v23 = vld [vmem:[%s9269_s30 + $0x4] sm:$0x3]  ;;  %v9345_v25 = vld [vmem:[%s9269_s30 + $0x6] sm:$0x3]  ;;  %v9352_v27 = vld [vmem:[%s9269_s30 + $0x8] sm:$0x3] }
  0x70   : > { %7887 = vmatmul.mubr.msk.bf16.vlgmr.msra.gmra.mrb[0].mxu1 %vm246_vm2, %v9302_v14  ;;  %v9359_v29 = vld [vmem:[%s9269_s30 + $0x6] sm:$0x3]  ;;  %v9366_v31 = vld [vmem:[%s9269_s30 + $0x8] sm:$0x3]  ;;  %v9373_v33 = vld [vmem:[%s9269_s30 + $0xa] sm:$0x3] }
  0x71   : > { %v243_v9 = vrot.slane %v235_v7, %v9285_v6  ;;  %v445_v10 = vrot.slane %v7381_v8, %v9285_v6  ;;  %v600_v13 = vrot.slane %v9295_v12, %v9285_v6  ;;  %7897 = vmatpush3.bf16.msra.mxu1 %v395_v15  ;;  %7898 = vmatprep.mubr.msk.bf16.mxu1 %vm9066_vm0, %v9065_v4  ;;  %v9380_v35 = vld [vmem:[%s9269_s30 + $0x8] sm:$0x3]  ;;  %v9387_v37 = vld [vmem:[%s9269_s30 + $0xa] sm:$0x3]  ;;  %v9394_v39 = vld [vmem:[%s9269_s30 + $0xc] sm:$0x3] }
  0x72   : > { %7908 = vmatprep.subr.bf16.mxu1 %v9065_v4  ;;  %v715_v17 = vrot.slane %v9306_v16, %v9285_v6  ;;  %v902_v20 = vrot.slane %v9318_v18, %v9285_v6  ;;  %v1048_v22 = vrot.slane %v9327_v21, %v9285_v6  ;;  %v1152_v24 = vrot.slane %v9338_v23, %v9285_v6  ;;  %v9401_v41 = vld [vmem:[%s9269_s30 + $0xa] sm:$0x3]  ;;  %v9408_v43 = vld [vmem:[%s9269_s30 + $0xc] sm:$0x3]  ;;  %v9415_v45 = vld [vmem:[%s9269_s30 + $0xe] sm:$0x3] }
  0x73   : > { %244 = vrot.lane.b32.xlu0 %v243_v9, %s9067_s18  ;;  %446 = vrot.lane.b32.xlu1 %v445_v10, %s9067_s18  ;;  %v1339_v26 = vrot.slane %v9345_v25, %v9285_v6  ;;  %v1485_v28 = vrot.slane %v9352_v27, %v9285_v6  ;;  %v1589_v30 = vrot.slane %v9359_v29, %v9285_v6  ;;  %v9422_v47 = vld [vmem:[%s9269_s30 + $0xc] sm:$0x3]  ;;  %v9429_v49 = vld [vmem:[%s9269_s30 + $0xe] sm:$0x3]  ;;  %s7377_s10 = sshll.u32 %s9265_s28, 7  ;;  %vm705_vm3 = vcmask 130048  }
  0x74   : > { %v1776_v32 = vrot.slane %v9366_v31, %v9285_v6  ;;  %v1922_v34 = vrot.slane %v9373_v33, %v9285_v6  ;;  %v2026_v36 = vrot.slane %v9380_v35, %v9285_v6  ;;  %v2213_v38 = vrot.slane %v9387_v37, %v9285_v6  ;;  %v8871_v51 = vld.sshfl [vmem:[%s9269_s30 + $0x10] sm:$0x3 pattern:$0x76325410]  ;;  %v9467_v2 = vld [vmem:[#allocation5 + $0x4] sm:$0xf] }
  0x75   : > { %v2359_v40 = vrot.slane %v9394_v39, %v9285_v6  ;;  %v2463_v42 = vrot.slane %v9401_v41, %v9285_v6  ;;  %v2650_v44 = vrot.slane %v9408_v43, %v9285_v6  ;;  %v2796_v46 = vrot.slane %v9415_v45, %v9285_v6  ;;  %v8872_v52 = vld.sshfl [vmem:[%s9269_s30 + $0xe] sm:$0x3 pattern:$0x76325410]  ;;  %s10050_s21 = scalar_lea.vmem [#allocation8], %s7377_s10  ;;  %s7589_s26 = sshll.u32 %s9114_s16, 11 }
  0x76   : > { %v2900_v48 = vrot.slane %v9422_v47, %v9285_v6  ;;  %v3087_v50 = vrot.slane %v9429_v49, %v9285_v6  ;;  %v8873_v53 = vld.sshfl [vmem:[%s9269_s30 + $0x10] sm:$0x3 pattern:$0x76325410]  ;;  %s7276_s27 = sshll.u32 %s10050_s21, 4  ;;  %s10633_s8 = scalar_lea.hbm %s10685_s3, %s7589_s26  ;;  %s10635_s27 = int_to_ptr.vmem [resolvable:$true] %s7276_s27 }
  0x77   : > { %340 = vrot.lane.b32.xlu0 %v243_v9, %s9068_s20  ;;  %495 = vrot.lane.b32.xlu1 %v445_v10, %s9068_s20  ;;  %v8874_v54 = vld.sshfl [vmem:[%s9269_s30 + $0x12] sm:$0x3 pattern:$0x76325410]  ;;  %v9480_v9 = vld [vmem:[#allocation5 + $0x14] sm:$0xf] }
  0x78   : > { %7899 = vmatmul.mubr.msk.bf16.vlgmr.msra.gmra.mrb[4].mxu1 %vm246_vm2, %v9320_v19  ;;  %v8875_v55 = vld.sshfl [vmem:[%s9269_s30 + $0x10] sm:$0x3 pattern:$0x76325410]  ;;  %s7263_s9 = scalar_lea.sflag [#allocation4], %s9265_s28  ;;  %s8985_s16 = scalar_lea.vmem %s10635_s27, 2048 }
  0x79   : > { %7910 = vmatprep.mubr.msk.bf16.mxu1 %vm9066_vm0, %v9065_v4  ;;  %v8876_v56 = vld.sshfl [vmem:[%s9269_s30 + $0x12] sm:$0x3 pattern:$0x76325410]  ;;  %p8986_p11 = scmp.ne.s32.totalorder %s10635_s27, %s8985_s16  ;;  %p10699_p0 = scmp.ne.s32.totalorder %s10694_s6, 0 }
  0x7a   : > { %v8877_v57 = vld.sshfl [vmem:[%s9269_s30 + $0x14] sm:$0x3 pattern:$0x76325410]  ;;  %v9487_v15 = vld [vmem:[#allocation5 + $0x8] sm:$0xf] }
  0x7b   : > { %601 = vrot.lane.b32.xlu0 %v600_v13, %s9067_s18  ;;  %650 = vrot.lane.b32.xlu1 %v600_v13, %s9068_s20  ;;  %v8878_v58 = vld.sshfl [vmem:[%s9269_s30 + $0x12] sm:$0x3 pattern:$0x76325410]  ;;  %p8987_p1 = pnand %p8986_p11, %p10699_p0  ;;  %s9070_s25 = smov [#allocation8]  }
  0x7c   : > { %v8879_v59 = vld.sshfl [vmem:[%s9269_s30 + $0x14] sm:$0x3 pattern:$0x76325410]  ;;  %s8989_s11 = sshll.u32 %s9070_s25, 4  ;;  %s8990_s11 = int_to_ptr.vmem [resolvable:$false] %s8989_s11 }
  0x7d   : > { %v8880_v61 = vld.sshfl [vmem:[%s9269_s30 + $0x16] sm:$0x3 pattern:$0x76325410]  ;;  %p8988_p3 = pneg %p8987_p1  ;;  %s8991_s17 = scalar_lea.vmem %s8990_s11, 4096 }
  0x7e   : > { %v8881_v1 = vld.sshfl [vmem:[%s9269_s30 + $0x14] sm:$0x3 pattern:$0x76325410]  ;;  %p8992_p7 = scmp.lt.s32.totalorder %s10635_s27, %s8990_s11  ;;  %p8993_p9 = scmp.lt.s32.totalorder %s8991_s17, %s8985_s16 }
  0x7f   : > { %716 = vrot.lane.b32.xlu0 %v715_v17, %s9067_s18  ;;  %804 = vrot.lane.b32.xlu1 %v715_v17, %s9068_s20  ;;  %v8882_v8 = vld.sshfl [vmem:[%s9269_s30 + $0x16] sm:$0x3 pattern:$0x76325410] }
  0x80   : > { %v8883_v13 = vld.sshfl [vmem:[%s9269_s30 + $0x18] sm:$0x3 pattern:$0x76325410]  ;;  %p8994_p12 = por %p8993_p9, %p8992_p7 }
  0x82   : > { %p8995_p2 = pnand %p8994_p12, %p8988_p3 }
  0x83   : > { %903 = vrot.lane.b32.xlu0 %v902_v20, %s9067_s18  ;;  %949 = vrot.lane.b32.xlu1 %v902_v20, %s9068_s20 }
  0x87   : > { %1049 = vrot.lane.b32.xlu0 %v1048_v22, %s9067_s18  ;;  %1095 = vrot.lane.b32.xlu1 %v1048_v22, %s9068_s20  ;;  %v8884_v22 = vld.sshfl [vmem:[%s9269_s30 + $0x16] sm:$0x3 pattern:$0x76325410] }
  0x8b   : > { %1153 = vrot.lane.b32.xlu0 %v1152_v24, %s9067_s18  ;;  %1241 = vrot.lane.b32.xlu1 %v1152_v24, %s9068_s20  ;;  %v9503_v24 = vld [vmem:[#allocation5 + $0x1c] sm:$0xf] }
  0x8f   : > { %1340 = vrot.lane.b32.xlu0 %v1339_v26, %s9067_s18  ;;  %1386 = vrot.lane.b32.xlu1 %v1339_v26, %s9068_s20 }
  0x93   : > { %1486 = vrot.lane.b32.xlu0 %v1485_v28, %s9067_s18  ;;  %1532 = vrot.lane.b32.xlu1 %v1485_v28, %s9068_s20 }
  0x97   : > { %1590 = vrot.lane.b32.xlu0 %v1589_v30, %s9067_s18  ;;  %1678 = vrot.lane.b32.xlu1 %v1589_v30, %s9068_s20 }
  0x9b   : > { %1777 = vrot.lane.b32.xlu0 %v1776_v32, %s9067_s18  ;;  %1823 = vrot.lane.b32.xlu1 %v1776_v32, %s9068_s20  ;;  %v8885_v32 = vld.sshfl [vmem:[%s9269_s30 + $0x18] sm:$0x3 pattern:$0x76325410] }
  0x9f   : > { %1923 = vrot.lane.b32.xlu0 %v1922_v34, %s9067_s18  ;;  %1969 = vrot.lane.b32.xlu1 %v1922_v34, %s9068_s20  ;;  %v9509_v34 = vld [vmem:[#allocation5 + $0x10] sm:$0xf] }
  0xa3   : > { %2027 = vrot.lane.b32.xlu0 %v2026_v36, %s9067_s18  ;;  %2115 = vrot.lane.b32.xlu1 %v2026_v36, %s9068_s20  ;;  %v550_v36 = vsel %vm250_vm1, %v9295_v12, 0 }
  0xa7   : > { %2214 = vrot.lane.b32.xlu0 %v2213_v38, %s9067_s18  ;;  %2260 = vrot.lane.b32.xlu1 %v2213_v38, %s9068_s20 }
  0xab   : > { %2360 = vrot.lane.b32.xlu0 %v2359_v40, %s9067_s18  ;;  %2406 = vrot.lane.b32.xlu1 %v2359_v40, %s9068_s20 }
  0xaf   : > { %2464 = vrot.lane.b32.xlu0 %v2463_v42, %s9067_s18  ;;  %2552 = vrot.lane.b32.xlu1 %v2463_v42, %s9068_s20  ;;  %v8886_v42 = vld.sshfl [vmem:[%s9269_s30 + $0x1a] sm:$0x3 pattern:$0x76325410] }
  0xb3   : > { %2651 = vrot.lane.b32.xlu0 %v2650_v44, %s9067_s18  ;;  %2697 = vrot.lane.b32.xlu1 %v2650_v44, %s9068_s20 }
  0xb7   : > { %2797 = vrot.lane.b32.xlu0 %v2796_v46, %s9067_s18  ;;  %2843 = vrot.lane.b32.xlu1 %v2796_v46, %s9068_s20  ;;  %v8887_v46 = vld.sshfl [vmem:[%s9269_s30 + $0x18] sm:$0x3 pattern:$0x76325410] }
  0xbb   : > { %2901 = vrot.lane.b32.xlu0 %v2900_v48, %s9067_s18  ;;  %2989 = vrot.lane.b32.xlu1 %v2900_v48, %s9068_s20  ;;  %v9534_v48 = vld [vmem:[#allocation5 + $0x18] sm:$0xf] }
  0xbf   : > { %3088 = vrot.lane.b32.xlu0 %v3087_v50, %s9067_s18  ;;  %3134 = vrot.lane.b32.xlu1 %v3087_v50, %s9068_s20 }
  0xc3   : > { %3234 = vrot.lane.b32.xlu0 %v8871_v51, %s9067_s18  ;;  %3280 = vrot.lane.b32.xlu1 %v8871_v51, %s9068_s20 }
  0xc7   : > { %3338 = vrot.lane.b32.xlu0 %v8872_v52, %s9067_s18  ;;  %3426 = vrot.lane.b32.xlu1 %v8872_v52, %s9068_s20  ;;  %v8888_v52 = vld.sshfl [vmem:[%s9269_s30 + $0x1a] sm:$0x3 pattern:$0x76325410] }
  0xcb   : > { %3525 = vrot.lane.b32.xlu0 %v8873_v53, %s9067_s18  ;;  %3571 = vrot.lane.b32.xlu1 %v8873_v53, %s9068_s20 }
  0xcf   : > { %3671 = vrot.lane.b32.xlu0 %v8874_v54, %s9067_s18  ;;  %3717 = vrot.lane.b32.xlu1 %v8874_v54, %s9068_s20 }
  0xd3   : > { %3775 = vrot.lane.b32.xlu0 %v8875_v55, %s9067_s18  ;;  %3863 = vrot.lane.b32.xlu1 %v8875_v55, %s9068_s20  ;;  %v8889_v55 = vld.sshfl [vmem:[%s9269_s30 + $0x1c] sm:$0x3 pattern:$0x76325410] }
  0xd7   : > { %3962 = vrot.lane.b32.xlu0 %v8876_v56, %s9067_s18  ;;  %4008 = vrot.lane.b32.xlu1 %v8876_v56, %s9068_s20  ;;  %v9558_v56 = vld [vmem:[#allocation5 + $0x20] sm:$0xf] }
  0xdb   : > { %4108 = vrot.lane.b32.xlu0 %v8877_v57, %s9067_s18  ;;  %4154 = vrot.lane.b32.xlu1 %v8877_v57, %s9068_s20  ;;  %v762_v57 = vsel %vm250_vm1, %v9306_v16, 0  ;;  %v998_v16 = vsel %vm250_vm1, %v9327_v21, 0 }
  0xdf   : > { %4212 = vrot.lane.b32.xlu0 %v8878_v58, %s9067_s18  ;;  %4300 = vrot.lane.b32.xlu1 %v8878_v58, %s9068_s20 }
  0xe3   : > { %4399 = vrot.lane.b32.xlu0 %v8879_v59, %s9067_s18  ;;  %4445 = vrot.lane.b32.xlu1 %v8879_v59, %s9068_s20  ;;  %v8890_v59 = vld.sshfl [vmem:[%s9269_s30 + $0x1a] sm:$0x3 pattern:$0x76325410] }
  0xe5   : > { %v245_v62 = vpop.permute.xlu0 %244  ;;  %v447_v63 = vpop.permute.xlu1 %446 }
  0xe6   : > { %v252_v0 = vsel %vm250_vm1, %v245_v62, 0  ;;  %v452_v17 = vsel %vm250_vm1, %v447_v63, 0  ;;  %v8891_v62 = vld.sshfl [vmem:[%s9269_s30 + $0x1c] sm:$0x3 pattern:$0x76325410] }
  0xe7   : > { %7879 = vmatpush3.bf16.msra.mxu0 %v252_v0  ;;  %4545 = vrot.lane.b32.xlu0 %v8880_v61, %s9067_s18  ;;  %v852_v63 = vsel %vm250_vm1, %v9318_v18, 0 }
  0xe8   : > { %7890 = vmatprep.subr.bf16.mxu0 %v9065_v4  ;;  %4591 = vrot.lane.b32.xlu1 %v8880_v61, %s9068_s20 }
  0xe9   : > { %v341_v3 = vpop.permute.xlu0 %340  ;;  %v496_v5 = vpop.permute.xlu1 %495 }
  0xea   : > { %v346_v6 = vsel %vm250_vm1, %v341_v3, 0  ;;  %7881 = vmatmul.mubr.msk.bf16.vlgmr.msra.gmra.mrb[0].mxu0 %vm246_vm2, %v9467_v2  ;;  %v501_v7 = vsel %vm250_vm1, %v496_v5, 0  ;;  %v8893_v5 = vld.sshfl [vmem:[%s9269_s30 + $0x1c] sm:$0x3 pattern:$0x76325410] }
  0xeb   : > { %7891 = vmatpush3.bf16.msra.mxu0 %v346_v6  ;;  %7892 = vmatprep.mubr.msk.bf16.mxu0 %vm9066_vm0, %v9065_v4 }
  0xec   : > { %7902 = vmatprep.subr.bf16.mxu0 %v9065_v4  ;;  %7909 = vmatpush3.bf16.msra.mxu1 %v501_v7 }
  0xed   : > { %v602_v10 = vpop.permute.xlu0 %601  ;;  %7920 = vmatprep.subr.bf16.mxu1 %v9065_v4  ;;  %4649 = vrot.lane.b32.xlu0 %v8881_v1, %s9067_s18  ;;  %v651_v30 = vpop.permute.xlu1 %650 }
  0xee   : > { %v607_v11 = vsel %vm250_vm1, %v602_v10, 0  ;;  %4737 = vrot.lane.b32.xlu1 %v8881_v1, %s9068_s20  ;;  %v656_v50 = vsel %vm250_vm1, %v651_v30, 0  ;;  %v8892_v1 = vld.sshfl [vmem:[%s9269_s30 + $0x1e] sm:$0x3 pattern:$0x76325410] }
  0xef   : > { %7911 = vmatmul.mubr.msk.bf16.vlgmr.msra.gmra.mrb[8].mxu1 %vm246_vm2, %v9480_v9  ;;  %v1199_v10 = vsel %vm250_vm1, %v9338_v23, 0  ;;  %v8897_v30 = vld.sshfl [vmem:[%s9269_s30 + $0x20] sm:$0x3 pattern:$0x76325410] }
  0xf0   : > { %7921 = vmatpush3.bf16.msra.mxu1 %v607_v11  ;;  %7922 = vmatprep.mubr.msk.bf16.mxu1 %vm9066_vm0, %v9065_v4 }
  0xf1   : > { %v717_v20 = vpop.permute.xlu0 %716  ;;  %7932 = vmatprep.subr.bf16.mxu1 %v9065_v4  ;;  %4836 = vrot.lane.b32.xlu0 %v8882_v8, %s9067_s18  ;;  %v805_v40 = vpop.permute.xlu1 %804 }
  0xf2   : > { %7893 = vmatmul.mubr.msk.bf16.vlgmr.msra.gmra.mrb[4].mxu0 %vm246_vm2, %v9487_v15  ;;  %4882 = vrot.lane.b32.xlu1 %v8882_v8, %s9068_s20  ;;  %v719_v26 = vsel %vm250_vm1, %v717_v20, 0  ;;  %v807_v12 = vsel %vm250_vm1, %v805_v40, 0  ;;  %v8894_v8 = vld.sshfl [vmem:[%s9269_s30 + $0x1e] sm:$0x3 pattern:$0x76325410] }
  0xf3   : > { %7903 = vmatpush3.bf16.msra.mxu0 %v452_v17  ;;  %7904 = vmatprep.mubr.msk.bf16.mxu0 %vm9066_vm0, %v9065_v4  ;;  %v8896_v20 = vld.sshfl [vmem:[%s9269_s30 + $0x1e] sm:$0x3 pattern:$0x76325410] }
  0xf4   : > { %7914 = vmatprep.subr.bf16.mxu0 %v9065_v4 }
  0xf5   : > { %v904_v28 = vpop.permute.xlu0 %903  ;;  %4982 = vrot.lane.b32.xlu0 %v8883_v13, %s9067_s18  ;;  %v950_v61 = vpop.permute.xlu1 %949 }
  0xf6   : > { %5028 = vrot.lane.b32.xlu1 %v8883_v13, %s9068_s20  ;;  %v906_v53 = vsel %vm250_vm1, %v904_v28, 0  ;;  %v952_v6 = vsel %vm250_vm1, %v950_v61, 0  ;;  %v8895_v13 = vld.sshfl [vmem:[%s9269_s30 + $0x20] sm:$0x3 pattern:$0x76325410] }
  0xf7   : > { %7923 = vmatmul.mubr.msk.bf16.vlgmr.msra.gmra.mrb[12].mxu1 %vm246_vm2, %v9503_v24 }
  0xf8   : > { %7933 = vmatpush3.bf16.msra.mxu1 %v719_v26  ;;  %7934 = vmatprep.mubr.msk.bf16.mxu1 %vm9066_vm0, %v9065_v4 }
  0xf9   : > { %7944 = vmatprep.subr.bf16.mxu1 %v9065_v4  ;;  %v9518_v38 = vpop.permute.xlu0 %1049  ;;  %5086 = vrot.lane.b32.xlu0 %v8884_v22, %s9067_s18  ;;  %v1096_v0 = vpop.permute.xlu1 %1095 }
  0xfa   : > { %7905 = vmatmul.mubr.msk.bf16.vlgmr.msra.gmra.mrb[8].mxu0 %vm246_vm2, %v9509_v34  ;;  %5174 = vrot.lane.b32.xlu1 %v8884_v22, %s9068_s20  ;;  %v1098_v18 = vsel %vm250_vm1, %v1096_v0, 0  ;;  %v1052_v17 = vsel %vm250_vm1, %v9518_v38, 0  ;;  %v1289_v22 = vsel %vm250_vm1, %v9345_v25, 0 }
  0xfb   : > { %7915 = vmatpush3.bf16.msra.mxu0 %v550_v36  ;;  %7916 = vmatprep.mubr.msk.bf16.mxu0 %vm9066_vm0, %v9065_v4  ;;  %v8898_v38 = vld.sshfl [vmem:[%s9269_s30 + $0x22] sm:$0x3 pattern:$0x76325410] }
  0xfc   : > { %7926 = vmatprep.subr.bf16.mxu0 %v9065_v4 }
  0xfd   : > { %5273 = vrot.lane.b32.xlu0 %v8885_v32, %s9067_s18  ;;  %v9530_v44 = vpop.permute.xlu0 %1153  ;;  %v1242_v28 = vpop.permute.xlu1 %1241 }
  0xfe   : > { %5319 = vrot.lane.b32.xlu1 %v8885_v32, %s9068_s20  ;;  %v1156_v32 = vsel %vm250_vm1, %v9530_v44, 0 }
  0xff   : > { %7935 = vmatmul.mubr.msk.bf16.vlgmr.msra.gmra.mrb[16].mxu1 %vm246_vm2, %v9467_v2 }
 0x100   : > { %7945 = vmatpush3.bf16.msra.mxu1 %v807_v12  ;;  %7946 = vmatprep.mubr.msk.bf16.mxu1 %vm9066_vm0, %v9065_v4  ;;  %v1244_v12 = vsel %vm250_vm1, %v1242_v28, 0 }
 0x101   : > { %7956 = vmatprep.subr.bf16.mxu1 %v9065_v4  ;;  %5419 = vrot.lane.b32.xlu0 %v8886_v42, %s9067_s18  ;;  %v9543_v51 = vpop.permute.xlu0 %1340  ;;  %v1387_v36 = vpop.permute.xlu1 %1386 }
 0x102   : > { %7917 = vmatmul.mubr.msk.bf16.vlgmr.msra.gmra.mrb[12].mxu0 %vm246_vm2, %v9534_v48  ;;  %5465 = vrot.lane.b32.xlu1 %v8886_v42, %s9068_s20  ;;  %v1389_v40 = vsel %vm250_vm1, %v1387_v36, 0 }
 0x103   : > { %7927 = vmatpush3.bf16.msra.mxu0 %v656_v50  ;;  %7928 = vmatprep.mubr.msk.bf16.mxu0 %vm9066_vm0, %v9065_v4 }
 0x104   : > { %7938 = vmatprep.subr.bf16.mxu0 %v9065_v4 }
 0x105   : > { %5523 = vrot.lane.b32.xlu0 %v8887_v46, %s9067_s18  ;;  %v9554_v54 = vpop.permute.xlu0 %1486 }
 0x106   : > { %5611 = vrot.lane.b32.xlu1 %v8887_v46, %s9068_s20  ;;  %v217_v46 = vld [vmem:[#allocation7] sm:$0xff]  ;;  %v1489_v50 = vsel %vm250_vm1, %v9554_v54, 0  ;;  %v1533_v54 = vpop.permute.xlu1 %1532 }
 0x107   : > { %7947 = vmatmul.mubr.msk.bf16.vlgmr.msra.gmra.mrb[20].mxu1 %vm246_vm2, %v9487_v15  ;;  %v1535_v61 = vsel %vm250_vm1, %v1533_v54, 0 }
 0x108   : > { %7957 = vmatpush3.bf16.msra.mxu1 %v906_v53  ;;  %7958 = vmatprep.mubr.msk.bf16.mxu1 %vm9066_vm0, %v9065_v4  ;;  %v1343_v53 = vsel %vm250_vm1, %v9543_v51, 0 }
 0x109   : > { %7968 = vmatprep.subr.bf16.mxu1 %v9065_v4  ;;  %5710 = vrot.lane.b32.xlu0 %v8888_v52, %s9067_s18  ;;  %v9568_v58 = vpop.permute.xlu0 %1590 }
 0x10a   : > { %7929 = vmatmul.mubr.msk.bf16.vlgmr.msra.gmra.mrb[16].mxu0 %vm246_vm2, %v9558_v56  ;;  %5756 = vrot.lane.b32.xlu1 %v8888_v52, %s9068_s20  ;;  %v1593_v51 = vsel %vm250_vm1, %v9568_v58, 0 }
 0x10b   : > { %7939 = vmatpush3.bf16.msra.mxu0 %v762_v57  ;;  %7940 = vmatprep.mubr.msk.bf16.mxu0 %vm9066_vm0, %v9065_v4  ;;  %v1435_v57 = vsel %vm250_vm1, %v9352_v27, 0 }
 0x10c   : > { %7950 = vmatprep.subr.bf16.mxu0 %v9065_v4 }
 0x10d   : > { %5856 = vrot.lane.b32.xlu0 %v8889_v55, %s9067_s18  ;;  %v9580_v60 = vpop.permute.xlu0 %1777 }
 0x10e   : > { %5902 = vrot.lane.b32.xlu1 %v8889_v55, %s9068_s20 }
 0x10f   : > { %7959 = vmatmul.mubr.msk.bf16.vlgmr.msra.gmra.mrb[24].mxu1 %vm246_vm2, %v9509_v34 }
 0x110   : > { %7969 = vmatpush3.bf16.msra.mxu1 %v998_v16  ;;  %7970 = vmatprep.mubr.msk.bf16.mxu1 %vm9066_vm0, %v9065_v4  ;;  %v1679_v16 = vpop.permute.xlu1 %1678 }
 0x111   : > { %7980 = vmatprep.subr.bf16.mxu1 %v9065_v4  ;;  %5960 = vrot.lane.b32.xlu0 %v8890_v59, %s9067_s18  ;;  %v9592_v21 = vpop.permute.xlu0 %1923  ;;  %v1681_v27 = vsel %vm250_vm1, %v1679_v16, 0 }
 0x112   : > { %7941 = vmatmul.mubr.msk.bf16.vlgmr.msra.gmra.mrb[20].mxu0 %vm246_vm2, %v9302_v14  ;;  %6048 = vrot.lane.b32.xlu1 %v8890_v59, %s9068_s20 }
 0x113   : > { %7951 = vmatpush3.bf16.msra.mxu0 %v852_v63  ;;  %7952 = vmatprep.mubr.msk.bf16.mxu0 %vm9066_vm0, %v9065_v4 }
 0x114   : > { %7962 = vmatprep.subr.bf16.mxu0 %v9065_v4 }
 0x115   : > { %6147 = vrot.lane.b32.xlu0 %v8891_v62, %s9067_s18  ;;  %v9603_v3 = vpop.permute.xlu0 %2027 }
 0x116   : > { %6193 = vrot.lane.b32.xlu1 %v8891_v62, %s9068_s20 }
 0x117   : > { %7971 = vmatmul.mubr.msk.bf16.vlgmr.msra.gmra.mrb[28].mxu1 %vm246_vm2, %v9534_v48 }
 0x118   : > { %7981 = vmatpush3.bf16.msra.mxu1 %v1098_v18  ;;  %7982 = vmatprep.mubr.msk.bf16.mxu1 %vm9066_vm0, %v9065_v4 }
 0x119   : > { %7992 = vmatprep.subr.bf16.mxu1 %v9065_v4  ;;  %6293 = vrot.lane.b32.xlu0 %v8892_v1, %s9067_s18  ;;  %v9614_v7 = vpop.permute.xlu0 %2214 }
 0x11a   : > { %7953 = vmatmul.mubr.msk.bf16.vlgmr.msra.gmra.mrb[24].mxu0 %vm246_vm2, %v9320_v19  ;;  %6339 = vrot.lane.b32.xlu1 %v8892_v1, %s9068_s20  ;;  %v1780_v1 = vsel %vm250_vm1, %v9580_v60, 0  ;;  %v2217_v16 = vsel %vm250_vm1, %v9614_v7, 0 }
 0x11b   : > { %7963 = vmatpush3.bf16.msra.mxu0 %v952_v6  ;;  %7964 = vmatprep.mubr.msk.bf16.mxu0 %vm9066_vm0, %v9065_v4  ;;  %v1636_v6 = vsel %vm250_vm1, %v9359_v29, 0 }
 0x11c   : > { %7974 = vmatprep.subr.bf16.mxu0 %v9065_v4 }
 0x11d   : > { %6397 = vrot.lane.b32.xlu0 %v8893_v5, %s9067_s18  ;;  %v9626_v11 = vpop.permute.xlu0 %2360 }
 0x11e   : > { %6485 = vrot.lane.b32.xlu1 %v8893_v5, %s9068_s20 }
 0x11f   : > { %7983 = vmatmul.mubr.msk.bf16.vlgmr.msra.gmra.mrb[32].mxu1 %vm246_vm2, %v9558_v56 }
 0x120   : > { %7993 = vmatpush3.bf16.msra.mxu1 %v1199_v10  ;;  %7994 = vmatprep.mubr.msk.bf16.mxu1 %vm9066_vm0, %v9065_v4  ;;  %v1872_v10 = vsel %vm250_vm1, %v9373_v33, 0 }
 0x121   : > { %8004 = vmatprep.subr.bf16.mxu1 %v9065_v4  ;;  %6584 = vrot.lane.b32.xlu0 %v8894_v8, %s9067_s18  ;;  %v9638_v23 = vpop.permute.xlu0 %2464 }
 0x122   : > { %7965 = vmatmul.mubr.msk.bf16.vlgmr.msra.gmra.mrb[28].mxu0 %vm246_vm2, %v9480_v9  ;;  %6630 = vrot.lane.b32.xlu1 %v8894_v8, %s9068_s20  ;;  %v2467_v7 = vsel %vm250_vm1, %v9638_v23, 0 }
 0x123   : > { %7975 = vmatpush3.bf16.msra.mxu0 %v1052_v17  ;;  %7976 = vmatprep.mubr.msk.bf16.mxu0 %vm9066_vm0, %v9065_v4  ;;  %v1824_v17 = vpop.permute.xlu1 %1823 }
 0x124   : > { %7986 = vmatprep.subr.bf16.mxu0 %v9065_v4 }
 0x125   : > { %6730 = vrot.lane.b32.xlu0 %v8895_v13, %s9067_s18  ;;  %v9650_v26 = vpop.permute.xlu0 %2651 }
 0x126   : > { %6776 = vrot.lane.b32.xlu1 %v8895_v13, %s9068_s20 }
 0x127   : > { %7995 = vmatmul.mubr.msk.bf16.vlgmr.msra.gmra.mrb[36].mxu1 %vm246_vm2, %v9302_v14  ;;  %v1970_v33 = vpop.permute.xlu1 %1969 }
 0x128   : > { %8005 = vmatpush3.bf16.msra.mxu1 %v1289_v22  ;;  %8006 = vmatprep.mubr.msk.bf16.mxu1 %vm9066_vm0, %v9065_v4  ;;  %v1726_v22 = vsel %vm250_vm1, %v9366_v31, 0  ;;  %v1972_v31 = vsel %vm250_vm1, %v1970_v33, 0  ;;  %v2947_v33 = vsel %vm250_vm1, %v9422_v47, 0  ;;  %v3037_v47 = vsel %vm250_vm1, %v9429_v49, 0 }
 0x129   : > { %8016 = vmatprep.subr.bf16.mxu1 %v9065_v4  ;;  %6834 = vrot.lane.b32.xlu0 %v8896_v20, %s9067_s18  ;;  %v9662_v25 = vpop.permute.xlu0 %2797 }
 0x12a   : > { %7977 = vmatmul.mubr.msk.bf16.vlgmr.msra.gmra.mrb[32].mxu0 %vm246_vm2, %v9503_v24  ;;  %6922 = vrot.lane.b32.xlu1 %v8896_v20, %s9068_s20 }
 0x12b   : > { %7987 = vmatpush3.bf16.msra.mxu0 %v1156_v32  ;;  %7988 = vmatprep.mubr.msk.bf16.mxu0 %vm9066_vm0, %v9065_v4  ;;  %v1826_v32 = vsel %vm250_vm1, %v1824_v17, 0 }
 0x12c   : > { %7998 = vmatprep.subr.bf16.mxu0 %v9065_v4 }
 0x12d   : > { %7021 = vrot.lane.b32.xlu0 %v8897_v30, %s9067_s18  ;;  %v9673_v42 = vpop.permute.xlu0 %2901 }
 0x12e   : > { %7067 = vrot.lane.b32.xlu1 %v8897_v30, %s9068_s20 }
 0x12f   : > { %8007 = vmatmul.mubr.msk.bf16.vlgmr.msra.gmra.mrb[40].mxu1 %vm246_vm2, %v9320_v19 }
 0x130   : > { %8017 = vmatpush3.bf16.msra.mxu1 %v1389_v40  ;;  %8018 = vmatprep.mubr.msk.bf16.mxu1 %vm9066_vm0, %v9065_v4  ;;  %v1926_v40 = vsel %vm250_vm1, %v9592_v21, 0  ;;  %v2116_v21 = vpop.permute.xlu1 %2115 }
 0x131   : > { %8028 = vmatprep.subr.bf16.mxu1 %v9065_v4  ;;  %7167 = vrot.lane.b32.xlu0 %v8898_v38, %s9067_s18  ;;  %v9683_v44 = vpop.permute.xlu0 %3088 }
 0x132   : > { %7989 = vmatmul.mubr.msk.bf16.vlgmr.msra.gmra.mrb[36].mxu0 %vm246_vm2, %v9467_v2  ;;  %7213 = vrot.lane.b32.xlu1 %v8898_v38, %s9068_s20  ;;  %v2073_v38 = vsel %vm250_vm1, %v9380_v35, 0  ;;  %v2163_v35 = vsel %vm250_vm1, %v9387_v37, 0 }
 0x133   : > { %7999 = vmatpush3.bf16.msra.mxu0 %v1244_v12  ;;  %8000 = vmatprep.mubr.msk.bf16.mxu0 %vm9066_vm0, %v9065_v4 }
 0x134   : > { %8010 = vmatprep.subr.bf16.mxu0 %v9065_v4 }
 0x135   : > { %701 = vperm.xlu0 %8824, %v217_v46   ;;  %v9693_v52 = vpop.permute.xlu0 %3234  ;;  %v2030_v46 = vsel %vm250_vm1, %v9603_v3, 0 }
 0x137   : > { %8019 = vmatmul.mubr.msk.bf16.vlgmr.msra.gmra.mrb[44].mxu1 %vm246_vm2, %v9480_v9 }
 0x138   : > { %8029 = vmatpush3.bf16.msra.mxu1 %v1489_v50  ;;  %8030 = vmatprep.mubr.msk.bf16.mxu1 %vm9066_vm0, %v9065_v4 }
 0x139   : > { %8040 = vmatprep.subr.bf16.mxu1 %v9065_v4  ;;  %v9704_v55 = vpop.permute.xlu0 %3338 }
 0x13a   : > { %8001 = vmatmul.mubr.msk.bf16.vlgmr.msra.gmra.mrb[40].mxu0 %vm246_vm2, %v9487_v15 }
 0x13b   : > { %8011 = vmatpush3.bf16.msra.mxu0 %v1343_v53  ;;  %8012 = vmatprep.mubr.msk.bf16.mxu0 %vm9066_vm0, %v9065_v4  ;;  %v2261_v53 = vpop.permute.xlu1 %2260 }
 0x13c   : > { %8022 = vmatprep.subr.bf16.mxu0 %v9065_v4  ;;  %v2263_v37 = vsel %vm250_vm1, %v2261_v53, 0 }
 0x13d   : > { %v9717_v59 = vpop.permute.xlu0 %3525 }
 0x13f   : > { %8031 = vmatmul.mubr.msk.bf16.vlgmr.msra.gmra.mrb[48].mxu1 %vm246_vm2, %v9503_v24 }
 0x140   : > { %8041 = vmatpush3.bf16.msra.mxu1 %v1593_v51  ;;  %8042 = vmatprep.mubr.msk.bf16.mxu1 %vm9066_vm0, %v9065_v4  ;;  %v2118_v51 = vsel %vm250_vm1, %v2116_v21, 0 }
 0x141   : > { %8052 = vmatprep.subr.bf16.mxu1 %v9065_v4  ;;  %v9726_v58 = vpop.permute.xlu0 %3671 }
 0x142   : > { %8013 = vmatmul.mubr.msk.bf16.vlgmr.msra.gmra.mrb[44].mxu0 %vm246_vm2, %v9509_v34 }
 0x143   : > { %8023 = vmatpush3.bf16.msra.mxu0 %v1435_v57  ;;  %8024 = vmatprep.mubr.msk.bf16.mxu0 %vm9066_vm0, %v9065_v4  ;;  %v9738_v62 = vpop.f32.mrb[0].mxu1  ;;  %v2363_v57 = vsel %vm250_vm1, %v9626_v11, 0  ;;  %v2407_v11 = vpop.permute.xlu1 %2406 }
 0x144   : > { %8034 = vmatprep.subr.bf16.mxu0 %v9065_v4  ;;  %v7888_v0 = vpop.f32.mrb[1].mxu1 }
 0x145   : > { %v9741_v63 = vpop.permute.xlu0 %3775  ;;  %v337_v18 = vpop.f32.mrb[2].mxu1 }
 0x146   : > { %v7889_v5 = vpop.f32.mrb[3].mxu1  ;;  %v2409_v18 = vsel %vm250_vm1, %v2407_v11, 0 }
 0x147   : > { %8043 = vmatmul.mubr.msk.bf16.vlgmr.msra.gmra.mrb[52].mxu1 %vm246_vm2, %v9467_v2 }
 0x148   : > { %8053 = vmatpush3.bf16.msra.mxu1 %v1681_v27  ;;  %8054 = vmatprep.mubr.msk.bf16.mxu1 %vm9066_vm0, %v9065_v4 }
 0x149   : > { %8064 = vmatprep.subr.bf16.mxu1 %v9065_v4  ;;  %v9754_v8 = vpop.permute.xlu0 %3962 }
 0x14a   : > { %8025 = vmatmul.mubr.msk.bf16.vlgmr.msra.gmra.mrb[48].mxu0 %vm246_vm2, %v9534_v48 }
 0x14b   : > { %8035 = vmatpush3.bf16.msra.mxu0 %v1535_v61  ;;  %8036 = vmatprep.mubr.msk.bf16.mxu0 %vm9066_vm0, %v9065_v4  ;;  %v9758_v60 = vpop.f32.mrb[4].mxu1  ;;  %v2309_v61 = vsel %vm250_vm1, %v9394_v39, 0 }
 0x14c   : > { %8046 = vmatprep.subr.bf16.mxu0 %v9065_v4  ;;  %v7900_v29 = vpop.f32.mrb[5].mxu1 }
 0x14d   : > { %v434_v13 = vpop.f32.mrb[6].mxu1  ;;  %v9769_v28 = vpop.permute.xlu0 %4108  ;;  %v2510_v29 = vsel %vm250_vm1, %v9401_v41, 0  ;;  %v2746_v41 = vsel %vm250_vm1, %v9415_v45, 0 }
 0x14e   : > { %v7901_v20 = vpop.f32.mrb[7].mxu1  ;;  %v2600_v13 = vsel %vm250_vm1, %v9408_v43, 0 }
 0x14f   : > { %8055 = vmatmul.mubr.msk.bf16.vlgmr.msra.gmra.mrb[56].mxu1 %vm246_vm2, %v9487_v15 }
 0x150   : > { %8065 = vmatpush3.bf16.msra.mxu1 %v1780_v1  ;;  %8066 = vmatprep.mubr.msk.bf16.mxu1 %vm9066_vm0, %v9065_v4  ;;  %v2553_v1 = vpop.permute.xlu1 %2552 }
 0x151   : > { %8076 = vmatprep.subr.bf16.mxu1 %v9065_v4  ;;  %v9778_v30 = vpop.permute.xlu0 %4212  ;;  %v2555_v39 = vsel %vm250_vm1, %v2553_v1, 0  ;;  %v3237_v1 = vsel %vm250_vm1, %v9693_v52, 0 }
 0x152   : > { %8037 = vmatmul.mubr.msk.bf16.vlgmr.msra.gmra.mrb[52].mxu0 %vm246_vm2, %v9558_v56 }
 0x153   : > { %8047 = vmatpush3.bf16.msra.mxu0 %v1636_v6  ;;  %8048 = vmatprep.mubr.msk.bf16.mxu0 %vm9066_vm0, %v9065_v4  ;;  %v2654_v6 = vsel %vm250_vm1, %v9650_v26, 0 }
 0x154   : > { %8058 = vmatprep.subr.bf16.mxu0 %v9065_v4  ;;  %v2698_v26 = vpop.permute.xlu1 %2697 }
 0x155   : > { %v9791_v36 = vpop.permute.xlu0 %4399 }
 0x157   : > { %8067 = vmatmul.mubr.msk.bf16.vlgmr.msra.gmra.mrb[60].mxu1 %vm246_vm2, %v9509_v34 }
 0x158   : > { %8077 = vmatpush3.bf16.msra.mxu1 %v1872_v10  ;;  %8078 = vmatprep.mubr.msk.bf16.mxu1 %vm9066_vm0, %v9065_v4  ;;  %v2844_v20 = vpop.permute.xlu1 %2843 }
 0x159   : > { %8088 = vmatprep.subr.bf16.mxu1 %v9065_v4  ;;  %v9804_v12 = vpop.permute.xlu0 %4545  ;;  %v2846_v43 = vsel %vm250_vm1, %v2844_v20, 0 }
 0x15a   : > { %8049 = vmatmul.mubr.msk.bf16.vlgmr.msra.gmra.mrb[56].mxu0 %vm246_vm2, %v9302_v14 }
 0x15b   : > { %8059 = vmatpush3.bf16.msra.mxu0 %v1726_v22  ;;  %8060 = vmatprep.mubr.msk.bf16.mxu0 %vm9066_vm0, %v9065_v4  ;;  %v2700_v22 = vsel %vm250_vm1, %v2698_v26, 0  ;;  %v3091_v26 = vsel %vm250_vm1, %v9683_v44, 0 }
 0x15c   : > { %8070 = vmatprep.subr.bf16.mxu0 %v9065_v4 }
 0x15f   : > { %8079 = vmatmul.mubr.msk.bf16.vlgmr.msra.gmra.mrb[64].mxu1 %vm246_vm2, %v9534_v48  ;;  %v9817_v50 = vpop.permute.xlu0 %4649 }
 0x160   : > { %8089 = vmatpush3.bf16.msra.mxu1 %v1972_v31  ;;  %8090 = vmatprep.mubr.msk.bf16.mxu1 %vm9066_vm0, %v9065_v4  ;;  %v2800_v31 = vsel %vm250_vm1, %v9662_v25, 0  ;;  %v2990_v25 = vpop.permute.xlu1 %2989 }
 0x161   : > { %8100 = vmatprep.subr.bf16.mxu1 %v9065_v4 }
 0x162   : > { %8061 = vmatmul.mubr.msk.bf16.vlgmr.msra.gmra.mrb[60].mxu0 %vm246_vm2, %v9320_v19 }
 0x163   : > { %8071 = vmatpush3.bf16.msra.mxu0 %v1826_v32  ;;  %8072 = vmatprep.mubr.msk.bf16.mxu0 %vm9066_vm0, %v9065_v4  ;;  %v9826_v3 = vpop.permute.xlu0 %4836  ;;  %v9955_v32 = vld [vmem:[#allocation5] sm:$0xf] }
 0x164   : > { %8082 = vmatprep.subr.bf16.mxu0 %v9065_v4  ;;  %v3135_v49 = vpop.permute.xlu1 %3134 }
 0x167   : > { %8091 = vmatmul.mubr.msk.bf16.vlgmr.msra.gmra.mrb[68].mxu1 %vm246_vm2, %v9558_v56  ;;  %v9839_v54 = vpop.permute.xlu0 %4982 }
 0x168   : > { %8101 = vmatpush3.bf16.msra.mxu1 %v2073_v38  ;;  %8102 = vmatprep.mubr.msk.bf16.mxu1 %vm9066_vm0, %v9065_v4  ;;  %v2904_v38 = vsel %vm250_vm1, %v9673_v42, 0  ;;  %v3137_v42 = vsel %vm250_vm1, %v3135_v49, 0 }
 0x169   : > { %8112 = vmatprep.subr.bf16.mxu1 %v9065_v4 }
 0x16a   : > { %8073 = vmatmul.mubr.msk.bf16.vlgmr.msra.gmra.mrb[64].mxu0 %vm246_vm2, %v9480_v9 }
 0x16b   : > { %8083 = vmatpush3.bf16.msra.mxu0 %v1926_v40  ;;  %8084 = vmatprep.mubr.msk.bf16.mxu0 %vm9066_vm0, %v9065_v4  ;;  %v9852_v27 = vpop.permute.xlu0 %5086 }
 0x16c   : > { %8094 = vmatprep.subr.bf16.mxu0 %v9065_v4 }
 0x16f   : > { %8103 = vmatmul.mubr.msk.bf16.vlgmr.msra.gmra.mrb[72].mxu1 %vm246_vm2, %v9302_v14  ;;  %v9865_v0 = vpop.permute.xlu0 %5273 }
 0x170   : > { %8113 = vmatpush3.bf16.msra.mxu1 %v2163_v35  ;;  %8114 = vmatprep.mubr.msk.bf16.mxu1 %vm9066_vm0, %v9065_v4 }
 0x171   : > { %8124 = vmatprep.subr.bf16.mxu1 %v9065_v4 }
 0x172   : > { %8085 = vmatmul.mubr.msk.bf16.vlgmr.msra.gmra.mrb[68].mxu0 %vm246_vm2, %v9503_v24 }
 0x173   : > { %8095 = vmatpush3.bf16.msra.mxu0 %v2030_v46  ;;  %8096 = vmatprep.mubr.msk.bf16.mxu0 %vm9066_vm0, %v9065_v4  ;;  %v9874_v23 = vpop.permute.xlu0 %5419 }
 0x174   : > { %8106 = vmatprep.subr.bf16.mxu0 %v9065_v4 }
 0x177   : > { %8115 = vmatmul.mubr.msk.bf16.vlgmr.msra.gmra.mrb[76].mxu1 %vm246_vm2, %v9320_v19  ;;  %v9887_v5 = vpop.permute.xlu0 %5523 }
 0x178   : > { %8125 = vmatpush3.bf16.msra.mxu1 %v2263_v37  ;;  %8126 = vmatprep.mubr.msk.bf16.mxu1 %vm9066_vm0, %v9065_v4 }
 0x179   : > { %8136 = vmatprep.subr.bf16.mxu1 %v9065_v4 }
 0x17a   : > { %8097 = vmatmul.mubr.msk.bf16.vlgmr.msra.gmra.mrb[72].mxu0 %vm246_vm2, %v9467_v2 }
 0x17b   : > { %8107 = vmatpush3.bf16.msra.mxu0 %v2118_v51  ;;  %8108 = vmatprep.mubr.msk.bf16.mxu0 %vm9066_vm0, %v9065_v4  ;;  %v9900_v10 = vpop.permute.xlu0 %5710  ;;  %v9975_v51 = vld [vmem:[#allocation5 + $0xc] sm:$0xf] }
 0x17c   : > { %8118 = vmatprep.subr.bf16.mxu0 %v9065_v4 }
 0x17f   : > { %8127 = vmatmul.mubr.msk.bf16.vlgmr.msra.gmra.mrb[80].mxu1 %vm246_vm2, %v9480_v9  ;;  %v9913_v17 = vpop.permute.xlu0 %5856 }
 0x180   : > { %8137 = vmatpush3.bf16.msra.mxu1 %v2363_v57  ;;  %8138 = vmatprep.mubr.msk.bf16.mxu1 %vm9066_vm0, %v9065_v4 }
 0x181   : > { %8148 = vmatprep.subr.bf16.mxu1 %v9065_v4 }
 0x182   : > { %8109 = vmatmul.mubr.msk.bf16.vlgmr.msra.gmra.mrb[76].mxu0 %vm246_vm2, %v9487_v15 }
 0x183   : > { %8119 = vmatpush3.bf16.msra.mxu0 %v2217_v16  ;;  %8120 = vmatprep.mubr.msk.bf16.mxu0 %vm9066_vm0, %v9065_v4  ;;  %v9922_v45 = vpop.permute.xlu0 %5960  ;;  %v2992_v16 = vsel %vm250_vm1, %v2990_v25, 0  ;;  %v3281_v25 = vpop.permute.xlu1 %3280 }
 0x184   : > { %8130 = vmatprep.subr.bf16.mxu0 %v9065_v4 }
 0x187   : > { %8139 = vmatmul.mubr.msk.bf16.vlgmr.msra.gmra.mrb[84].mxu1 %vm246_vm2, %v9503_v24 }
 0x188   : > { %8149 = vmatpush3.bf16.msra.mxu1 %v2467_v7  ;;  %8150 = vmatprep.mubr.msk.bf16.mxu1 %vm9066_vm0, %v9065_v4 }
 0x189   : > { %8160 = vmatprep.subr.bf16.mxu1 %v9065_v4 }
 0x18a   : > { %8121 = vmatmul.mubr.msk.bf16.vlgmr.msra.gmra.mrb[80].mxu0 %vm246_vm2, %v9509_v34 }
 0x18b   : > { %8131 = vmatpush3.bf16.msra.mxu0 %v2309_v61  ;;  %8132 = vmatprep.mubr.msk.bf16.mxu0 %vm9066_vm0, %v9065_v4 }
 0x18c   : > { %8142 = vmatprep.subr.bf16.mxu0 %v9065_v4 }
 0x18f   : > { %8151 = vmatmul.mubr.msk.bf16.vlgmr.msra.gmra.mrb[88].mxu1 %vm246_vm2, %v9467_v2 }
 0x190   : > { %8161 = vmatpush3.bf16.msra.mxu1 %v2555_v39  ;;  %8162 = vmatprep.mubr.msk.bf16.mxu1 %vm9066_vm0, %v9065_v4 }
 0x191   : > { %8172 = vmatprep.subr.bf16.mxu1 %v9065_v4 }
 0x192   : > { %8133 = vmatmul.mubr.msk.bf16.vlgmr.msra.gmra.mrb[84].mxu0 %vm246_vm2, %v9534_v48 }
 0x193   : > { %8143 = vmatpush3.bf16.msra.mxu0 %v2409_v18  ;;  %8144 = vmatprep.mubr.msk.bf16.mxu0 %vm9066_vm0, %v9065_v4 }
 0x194   : > { %8154 = vmatprep.subr.bf16.mxu0 %v9065_v4 }
 0x197   : > { %8163 = vmatmul.mubr.msk.bf16.vlgmr.msra.gmra.mrb[92].mxu1 %vm246_vm2, %v9487_v15 }
 0x198   : > { %8173 = vmatpush3.bf16.msra.mxu1 %v2654_v6  ;;  %8174 = vmatprep.mubr.msk.bf16.mxu1 %vm9066_vm0, %v9065_v4 }
 0x199   : > { %8184 = vmatprep.subr.bf16.mxu1 %v9065_v4 }
 0x19a   : > { %8145 = vmatmul.mubr.msk.bf16.vlgmr.msra.gmra.mrb[88].mxu0 %vm246_vm2, %v9558_v56 }
 0x19b   : > { %8155 = vmatpush3.bf16.msra.mxu0 %v2510_v29  ;;  %8156 = vmatprep.mubr.msk.bf16.mxu0 %vm9066_vm0, %v9065_v4 }
 0x19c   : > { %8166 = vmatprep.subr.bf16.mxu0 %v9065_v4 }
 0x19f   : > { %8175 = vmatmul.mubr.msk.bf16.vlgmr.msra.gmra.mrb[96].mxu1 %vm246_vm2, %v9509_v34 }
 0x1a0   : > { %8185 = vmatpush3.bf16.msra.mxu1 %v2746_v41  ;;  %8186 = vmatprep.mubr.msk.bf16.mxu1 %vm9066_vm0, %v9065_v4 }
 0x1a1   : > { %8196 = vmatprep.subr.bf16.mxu1 %v9065_v4 }
 0x1a2   : > { %8157 = vmatmul.mubr.msk.bf16.vlgmr.msra.gmra.mrb[92].mxu0 %vm246_vm2, %v9302_v14  ;;  %v9935_v14 = vpop.permute.xlu0 %6147 }
 0x1a3   : > { %8167 = vmatpush3.bf16.msra.mxu0 %v2600_v13  ;;  %8168 = vmatprep.mubr.msk.bf16.mxu0 %vm9066_vm0, %v9065_v4 }
 0x1a4   : > { %8178 = vmatprep.subr.bf16.mxu0 %v9065_v4 }
 0x1a7   : > { %8187 = vmatmul.mubr.msk.bf16.vlgmr.msra.gmra.mrb[100].mxu1 %vm246_vm2, %v9534_v48 }
 0x1a8   : > { %8197 = vmatpush3.bf16.msra.mxu1 %v2846_v43  ;;  %8198 = vmatprep.mubr.msk.bf16.mxu1 %vm9066_vm0, %v9065_v4 }
 0x1a9   : > { %8208 = vmatprep.subr.bf16.mxu1 %v9065_v4 }
 0x1aa   : > { %8169 = vmatmul.mubr.msk.bf16.vlgmr.msra.gmra.mrb[96].mxu0 %vm246_vm2, %v9320_v19  ;;  %v9948_v19 = vpop.permute.xlu0 %6293 }
 0x1ab   : > { %8179 = vmatpush3.bf16.msra.mxu0 %v2700_v22  ;;  %8180 = vmatprep.mubr.msk.bf16.mxu0 %vm9066_vm0, %v9065_v4 }
 0x1ac   : > { %8190 = vmatprep.subr.bf16.mxu0 %v9065_v4 }
 0x1ae   : > { %v9961_v40 = vpop.permute.xlu0 %6397 }
 0x1af   : > { %8199 = vmatmul.mubr.msk.bf16.vlgmr.msra.gmra.mrb[104].mxu1 %vm246_vm2, %v9558_v56 }
 0x1b0   : > { %8209 = vmatpush3.bf16.msra.mxu1 %v2947_v33  ;;  %8210 = vmatprep.mubr.msk.bf16.mxu1 %vm9066_vm0, %v9065_v4 }
 0x1b1   : > { %8220 = vmatprep.subr.bf16.mxu1 %v9065_v4 }
 0x1b2   : > { %8181 = vmatmul.mubr.msk.bf16.vlgmr.msra.gmra.mrb[100].mxu0 %vm246_vm2, %v9480_v9  ;;  %v9973_v53 = vpop.permute.xlu0 %6584 }
 0x1b3   : > { %8191 = vmatpush3.bf16.msra.mxu0 %v2800_v31  ;;  %8192 = vmatprep.mubr.msk.bf16.mxu0 %vm9066_vm0, %v9065_v4 }
 0x1b4   : > { %8202 = vmatprep.subr.bf16.mxu0 %v9065_v4 }
 0x1b6   : > { %v9988_v11 = vpop.permute.xlu0 %6730 }
 0x1b7   : > { %8211 = vmatmul.mubr.msk.bf16.vlgmr.msra.gmra.mrb[108].mxu1 %vm246_vm2, %v9955_v32 }
 0x1b8   : > { %8221 = vmatpush3.bf16.msra.mxu1 %v3037_v47  ;;  %8222 = vmatprep.mubr.msk.bf16.mxu1 %vm9066_vm0, %v9065_v4 }
 0x1b9   : > { %8232 = vmatprep.subr.bf16.mxu1 %v9065_v4 }
 0x1ba   : > { %8193 = vmatmul.mubr.msk.bf16.vlgmr.msra.gmra.mrb[104].mxu0 %vm246_vm2, %v9503_v24  ;;  %v10002_v52 = vpop.permute.xlu0 %6834 }
 0x1bb   : > { %8203 = vmatpush3.bf16.msra.mxu0 %v2904_v38  ;;  %8204 = vmatprep.mubr.msk.bf16.mxu0 %vm9066_vm0, %v9065_v4 }
 0x1bc   : > { %8214 = vmatprep.subr.bf16.mxu0 %v9065_v4 }
 0x1bd   : > { %v288_v35 = vpop.f32.mrb[0].mxu0 }
 0x1be   : > { %v335_v21 = vadd.f32 %v9738_v62, %v288_v35  ;;  %v7882_v46 = vpop.f32.mrb[1].mxu0 }
 0x1bf   : > { %v291_v37 = vpop.f32.mrb[2].mxu0  ;;  %8223 = vmatmul.mubr.msk.bf16.vlgmr.msra.gmra.mrb[112].mxu1 %vm246_vm2, %v9975_v51  ;;  %v10013_v46 = vpop.permute.xlu0 %7021 }
 0x1c0   : > { %v7883_v57 = vpop.f32.mrb[3].mxu0  ;;  %8233 = vmatpush3.bf16.msra.mxu1 %v3137_v42  ;;  %8234 = vmatprep.mubr.msk.bf16.mxu1 %vm9066_vm0, %v9065_v4  ;;  %v8827_v42 = vld [vmem:[%s9269_s30 + $0x10] sm:$0x3]  ;;  %v3427_v37 = vpop.permute.xlu1 %3426 }
 0x1c1   : > { %8244 = vmatprep.subr.bf16.mxu1 %v9065_v4 }
 0x1c2   : > { %8205 = vmatmul.mubr.msk.bf16.vlgmr.msra.gmra.mrb[108].mxu0 %vm246_vm2, %v9467_v2  ;;  %v537_v62 = vpop.f32.mrb[8].mxu1 }
 0x1c3   : > { %8215 = vmatpush3.bf16.msra.mxu0 %v2992_v16  ;;  %8216 = vmatprep.mubr.msk.bf16.mxu0 %vm9066_vm0, %v9065_v4  ;;  %v7912_v7 = vpop.f32.mrb[9].mxu1 }
 0x1c4   : > { %8226 = vmatprep.subr.bf16.mxu0 %v9065_v4  ;;  %v540_v61 = vpop.f32.mrb[10].mxu1  ;;  %v3429_v7 = vsel %vm250_vm1, %v3427_v37, 0 }
 0x1c5   : > { %v382_v39 = vpop.f32.mrb[4].mxu0  ;;  %v7913_v18 = vpop.f32.mrb[11].mxu1 }
 0x1c6   : > { %v388_v6 = vadd.f32 %v382_v39, %v335_v21  ;;  %v7894_v29 = vpop.f32.mrb[5].mxu0  ;;  %v3183_v21 = vsel %vm250_vm1, %v8827_v42, 0  ;;  %v10024_v39 = vpop.permute.xlu0 %7167 }
 0x1c7   : > { %v385_v41 = vpop.f32.mrb[6].mxu0  ;;  %8235 = vmatmul.mubr.msk.bf16.vlgmr.msra.gmra.mrb[116].mxu1 %vm246_vm2, %v9480_v9 }
 0x1c8   : > { %v437_v13 = vadd.f32 %v9758_v60, %v388_v6  ;;  %v7895_v20 = vpop.f32.mrb[7].mxu0  ;;  %8245 = vmatpush3.bf16.msra.mxu1 %v3237_v1  ;;  %8246 = vmatprep.mubr.msk.bf16.mxu1 %vm9066_vm0, %v9065_v4  ;;  %v3341_v60 = vsel %vm250_vm1, %v9704_v55, 0  ;;  %v3283_v41 = vsel %vm250_vm1, %v3281_v25, 0  ;;  %v8828_v25 = vld [vmem:[%s9269_s30 + $0xe] sm:$0x3] }
 0x1c9   : > { %8256 = vmatprep.subr.bf16.mxu1 %v9065_v4 }
 0x1ca   : > { %8217 = vmatmul.mubr.msk.bf16.vlgmr.msra.gmra.mrb[112].mxu0 %vm246_vm2, %v9487_v15  ;;  %v643_v43 = vpop.f32.mrb[12].mxu1 }
 0x1cb   : > { %8227 = vmatpush3.bf16.msra.mxu0 %v3091_v26  ;;  %8228 = vmatprep.mubr.msk.bf16.mxu0 %vm9066_vm0, %v9065_v4  ;;  %v7924_v9 = vpop.f32.mrb[13].mxu1 }
 0x1cc   : > { %8238 = vmatprep.subr.bf16.mxu0 %v9065_v4  ;;  %v646_v44 = vpop.f32.mrb[14].mxu1 }
 0x1cd   : > { %v488_v22 = vpop.f32.mrb[8].mxu0  ;;  %v7925_v33 = vpop.f32.mrb[15].mxu1 }
 0x1ce   : > { %v494_v31 = vadd.f32 %v488_v22, %v437_v13  ;;  %v7906_v47 = vpop.f32.mrb[9].mxu0  ;;  %v10037_v13 = vpop.permute.xlu0 %701 }
 0x1cf   : > { %v491_v38 = vpop.f32.mrb[10].mxu0  ;;  %8247 = vmatmul.mubr.msk.bf16.vlgmr.msra.gmra.mrb[120].mxu1 %vm246_vm2, %v9503_v24 }
 0x1d0   : > { %v543_v49 = vadd.f32 %v537_v62, %v494_v31  ;;  %v7907_v35 = vpop.f32.mrb[11].mxu0  ;;  %8257 = vmatpush3.bf16.msra.mxu1 %v3341_v60  ;;  %8258 = vmatprep.mubr.msk.bf16.mxu1 %vm9066_vm0, %v9065_v4  ;;  %v3384_v38 = vsel %vm250_vm1, %v8828_v25, 0 }
 0x1d1   : > { %8268 = vmatprep.subr.bf16.mxu1 %v9065_v4 }
 0x1d2   : > { %8229 = vmatmul.mubr.msk.bf16.vlgmr.msra.gmra.mrb[116].mxu0 %vm246_vm2, %v9509_v34  ;;  %v755_v55 = vpop.f32.mrb[16].mxu1 }
 0x1d3   : > { %8239 = vmatpush3.bf16.msra.mxu0 %v3183_v21  ;;  %8240 = vmatprep.mubr.msk.bf16.mxu0 %vm9066_vm0, %v9065_v4  ;;  %v7936_v24 = vpop.f32.mrb[17].mxu1  ;;  %v8829_v21 = vld [vmem:[%s9269_s30 + $0x12] sm:$0x3] }
 0x1d4   : > { %8250 = vmatprep.subr.bf16.mxu0 %v9065_v4  ;;  %v758_v57 = vpop.f32.mrb[18].mxu1  ;;  %v3620_v37 = vsel %vm250_vm1, %v8829_v21, 0 }
 0x1d5   : > { %v586_v16 = vpop.f32.mrb[12].mxu0  ;;  %v7937_v62 = vpop.f32.mrb[19].mxu1 }
 0x1d6   : > { %v592_v61 = vadd.f32 %v586_v16, %v543_v49  ;;  %v7918_v1 = vpop.f32.mrb[13].mxu0  ;;  %v3572_v16 = vpop.permute.xlu1 %3571 }
 0x1d7   : > { %v589_v18 = vpop.f32.mrb[14].mxu0  ;;  %8259 = vmatmul.mubr.msk.bf16.vlgmr.msra.gmra.mrb[124].mxu1 %vm246_vm2, %v9467_v2  ;;  %v8830_v1 = vld [vmem:[%s9269_s30 + $0x10] sm:$0x3] }
 0x1d8   : > { %v649_v6 = vadd.f32 %v643_v43, %v592_v61  ;;  %v7919_v29 = vpop.f32.mrb[15].mxu0  ;;  %8269 = vmatpush3.bf16.msra.mxu1 %v3429_v7  ;;  %8270 = vmatprep.mubr.msk.bf16.mxu1 %vm9066_vm0, %v9065_v4  ;;  %v3528_v43 = vsel %vm250_vm1, %v9717_v59, 0  ;;  %v3474_v18 = vsel %vm250_vm1, %v8830_v1, 0 }
 0x1d9   : > { %8280 = vmatprep.subr.bf16.mxu1 %v9065_v4 }
 0x1da   : > { %8241 = vmatmul.mubr.msk.bf16.vlgmr.msra.gmra.mrb[120].mxu0 %vm246_vm2, %v9534_v48  ;;  %v843_v26 = vpop.f32.mrb[20].mxu1 }
 0x1db   : > { %8251 = vmatpush3.bf16.msra.mxu0 %v3283_v41  ;;  %8252 = vmatprep.mubr.msk.bf16.mxu0 %vm9066_vm0, %v9065_v4  ;;  %v7948_v2 = vpop.f32.mrb[21].mxu1 }
 0x1dc   : > { %8262 = vmatprep.subr.bf16.mxu0 %v9065_v4  ;;  %v846_v20 = vpop.f32.mrb[22].mxu1 }
 0x1dd   : > { %v692_v9 = vpop.f32.mrb[16].mxu0  ;;  %v7949_v44 = vpop.f32.mrb[23].mxu1 }
 0x1de   : > { %v698_v60 = vadd.f32 %v692_v9, %v649_v6  ;;  %v7930_v22 = vpop.f32.mrb[17].mxu0  ;;  %v3718_v6 = vpop.permute.xlu1 %3717 }
 0x1df   : > { %v695_v33 = vpop.f32.mrb[18].mxu0  ;;  %8271 = vmatmul.mubr.msk.bf16.vlgmr.msra.gmra.mrb[128].mxu1 %vm246_vm2, %v9487_v15  ;;  %v3720_v2 = vsel %vm250_vm1, %v3718_v6, 0  ;;  %v3574_v22 = vsel %vm250_vm1, %v3572_v16, 0 }
 0x1e0   : > { %v704_v31 = vadd.f32 %v10037_v13, %v698_v60  ;;  %v7931_v47 = vpop.f32.mrb[19].mxu0  ;;  %8281 = vmatpush3.bf16.msra.mxu1 %v3528_v43  ;;  %8282 = vmatprep.mubr.msk.bf16.mxu1 %vm9066_vm0, %v9065_v4 }
 0x1e1   : > { %8292 = vmatprep.subr.bf16.mxu1 %v9065_v4 }
 0x1e2   : > { %706 = vst.msk [vmem:[%s10050_s21] sm:$0xff] %vm705_vm3, %v704_v31  ;;  %8253 = vmatmul.mubr.msk.bf16.vlgmr.msra.gmra.mrb[124].mxu0 %vm246_vm2, %v9558_v56  ;;  %v942_v15 = vpop.f32.mrb[24].mxu1 }
 0x1e3   : > { %8263 = vmatpush3.bf16.msra.mxu0 %v3384_v38  ;;  %8264 = vmatprep.mubr.msk.bf16.mxu0 %vm9066_vm0, %v9065_v4  ;;  %v7960_v59 = vpop.f32.mrb[25].mxu1  ;;  %v8831_v38 = vld [vmem:[%s9269_s30 + $0x10] sm:$0x3] }
 0x1e4   : > { %8274 = vmatprep.subr.bf16.mxu0 %v9065_v4  ;;  %v945_v49 = vpop.f32.mrb[26].mxu1 }
 0x1e5   : > { %v798_v35 = vpop.f32.mrb[20].mxu0  ;;  %v7961_v42 = vpop.f32.mrb[27].mxu1 }
 0x1e6   : > { %v799_v24 = vadd.f32 %v798_v35, %v755_v55  ;;  %v7942_v57 = vpop.f32.mrb[21].mxu0  ;;  %v3674_v42 = vsel %vm250_vm1, %v9726_v58, 0 }
 0x1e7   : > { %v801_v62 = vpop.f32.mrb[22].mxu0  ;;  %8283 = vmatmul.mubr.msk.bf16.vlgmr.msra.gmra.mrb[132].mxu1 %vm246_vm2, %v9509_v34 }
 0x1e8   : > { %v849_v7 = vadd.f32 %v843_v26, %v799_v24  ;;  %v7943_v61 = vpop.f32.mrb[23].mxu0  ;;  %8293 = vmatpush3.bf16.msra.mxu1 %v3620_v37  ;;  %8294 = vmatprep.mubr.msk.bf16.mxu1 %vm9066_vm0, %v9065_v4  ;;  %v10094_v24 = vld [vmem:[#allocation5 + $0x14] sm:$0xf] }
 0x1e9   : > { %8304 = vmatprep.subr.bf16.mxu1 %v9065_v4 }
 0x1ea   : > { %8265 = vmatmul.mubr.msk.bf16.vlgmr.msra.gmra.mrb[128].mxu0 %vm246_vm2, %v9955_v32  ;;  %v1034_v55 = vpop.f32.mrb[28].mxu1 }
 0x1eb   : > { %8275 = vmatpush3.bf16.msra.mxu0 %v3474_v18  ;;  %8276 = vmatprep.mubr.msk.bf16.mxu0 %vm9066_vm0, %v9065_v4  ;;  %v7972_v34 = vpop.f32.mrb[29].mxu1 }
 0x1ec   : > { %8286 = vmatprep.subr.bf16.mxu0 %v9065_v4  ;;  %v1037_v29 = vpop.f32.mrb[30].mxu1  ;;  %v3778_v34 = vsel %vm250_vm1, %v9741_v63, 0 }
 0x1ed   : > { %v888_v41 = vpop.f32.mrb[24].mxu0  ;;  %v7973_v26 = vpop.f32.mrb[31].mxu1 }
 0x1ee   : > { %v894_v20 = vadd.f32 %v888_v41, %v849_v7  ;;  %v7954_v43 = vpop.f32.mrb[25].mxu0  ;;  %v8833_v7 = vld [vmem:[%s9269_s30 + $0x12] sm:$0x3] }
 0x1ef   : > { %v891_v9 = vpop.f32.mrb[26].mxu0  ;;  %8295 = vmatmul.mubr.msk.bf16.vlgmr.msra.gmra.mrb[136].mxu1 %vm246_vm2, %v9534_v48  ;;  %v3911_v61 = vsel %vm250_vm1, %v8833_v7, 0 }
 0x1f0   : > { %v948_v44 = vadd.f32 %v942_v15, %v894_v20  ;;  %v7955_v60 = vpop.f32.mrb[27].mxu0  ;;  %8305 = vmatpush3.bf16.msra.mxu1 %v3720_v2  ;;  %8306 = vmatprep.mubr.msk.bf16.mxu1 %vm9066_vm0, %v9065_v4  ;;  %v3821_v15 = vsel %vm250_vm1, %v8831_v38, 0  ;;  %v10111_v2 = vld [vmem:[#allocation5 + $0x1c] sm:$0xf]  ;;  %v10127_v38 = vld [vmem:[#allocation5 + $0x4] sm:$0xf] }
 0x1f1   : > { %8316 = vmatprep.subr.bf16.mxu1 %v9065_v4 }
 0x1f2   : > { %8277 = vmatmul.mubr.msk.bf16.vlgmr.msra.gmra.mrb[132].mxu0 %vm246_vm2, %v9975_v51  ;;  %v1134_v33 = vpop.f32.mrb[32].mxu1 }
 0x1f3   : > { %8287 = vmatpush3.bf16.msra.mxu0 %v3574_v22  ;;  %8288 = vmatprep.mubr.msk.bf16.mxu0 %vm9066_vm0, %v9065_v4  ;;  %v7984_v48 = vpop.f32.mrb[33].mxu1 }
 0x1f4   : > { %8298 = vmatprep.subr.bf16.mxu0 %v9065_v4  ;;  %v1137_v31 = vpop.f32.mrb[34].mxu1 }
 0x1f5   : > { %v988_v47 = vpop.f32.mrb[28].mxu0  ;;  %v7985_v25 = vpop.f32.mrb[35].mxu1 }
 0x1f6   : > { %v994_v59 = vadd.f32 %v988_v47, %v948_v44  ;;  %v7966_v49 = vpop.f32.mrb[29].mxu0 }
 0x1f7   : > { %v991_v35 = vpop.f32.mrb[30].mxu0  ;;  %8307 = vmatmul.mubr.msk.bf16.vlgmr.msra.gmra.mrb[140].mxu1 %vm246_vm2, %v9558_v56 }
 0x1f8   : > { %v7967_v21 = vpop.f32.mrb[31].mxu0  ;;  %v1040_v37 = vadd.f32 %v1034_v55, %v994_v59  ;;  %8317 = vmatpush3.bf16.msra.mxu1 %v3821_v15  ;;  %8318 = vmatprep.mubr.msk.bf16.mxu1 %vm9066_vm0, %v9065_v4  ;;  %v3864_v55 = vpop.permute.xlu1 %3863  ;;  %v4111_v35 = vsel %vm250_vm1, %v9769_v28, 0  ;;  %v10143_v28 = vld [vmem:[#allocation5 + $0x8] sm:$0xf] }
 0x1f9   : > { %8328 = vmatprep.subr.bf16.mxu1 %v9065_v4  ;;  %v3866_v25 = vsel %vm250_vm1, %v3864_v55, 0 }
 0x1fa   : > { %8289 = vmatmul.mubr.msk.bf16.vlgmr.msra.gmra.mrb[136].mxu0 %vm246_vm2, %v10094_v24  ;;  %v1235_v57 = vpop.f32.mrb[36].mxu1 }
 0x1fb   : > { %8299 = vmatpush3.bf16.msra.mxu0 %v3674_v42  ;;  %8300 = vmatprep.mubr.msk.bf16.mxu0 %vm9066_vm0, %v9065_v4  ;;  %v7996_v56 = vpop.f32.mrb[37].mxu1 }
 0x1fc   : > { %8310 = vmatprep.subr.bf16.mxu0 %v9065_v4  ;;  %v1238_v58 = vpop.f32.mrb[38].mxu1  ;;  %v4009_v43 = vpop.permute.xlu1 %4008 }
 0x1fd   : > { %v1088_v16 = vpop.f32.mrb[32].mxu0  ;;  %v7997_v62 = vpop.f32.mrb[39].mxu1  ;;  %v4011_v22 = vsel %vm250_vm1, %v4009_v43, 0  ;;  %v3965_v58 = vsel %vm250_vm1, %v9754_v8, 0  ;;  %v8837_v43 = vld [vmem:[%s9269_s30 + $0x14] sm:$0x3] }
 0x1fe   : > { %v1094_v1 = vadd.f32 %v1088_v16, %v1040_v37  ;;  %v7978_v18 = vpop.f32.mrb[33].mxu0 }
 0x1ff   : > { %v1091_v6 = vpop.f32.mrb[34].mxu0  ;;  %8319 = vmatmul.mubr.msk.bf16.vlgmr.msra.gmra.mrb[144].mxu1 %vm246_vm2, %v9955_v32 }
 0x200   : > { %v1140_v29 = vadd.f32 %v1134_v33, %v1094_v1  ;;  %v7979_v41 = vpop.f32.mrb[35].mxu0  ;;  %8329 = vmatpush3.bf16.msra.mxu1 %v3911_v61  ;;  %8330 = vmatprep.mubr.msk.bf16.mxu1 %vm9066_vm0, %v9065_v4  ;;  %v4215_v1 = vsel %vm250_vm1, %v9778_v30, 0  ;;  %v10159_v30 = vld [vmem:[#allocation5 + $0x10] sm:$0xf] }
 0x201   : > { %8340 = vmatprep.subr.bf16.mxu1 %v9065_v4 }
 0x202   : > { %v1141_v26 = vadd.f32 %v1140_v29, %v10037_v13  ;;  %8301 = vmatmul.mubr.msk.bf16.vlgmr.msra.gmra.mrb[140].mxu0 %vm246_vm2, %v10111_v2  ;;  %v1325_v20 = vpop.f32.mrb[40].mxu1  ;;  %v4155_v29 = vpop.permute.xlu1 %4154 }
 0x203   : > { %8311 = vmatpush3.bf16.msra.mxu0 %v3778_v34  ;;  %8312 = vmatprep.mubr.msk.bf16.mxu0 %vm9066_vm0, %v9065_v4  ;;  %v8008_v63 = vpop.f32.mrb[41].mxu1 }
 0x204   : > { %7401 = vst.msk [vmem:[%s10050_s21 + $0x8] sm:$0xff] %vm705_vm3, %v1141_v26  ;;  %8322 = vmatprep.subr.bf16.mxu0 %v9065_v4  ;;  %v1328_v9 = vpop.f32.mrb[42].mxu1  ;;  %v4057_v63 = vsel %vm250_vm1, %v8837_v43, 0 }
 0x205   : > { %v1192_v44 = vpop.f32.mrb[36].mxu0  ;;  %v8009_v60 = vpop.f32.mrb[43].mxu1 }
 0x206   : > { %v1236_v33 = vadd.f32 %v1235_v57, %v1192_v44  ;;  %v7990_v48 = vpop.f32.mrb[37].mxu0  ;;  %v4301_v44 = vpop.permute.xlu1 %4300 }
 0x207   : > { %v1195_v31 = vpop.f32.mrb[38].mxu0  ;;  %8331 = vmatmul.mubr.msk.bf16.vlgmr.msra.gmra.mrb[148].mxu1 %vm246_vm2, %v9975_v51 }
 0x208   : > { %v7991_v47 = vpop.f32.mrb[39].mxu0  ;;  %8341 = vmatpush3.bf16.msra.mxu1 %v4011_v22  ;;  %8342 = vmatprep.mubr.msk.bf16.mxu1 %vm9066_vm0, %v9065_v4  ;;  %v4303_v31 = vsel %vm250_vm1, %v4301_v44, 0 }
 0x209   : > { %8352 = vmatprep.subr.bf16.mxu1 %v9065_v4 }
 0x20a   : > { %8313 = vmatmul.mubr.msk.bf16.vlgmr.msra.gmra.mrb[144].mxu0 %vm246_vm2, %v10127_v38  ;;  %v1425_v15 = vpop.f32.mrb[44].mxu1 }
 0x20b   : > { %8323 = vmatpush3.bf16.msra.mxu0 %v3866_v25  ;;  %8324 = vmatprep.mubr.msk.bf16.mxu0 %vm9066_vm0, %v9065_v4  ;;  %v8020_v59 = vpop.f32.mrb[45].mxu1 }
 0x20c   : > { %8334 = vmatprep.subr.bf16.mxu0 %v9065_v4  ;;  %v1428_v49 = vpop.f32.mrb[46].mxu1 }
 0x20d   : > { %v1280_v42 = vpop.f32.mrb[40].mxu0  ;;  %v8021_v21 = vpop.f32.mrb[47].mxu1 }
 0x20e   : > { %v1286_v37 = vadd.f32 %v1280_v42, %v1236_v33  ;;  %v8002_v57 = vpop.f32.mrb[41].mxu0  ;;  %v10173_v42 = vld [vmem:[#allocation5 + $0x18] sm:$0xf] }
 0x20f   : > { %v1283_v56 = vpop.f32.mrb[42].mxu0  ;;  %8343 = vmatmul.mubr.msk.bf16.vlgmr.msra.gmra.mrb[152].mxu1 %vm246_vm2, %v10094_v24 }
 0x210   : > { %v1331_v16 = vadd.f32 %v1325_v20, %v1286_v37  ;;  %v8003_v62 = vpop.f32.mrb[43].mxu0  ;;  %8353 = vmatpush3.bf16.msra.mxu1 %v4111_v35  ;;  %8354 = vmatprep.mubr.msk.bf16.mxu1 %vm9066_vm0, %v9065_v4  ;;  %v4157_v35 = vsel %vm250_vm1, %v4155_v29, 0  ;;  %v4402_v56 = vsel %vm250_vm1, %v9791_v36, 0  ;;  %v10192_v36 = vld [vmem:[#allocation5 + $0x20] sm:$0xf] }
 0x211   : > { %8364 = vmatprep.subr.bf16.mxu1 %v9065_v4 }
 0x212   : > { %8325 = vmatmul.mubr.msk.bf16.vlgmr.msra.gmra.mrb[148].mxu0 %vm246_vm2, %v10143_v28  ;;  %v1525_v7 = vpop.f32.mrb[48].mxu1 }
 0x213   : > { %8335 = vmatpush3.bf16.msra.mxu0 %v3965_v58  ;;  %8336 = vmatprep.mubr.msk.bf16.mxu0 %vm9066_vm0, %v9065_v4  ;;  %v8032_v8 = vpop.f32.mrb[49].mxu1 }
 0x214   : > { %8346 = vmatprep.subr.bf16.mxu0 %v9065_v4  ;;  %v1528_v61 = vpop.f32.mrb[50].mxu1 }
 0x215   : > { %v1379_v18 = vpop.f32.mrb[44].mxu0  ;;  %v8033_v55 = vpop.f32.mrb[51].mxu1 }
 0x216   : > { %v1385_v6 = vadd.f32 %v1379_v18, %v1331_v16  ;;  %v8014_v34 = vpop.f32.mrb[45].mxu0  ;;  %v8840_v18 = vld [vmem:[%s9269_s30 + $0x12] sm:$0x3] }
 0x217   : > { %v1382_v41 = vpop.f32.mrb[46].mxu0  ;;  %8355 = vmatmul.mubr.msk.bf16.vlgmr.msra.gmra.mrb[156].mxu1 %vm246_vm2, %v10111_v2  ;;  %v4258_v55 = vsel %vm250_vm1, %v8840_v18, 0 }
 0x218   : > { %v1431_v26 = vadd.f32 %v1425_v15, %v1385_v6  ;;  %v8015_v20 = vpop.f32.mrb[47].mxu0  ;;  %8365 = vmatpush3.bf16.msra.mxu1 %v4215_v1  ;;  %8366 = vmatprep.mubr.msk.bf16.mxu1 %vm9066_vm0, %v9065_v4 }
 0x219   : > { %8376 = vmatprep.subr.bf16.mxu1 %v9065_v4  ;;  %v8842_v20 = vld [vmem:[%s9269_s30 + $0x16] sm:$0x3] }
 0x21a   : > { %8337 = vmatmul.mubr.msk.bf16.vlgmr.msra.gmra.mrb[152].mxu0 %vm246_vm2, %v10159_v30  ;;  %v1629_v9 = vpop.f32.mrb[52].mxu1  ;;  %v4494_v43 = vsel %vm250_vm1, %v8842_v20, 0 }
 0x21b   : > { %8347 = vmatpush3.bf16.msra.mxu0 %v4057_v63  ;;  %8348 = vmatprep.mubr.msk.bf16.mxu0 %vm9066_vm0, %v9065_v4  ;;  %v8044_v60 = vpop.f32.mrb[53].mxu1 }
 0x21c   : > { %8358 = vmatprep.subr.bf16.mxu0 %v9065_v4  ;;  %v1632_v22 = vpop.f32.mrb[54].mxu1  ;;  %v4446_v60 = vpop.permute.xlu1 %4445 }
 0x21d   : > { %v1471_v33 = vpop.f32.mrb[48].mxu0  ;;  %v8045_v48 = vpop.f32.mrb[55].mxu1 }
 0x21e   : > { %v1477_v47 = vadd.f32 %v1471_v33, %v1431_v26  ;;  %v8026_v25 = vpop.f32.mrb[49].mxu0 }
 0x21f   : > { %v1474_v15 = vpop.f32.mrb[50].mxu0  ;;  %8367 = vmatmul.mubr.msk.bf16.vlgmr.msra.gmra.mrb[160].mxu1 %vm246_vm2, %v10127_v38 }
 0x220   : > { %v1531_v59 = vadd.f32 %v1525_v7, %v1477_v47  ;;  %v8027_v49 = vpop.f32.mrb[51].mxu0  ;;  %8377 = vmatpush3.bf16.msra.mxu1 %v4303_v31  ;;  %8378 = vmatprep.mubr.msk.bf16.mxu1 %vm9066_vm0, %v9065_v4  ;;  %v8843_v31 = vld [vmem:[%s9269_s30 + $0x14] sm:$0x3]  ;;  %v4592_v25 = vpop.permute.xlu1 %4591 }
 0x221   : > { %8388 = vmatprep.subr.bf16.mxu1 %v9065_v4  ;;  %v4348_v47 = vsel %vm250_vm1, %v8843_v31, 0 }
 0x222   : > { %8349 = vmatmul.mubr.msk.bf16.vlgmr.msra.gmra.mrb[156].mxu0 %vm246_vm2, %v10173_v42  ;;  %v1717_v21 = vpop.f32.mrb[56].mxu1 }
 0x223   : > { %8359 = vmatpush3.bf16.msra.mxu0 %v4157_v35  ;;  %8360 = vmatprep.mubr.msk.bf16.mxu0 %vm9066_vm0, %v9065_v4  ;;  %v8056_v37 = vpop.f32.mrb[57].mxu1 }
 0x224   : > { %8370 = vmatprep.subr.bf16.mxu0 %v9065_v4  ;;  %v1720_v57 = vpop.f32.mrb[58].mxu1 }
 0x225   : > { %v1571_v58 = vpop.f32.mrb[52].mxu0  ;;  %v8057_v16 = vpop.f32.mrb[59].mxu1 }
 0x226   : > { %v1577_v62 = vadd.f32 %v1571_v58, %v1531_v59  ;;  %v8038_v7 = vpop.f32.mrb[53].mxu0 }
 0x227   : > { %v1574_v8 = vpop.f32.mrb[54].mxu0  ;;  %8379 = vmatmul.mubr.msk.bf16.vlgmr.msra.gmra.mrb[164].mxu1 %vm246_vm2, %v10143_v28 }
 0x228   : > { %v1578_v61 = vadd.f32 %v1577_v62, %v10037_v13  ;;  %v8039_v1 = vpop.f32.mrb[55].mxu0  ;;  %8389 = vmatpush3.bf16.msra.mxu1 %v4402_v56  ;;  %8390 = vmatprep.mubr.msk.bf16.mxu1 %vm9066_vm0, %v9065_v4  ;;  %v4448_v62 = vsel %vm250_vm1, %v4446_v60, 0 }
 0x229   : > { %8400 = vmatprep.subr.bf16.mxu1 %v9065_v4 }
 0x22a   : > { %7414 = vst.msk [vmem:[%s10050_s21 + $0x10] sm:$0xff] %vm705_vm3, %v1578_v61  ;;  %8361 = vmatmul.mubr.msk.bf16.vlgmr.msra.gmra.mrb[160].mxu0 %vm246_vm2, %v10192_v36  ;;  %v1816_v6 = vpop.f32.mrb[60].mxu1 }
 0x22b   : > { %8371 = vmatpush3.bf16.msra.mxu0 %v4258_v55  ;;  %8372 = vmatprep.mubr.msk.bf16.mxu0 %vm9066_vm0, %v9065_v4  ;;  %v8068_v34 = vpop.f32.mrb[61].mxu1  ;;  %v8844_v55 = vld [vmem:[%s9269_s30 + $0x14] sm:$0x3] }
 0x22c   : > { %8382 = vmatprep.subr.bf16.mxu0 %v9065_v4  ;;  %v1819_v29 = vpop.f32.mrb[62].mxu1 }
 0x22d   : > { %v1672_v41 = vpop.f32.mrb[56].mxu0  ;;  %v8069_v26 = vpop.f32.mrb[63].mxu1 }
 0x22e   : > { %v1673_v63 = vadd.f32 %v1672_v41, %v1629_v9  ;;  %v8050_v44 = vpop.f32.mrb[57].mxu0  ;;  %v4548_v26 = vsel %vm250_vm1, %v9804_v12, 0 }
 0x22f   : > { %v1675_v22 = vpop.f32.mrb[58].mxu0  ;;  %8391 = vmatmul.mubr.msk.bf16.vlgmr.msra.gmra.mrb[168].mxu1 %vm246_vm2, %v10159_v30 }
 0x230   : > { %v1723_v33 = vadd.f32 %v1717_v21, %v1673_v63  ;;  %v8051_v48 = vpop.f32.mrb[59].mxu0  ;;  %8401 = vmatpush3.bf16.msra.mxu1 %v4494_v43  ;;  %8402 = vmatprep.mubr.msk.bf16.mxu1 %vm9066_vm0, %v9065_v4  ;;  %v4594_v21 = vsel %vm250_vm1, %v4592_v25, 0 }
 0x231   : > { %8412 = vmatprep.subr.bf16.mxu1 %v9065_v4 }
 0x232   : > { %8373 = vmatmul.mubr.msk.bf16.vlgmr.msra.gmra.mrb[164].mxu0 %vm246_vm2, %v9955_v32  ;;  %v1908_v9 = vpop.f32.mrb[64].mxu1 }
 0x233   : > { %8383 = vmatpush3.bf16.msra.mxu0 %v4348_v47  ;;  %8384 = vmatprep.mubr.msk.bf16.mxu0 %vm9066_vm0, %v9065_v4  ;;  %v8080_v15 = vpop.f32.mrb[65].mxu1 }
 0x234   : > { %8394 = vmatprep.subr.bf16.mxu0 %v9065_v4  ;;  %v1911_v59 = vpop.f32.mrb[66].mxu1  ;;  %v4652_v15 = vsel %vm250_vm1, %v9817_v50, 0 }
 0x235   : > { %v1762_v49 = vpop.f32.mrb[60].mxu0  ;;  %v8081_v35 = vpop.f32.mrb[67].mxu1 }
 0x236   : > { %v1768_v37 = vadd.f32 %v1762_v49, %v1723_v33  ;;  %v8062_v57 = vpop.f32.mrb[61].mxu0  ;;  %v8845_v33 = vld [vmem:[%s9269_s30 + $0x16] sm:$0x3] }
 0x237   : > { %v1765_v56 = vpop.f32.mrb[62].mxu0  ;;  %8403 = vmatmul.mubr.msk.bf16.vlgmr.msra.gmra.mrb[172].mxu1 %vm246_vm2, %v10173_v42  ;;  %v4785_v48 = vsel %vm250_vm1, %v8845_v33, 0 }
 0x238   : > { %v1822_v58 = vadd.f32 %v1816_v6, %v1768_v37  ;;  %v8063_v16 = vpop.f32.mrb[63].mxu0  ;;  %8413 = vmatpush3.bf16.msra.mxu1 %v4594_v21  ;;  %8414 = vmatprep.mubr.msk.bf16.mxu1 %vm9066_vm0, %v9065_v4  ;;  %v4695_v6 = vsel %vm250_vm1, %v8844_v55, 0 }
 0x239   : > { %8424 = vmatprep.subr.bf16.mxu1 %v9065_v4 }
 0x23a   : > { %8385 = vmatmul.mubr.msk.bf16.vlgmr.msra.gmra.mrb[168].mxu0 %vm246_vm2, %v9975_v51  ;;  %v2008_v7 = vpop.f32.mrb[68].mxu1 }
 0x23b   : > { %8395 = vmatpush3.bf16.msra.mxu0 %v4448_v62  ;;  %8396 = vmatprep.mubr.msk.bf16.mxu0 %vm9066_vm0, %v9065_v4  ;;  %v8092_v8 = vpop.f32.mrb[69].mxu1 }
 0x23c   : > { %8406 = vmatprep.subr.bf16.mxu0 %v9065_v4  ;;  %v2011_v61 = vpop.f32.mrb[70].mxu1 }
 0x23d   : > { %v1862_v1 = vpop.f32.mrb[64].mxu0  ;;  %v8093_v18 = vpop.f32.mrb[71].mxu1 }
 0x23e   : > { %v1868_v34 = vadd.f32 %v1862_v1, %v1822_v58  ;;  %v8074_v29 = vpop.f32.mrb[65].mxu0 }
 0x23f   : > { %v1865_v41 = vpop.f32.mrb[66].mxu0  ;;  %8415 = vmatmul.mubr.msk.bf16.vlgmr.msra.gmra.mrb[176].mxu1 %vm246_vm2, %v10192_v36 }
 0x240   : > { %v1914_v20 = vadd.f32 %v1908_v9, %v1868_v34  ;;  %v8075_v43 = vpop.f32.mrb[67].mxu0  ;;  %8425 = vmatpush3.bf16.msra.mxu1 %v4695_v6  ;;  %8426 = vmatprep.mubr.msk.bf16.mxu1 %vm9066_vm0, %v9065_v4  ;;  %v4738_v9 = vpop.permute.xlu1 %4737  ;;  %v4985_v6 = vsel %vm250_vm1, %v9839_v54, 0 }
 0x241   : > { %8436 = vmatprep.subr.bf16.mxu1 %v9065_v4  ;;  %v4740_v1 = vsel %vm250_vm1, %v4738_v9, 0  ;;  %v4839_v43 = vsel %vm250_vm1, %v9826_v3, 0 }
 0x242   : > { %8397 = vmatmul.mubr.msk.bf16.vlgmr.msra.gmra.mrb[172].mxu0 %vm246_vm2, %v10094_v24  ;;  %v2109_v63 = vpop.f32.mrb[72].mxu1 }
 0x243   : > { %8407 = vmatpush3.bf16.msra.mxu0 %v4548_v26  ;;  %8408 = vmatprep.mubr.msk.bf16.mxu0 %vm9066_vm0, %v9065_v4  ;;  %v8104_v44 = vpop.f32.mrb[73].mxu1 }
 0x244   : > { %8418 = vmatprep.subr.bf16.mxu0 %v9065_v4  ;;  %v2112_v12 = vpop.f32.mrb[74].mxu1  ;;  %v4883_v37 = vpop.permute.xlu1 %4882 }
 0x245   : > { %v1962_v60 = vpop.f32.mrb[68].mxu0  ;;  %v8105_v22 = vpop.f32.mrb[75].mxu1  ;;  %v4885_v16 = vsel %vm250_vm1, %v4883_v37, 0 }
 0x246   : > { %v1968_v31 = vadd.f32 %v1962_v60, %v1914_v20  ;;  %v8086_v47 = vpop.f32.mrb[69].mxu0  ;;  %v5089_v60 = vsel %vm250_vm1, %v9852_v27, 0 }
 0x247   : > { %v1965_v25 = vpop.f32.mrb[70].mxu0  ;;  %8427 = vmatmul.mubr.msk.bf16.vlgmr.msra.gmra.mrb[180].mxu1 %vm246_vm2, %v9955_v32 }
 0x248   : > { %v2014_v59 = vadd.f32 %v2008_v7, %v1968_v31  ;;  %v8087_v49 = vpop.f32.mrb[71].mxu0  ;;  %8437 = vmatpush3.bf16.msra.mxu1 %v4785_v48  ;;  %8438 = vmatprep.mubr.msk.bf16.mxu1 %vm9066_vm0, %v9065_v4  ;;  %v5029_v47 = vpop.permute.xlu1 %5028 }
 0x249   : > { %8448 = vmatprep.subr.bf16.mxu1 %v9065_v4 }
 0x24a   : > { %v2015_v35 = vadd.f32 %v2014_v59, %v10037_v13  ;;  %8409 = vmatmul.mubr.msk.bf16.vlgmr.msra.gmra.mrb[176].mxu0 %vm246_vm2, %v10111_v2  ;;  %v2199_v21 = vpop.f32.mrb[76].mxu1  ;;  %v8846_v59 = vld [vmem:[%s9269_s30 + $0x18] sm:$0x3] }
 0x24b   : > { %8419 = vmatpush3.bf16.msra.mxu0 %v4652_v15  ;;  %8420 = vmatprep.mubr.msk.bf16.mxu0 %vm9066_vm0, %v9065_v4  ;;  %v8116_v50 = vpop.f32.mrb[77].mxu1  ;;  %v4931_v49 = vsel %vm250_vm1, %v8846_v59, 0  ;;  %v8849_v59 = vld [vmem:[%s9269_s30 + $0x18] sm:$0x3] }
 0x24c   : > { %7427 = vst.msk [vmem:[%s10050_s21 + $0x18] sm:$0xff] %vm705_vm3, %v2015_v35  ;;  %8430 = vmatprep.subr.bf16.mxu0 %v9065_v4  ;;  %v2202_v57 = vpop.f32.mrb[78].mxu1  ;;  %v5175_v35 = vpop.permute.xlu1 %5174 }
 0x24d   : > { %v2066_v56 = vpop.f32.mrb[72].mxu0  ;;  %v8117_v58 = vpop.f32.mrb[79].mxu1 }
 0x24e   : > { %v2110_v62 = vadd.f32 %v2109_v63, %v2066_v56  ;;  %v8098_v7 = vpop.f32.mrb[73].mxu0  ;;  %v5177_v56 = vsel %vm250_vm1, %v5175_v35, 0 }
 0x24f   : > { %v2069_v8 = vpop.f32.mrb[74].mxu0  ;;  %8439 = vmatmul.mubr.msk.bf16.vlgmr.msra.gmra.mrb[184].mxu1 %vm246_vm2, %v9975_v51 }
 0x250   : > { %v8099_v61 = vpop.f32.mrb[75].mxu0  ;;  %8449 = vmatpush3.bf16.msra.mxu1 %v4885_v16  ;;  %8450 = vmatprep.mubr.msk.bf16.mxu1 %vm9066_vm0, %v9065_v4 }
 0x251   : > { %8460 = vmatprep.subr.bf16.mxu1 %v9065_v4  ;;  %v5031_v61 = vsel %vm250_vm1, %v5029_v47, 0  ;;  %v5320_v47 = vpop.permute.xlu1 %5319 }
 0x252   : > { %8421 = vmatmul.mubr.msk.bf16.vlgmr.msra.gmra.mrb[180].mxu0 %vm246_vm2, %v10127_v38  ;;  %v2299_v18 = vpop.f32.mrb[80].mxu1 }
 0x253   : > { %8431 = vmatpush3.bf16.msra.mxu0 %v4740_v1  ;;  %8432 = vmatprep.mubr.msk.bf16.mxu0 %vm9066_vm0, %v9065_v4  ;;  %v8128_v55 = vpop.f32.mrb[81].mxu1 }
 0x254   : > { %8442 = vmatprep.subr.bf16.mxu0 %v9065_v4  ;;  %v2302_v51 = vpop.f32.mrb[82].mxu1 }
 0x255   : > { %v2154_v34 = vpop.f32.mrb[76].mxu0  ;;  %v8129_v29 = vpop.f32.mrb[83].mxu1  ;;  %v5276_v51 = vsel %vm250_vm1, %v9865_v0, 0 }
 0x256   : > { %v2160_v41 = vadd.f32 %v2154_v34, %v2110_v62  ;;  %v8110_v26 = vpop.f32.mrb[77].mxu0  ;;  %v5466_v35 = vpop.permute.xlu1 %5465 }
 0x257   : > { %v2157_v20 = vpop.f32.mrb[78].mxu0  ;;  %8451 = vmatmul.mubr.msk.bf16.vlgmr.msra.gmra.mrb[188].mxu1 %vm246_vm2, %v10094_v24 }
 0x258   : > { %v2205_v63 = vadd.f32 %v2199_v21, %v2160_v41  ;;  %v8111_v44 = vpop.f32.mrb[79].mxu0  ;;  %8461 = vmatpush3.bf16.msra.mxu1 %v4985_v6  ;;  %8462 = vmatprep.mubr.msk.bf16.mxu1 %vm9066_vm0, %v9065_v4 }
 0x259   : > { %8472 = vmatprep.subr.bf16.mxu1 %v9065_v4 }
 0x25a   : > { %8433 = vmatmul.mubr.msk.bf16.vlgmr.msra.gmra.mrb[184].mxu0 %vm246_vm2, %v10143_v28  ;;  %v2399_v54 = vpop.f32.mrb[84].mxu1 }
 0x25b   : > { %8443 = vmatpush3.bf16.msra.mxu0 %v4839_v43  ;;  %8444 = vmatprep.mubr.msk.bf16.mxu0 %vm9066_vm0, %v9065_v4  ;;  %v8140_v12 = vpop.f32.mrb[85].mxu1 }
 0x25c   : > { %8454 = vmatprep.subr.bf16.mxu0 %v9065_v4  ;;  %v2402_v3 = vpop.f32.mrb[86].mxu1 }
 0x25d   : > { %v2253_v22 = vpop.f32.mrb[80].mxu0  ;;  %v8141_v33 = vpop.f32.mrb[87].mxu1 }
 0x25e   : > { %v2259_v48 = vadd.f32 %v2253_v22, %v2205_v63  ;;  %v8122_v31 = vpop.f32.mrb[81].mxu0  ;;  %v8847_v63 = vld [vmem:[%s9269_s30 + $0x16] sm:$0x3]  ;;  %v8848_v22 = vld [vmem:[%s9269_s30 + $0x1a] sm:$0x3] }
 0x25f   : > { %v2256_v9 = vpop.f32.mrb[82].mxu0  ;;  %8463 = vmatmul.mubr.msk.bf16.vlgmr.msra.gmra.mrb[192].mxu1 %vm246_vm2, %v10111_v2  ;;  %v5132_v44 = vsel %vm250_vm1, %v8847_v63, 0  ;;  %v5368_v33 = vsel %vm250_vm1, %v8848_v22, 0 }
 0x260   : > { %v2305_v25 = vadd.f32 %v2299_v18, %v2259_v48  ;;  %v8123_v15 = vpop.f32.mrb[83].mxu0  ;;  %8473 = vmatpush3.bf16.msra.mxu1 %v5089_v60  ;;  %8474 = vmatprep.mubr.msk.bf16.mxu1 %vm9066_vm0, %v9065_v4 }
 0x261   : > { %8484 = vmatprep.subr.bf16.mxu1 %v9065_v4 }
 0x262   : > { %8445 = vmatmul.mubr.msk.bf16.vlgmr.msra.gmra.mrb[188].mxu0 %vm246_vm2, %v10159_v30  ;;  %v2503_v27 = vpop.f32.mrb[88].mxu1 }
 0x263   : > { %8455 = vmatpush3.bf16.msra.mxu0 %v4931_v49  ;;  %8456 = vmatprep.mubr.msk.bf16.mxu0 %vm9066_vm0, %v9065_v4  ;;  %v8152_v21 = vpop.f32.mrb[89].mxu1  ;;  %v5222_v49 = vsel %vm250_vm1, %v8849_v59, 0 }
 0x264   : > { %8466 = vmatprep.subr.bf16.mxu0 %v9065_v4  ;;  %v2506_v37 = vpop.f32.mrb[90].mxu1 }
 0x265   : > { %v2345_v50 = vpop.f32.mrb[84].mxu0  ;;  %v8153_v57 = vpop.f32.mrb[91].mxu1 }
 0x266   : > { %v2351_v58 = vadd.f32 %v2345_v50, %v2305_v25  ;;  %v8134_v16 = vpop.f32.mrb[85].mxu0 }
 0x267   : > { %v2348_v62 = vpop.f32.mrb[86].mxu0  ;;  %8475 = vmatmul.mubr.msk.bf16.vlgmr.msra.gmra.mrb[196].mxu1 %vm246_vm2, %v10127_v38 }
 0x268   : > { %v2405_v7 = vadd.f32 %v2399_v54, %v2351_v58  ;;  %v8135_v8 = vpop.f32.mrb[87].mxu0  ;;  %8485 = vmatpush3.bf16.msra.mxu1 %v5177_v56  ;;  %8486 = vmatprep.mubr.msk.bf16.mxu1 %vm9066_vm0, %v9065_v4  ;;  %v5468_v56 = vsel %vm250_vm1, %v5466_v35, 0 }
 0x269   : > { %8496 = vmatprep.subr.bf16.mxu1 %v9065_v4  ;;  %v5322_v8 = vsel %vm250_vm1, %v5320_v47, 0 }
 0x26a   : > { %8457 = vmatmul.mubr.msk.bf16.vlgmr.msra.gmra.mrb[192].mxu0 %vm246_vm2, %v10173_v42  ;;  %v2591_v1 = vpop.f32.mrb[92].mxu1 }
 0x26b   : > { %8467 = vmatpush3.bf16.msra.mxu0 %v5031_v61  ;;  %8468 = vmatprep.mubr.msk.bf16.mxu0 %vm9066_vm0, %v9065_v4  ;;  %v8164_v18 = vpop.f32.mrb[93].mxu1  ;;  %v10346_v61 = vld [vmem:[#allocation5 + $0xc] sm:$0xf] }
 0x26c   : > { %8478 = vmatprep.subr.bf16.mxu0 %v9065_v4  ;;  %v2594_v55 = vpop.f32.mrb[94].mxu1 }
 0x26d   : > { %v2445_v6 = vpop.f32.mrb[88].mxu0  ;;  %v8165_v34 = vpop.f32.mrb[95].mxu1 }
 0x26e   : > { %v2451_v29 = vadd.f32 %v2445_v6, %v2405_v7  ;;  %v8146_v41 = vpop.f32.mrb[89].mxu0  ;;  %v8851_v34 = vld [vmem:[%s9269_s30 + $0x18] sm:$0x3] }
 0x26f   : > { %v2448_v26 = vpop.f32.mrb[90].mxu0  ;;  %8487 = vmatmul.mubr.msk.bf16.vlgmr.msra.gmra.mrb[200].mxu1 %vm246_vm2, %v10143_v28 }
 0x270   : > { %v2452_v20 = vadd.f32 %v2451_v29, %v10037_v13  ;;  %v8147_v43 = vpop.f32.mrb[91].mxu0  ;;  %8497 = vmatpush3.bf16.msra.mxu1 %v5276_v51  ;;  %8498 = vmatprep.mubr.msk.bf16.mxu1 %vm9066_vm0, %v9065_v4  ;;  %v5569_v29 = vsel %vm250_vm1, %v8851_v34, 0 }
 0x271   : > { %8508 = vmatprep.subr.bf16.mxu1 %v9065_v4  ;;  %v5422_v43 = vsel %vm250_vm1, %v9874_v23, 0 }
 0x272   : > { %7440 = vst.msk [vmem:[%s10050_s21 + $0x20] sm:$0xff] %vm705_vm3, %v2452_v20  ;;  %8469 = vmatmul.mubr.msk.bf16.vlgmr.msra.gmra.mrb[196].mxu0 %vm246_vm2, %v10192_v36  ;;  %v2690_v0 = vpop.f32.mrb[96].mxu1 }
 0x273   : > { %8479 = vmatpush3.bf16.msra.mxu0 %v5132_v44  ;;  %8480 = vmatprep.mubr.msk.bf16.mxu0 %vm9066_vm0, %v9065_v4  ;;  %v8176_v54 = vpop.f32.mrb[97].mxu1 }
 0x274   : > { %8490 = vmatprep.subr.bf16.mxu0 %v9065_v4  ;;  %v2693_v12 = vpop.f32.mrb[98].mxu1 }
 0x275   : > { %v2546_v3 = vpop.f32.mrb[92].mxu0  ;;  %v8177_v60 = vpop.f32.mrb[99].mxu1 }
 0x276   : > { %v2547_v48 = vadd.f32 %v2546_v3, %v2503_v27  ;;  %v8158_v31 = vpop.f32.mrb[93].mxu0  ;;  %v8852_v60 = vld [vmem:[%s9269_s30 + $0x1a] sm:$0x3] }
 0x277   : > { %v2549_v9 = vpop.f32.mrb[94].mxu0  ;;  %8499 = vmatmul.mubr.msk.bf16.vlgmr.msra.gmra.mrb[204].mxu1 %vm246_vm2, %v10159_v30  ;;  %v5659_v22 = vsel %vm250_vm1, %v8852_v60, 0  ;;  %v5612_v31 = vpop.permute.xlu1 %5611 }
 0x278   : > { %v2597_v25 = vadd.f32 %v2591_v1, %v2547_v48  ;;  %v8159_v15 = vpop.f32.mrb[95].mxu0  ;;  %8509 = vmatpush3.bf16.msra.mxu1 %v5368_v33  ;;  %8510 = vmatprep.mubr.msk.bf16.mxu1 %vm9066_vm0, %v9065_v4  ;;  %v10369_v9 = vld [vmem:[#allocation5] sm:$0xf] }
 0x279   : > { %8520 = vmatprep.subr.bf16.mxu1 %v9065_v4 }
 0x27a   : > { %8481 = vmatmul.mubr.msk.bf16.vlgmr.msra.gmra.mrb[200].mxu0 %vm246_vm2, %v9955_v32  ;;  %v2782_v27 = vpop.f32.mrb[100].mxu1 }
 0x27b   : > { %8491 = vmatpush3.bf16.msra.mxu0 %v5222_v49  ;;  %8492 = vmatprep.mubr.msk.bf16.mxu0 %vm9066_vm0, %v9065_v4  ;;  %v8188_v21 = vpop.f32.mrb[101].mxu1  ;;  %v5757_v35 = vpop.permute.xlu1 %5756 }
 0x27c   : > { %8502 = vmatprep.subr.bf16.mxu0 %v9065_v4  ;;  %v2785_v37 = vpop.f32.mrb[102].mxu1 }
 0x27d   : > { %v2636_v50 = vpop.f32.mrb[96].mxu0  ;;  %v8189_v57 = vpop.f32.mrb[103].mxu1 }
 0x27e   : > { %v2642_v58 = vadd.f32 %v2636_v50, %v2597_v25  ;;  %v8170_v16 = vpop.f32.mrb[97].mxu0  ;;  %v5526_v25 = vsel %vm250_vm1, %v9887_v5, 0  ;;  %v5759_v57 = vsel %vm250_vm1, %v5757_v35, 0 }
 0x27f   : > { %v2639_v62 = vpop.f32.mrb[98].mxu0  ;;  %8511 = vmatmul.mubr.msk.bf16.vlgmr.msra.gmra.mrb[208].mxu1 %vm246_vm2, %v10173_v42 }
 0x280   : > { %v2696_v32 = vadd.f32 %v2690_v0, %v2642_v58  ;;  %v8171_v7 = vpop.f32.mrb[99].mxu0  ;;  %8521 = vmatpush3.bf16.msra.mxu1 %v5468_v56  ;;  %8522 = vmatprep.mubr.msk.bf16.mxu1 %vm9066_vm0, %v9065_v4 }
 0x281   : > { %8532 = vmatprep.subr.bf16.mxu1 %v9065_v4 }
 0x282   : > { %8493 = vmatmul.mubr.msk.bf16.vlgmr.msra.gmra.mrb[204].mxu0 %vm246_vm2, %v10346_v61  ;;  %v2882_v1 = vpop.f32.mrb[104].mxu1 }
 0x283   : > { %8503 = vmatpush3.bf16.msra.mxu0 %v5322_v8  ;;  %8504 = vmatprep.mubr.msk.bf16.mxu0 %vm9066_vm0, %v9065_v4  ;;  %v8200_v18 = vpop.f32.mrb[105].mxu1 }
 0x284   : > { %8514 = vmatprep.subr.bf16.mxu0 %v9065_v4  ;;  %v2885_v55 = vpop.f32.mrb[106].mxu1  ;;  %v5859_v18 = vsel %vm250_vm1, %v9913_v17, 0 }
 0x285   : > { %v2736_v51 = vpop.f32.mrb[100].mxu0  ;;  %v8201_v6 = vpop.f32.mrb[107].mxu1 }
 0x286   : > { %v2742_v41 = vadd.f32 %v2736_v51, %v2696_v32  ;;  %v8182_v26 = vpop.f32.mrb[101].mxu0  ;;  %v5614_v32 = vsel %vm250_vm1, %v5612_v31, 0 }
 0x287   : > { %v2739_v20 = vpop.f32.mrb[102].mxu0  ;;  %8523 = vmatmul.mubr.msk.bf16.vlgmr.msra.gmra.mrb[212].mxu1 %vm246_vm2, %v10192_v36 }
 0x288   : > { %v2788_v63 = vadd.f32 %v2782_v27, %v2742_v41  ;;  %v8183_v44 = vpop.f32.mrb[103].mxu0  ;;  %8533 = vmatpush3.bf16.msra.mxu1 %v5569_v29  ;;  %8534 = vmatprep.mubr.msk.bf16.mxu1 %vm9066_vm0, %v9065_v4  ;;  %v5713_v41 = vsel %vm250_vm1, %v9900_v10, 0 }
 0x289   : > { %8544 = vmatprep.subr.bf16.mxu1 %v9065_v4 }
 0x28a   : > { %8505 = vmatmul.mubr.msk.bf16.vlgmr.msra.gmra.mrb[208].mxu0 %vm246_vm2, %v10094_v24  ;;  %v2983_v0 = vpop.f32.mrb[108].mxu1 }
 0x28b   : > { %8515 = vmatpush3.bf16.msra.mxu0 %v5422_v43  ;;  %8516 = vmatprep.mubr.msk.bf16.mxu0 %vm9066_vm0, %v9065_v4  ;;  %v8212_v54 = vpop.f32.mrb[109].mxu1  ;;  %v5963_v43 = vsel %vm250_vm1, %v9922_v45, 0 }
 0x28c   : > { %8526 = vmatprep.subr.bf16.mxu0 %v9065_v4  ;;  %v2986_v23 = vpop.f32.mrb[110].mxu1 }
 0x28d   : > { %v2836_v12 = vpop.f32.mrb[104].mxu0  ;;  %v8213_v3 = vpop.f32.mrb[111].mxu1 }
 0x28e   : > { %v2842_v33 = vadd.f32 %v2836_v12, %v2788_v63  ;;  %v8194_v48 = vpop.f32.mrb[105].mxu0  ;;  %v5903_v23 = vpop.permute.xlu1 %5902 }
 0x28f   : > { %v2839_v47 = vpop.f32.mrb[106].mxu0  ;;  %8535 = vmatmul.mubr.msk.bf16.vlgmr.msra.gmra.mrb[216].mxu1 %vm246_vm2, %v10369_v9 }
 0x290   : > { %v2888_v15 = vadd.f32 %v2882_v1, %v2842_v33  ;;  %v8195_v59 = vpop.f32.mrb[107].mxu0  ;;  %8545 = vmatpush3.bf16.msra.mxu1 %v5659_v22  ;;  %8546 = vmatprep.mubr.msk.bf16.mxu1 %vm9066_vm0, %v9065_v4  ;;  %v8854_v22 = vld [vmem:[%s9269_s30 + $0x1c] sm:$0x3] }
 0x291   : > { %8556 = vmatprep.subr.bf16.mxu1 %v9065_v4  ;;  %v5805_v33 = vsel %vm250_vm1, %v8854_v22, 0 }
 0x292   : > { %v2889_v49 = vadd.f32 %v2888_v15, %v10037_v13  ;;  %8517 = vmatmul.mubr.msk.bf16.vlgmr.msra.gmra.mrb[212].mxu0 %vm246_vm2, %v10111_v2  ;;  %v3073_v27 = vpop.f32.mrb[112].mxu1  ;;  %v6049_v48 = vpop.permute.xlu1 %6048 }
 0x293   : > { %8527 = vmatpush3.bf16.msra.mxu0 %v5526_v25  ;;  %8528 = vmatprep.mubr.msk.bf16.mxu0 %vm9066_vm0, %v9065_v4  ;;  %v8224_v5 = vpop.f32.mrb[113].mxu1  ;;  %v6051_v15 = vsel %vm250_vm1, %v6049_v48, 0 }
 0x294   : > { %7453 = vst.msk [vmem:[%s10050_s21 + $0x28] sm:$0xff] %vm705_vm3, %v2889_v49  ;;  %8538 = vmatprep.subr.bf16.mxu0 %v9065_v4  ;;  %v3076_v21 = vpop.f32.mrb[114].mxu1 }
 0x295   : > { %v2940_v37 = vpop.f32.mrb[108].mxu0  ;;  %v8225_v50 = vpop.f32.mrb[115].mxu1  ;;  %v5905_v21 = vsel %vm250_vm1, %v5903_v23, 0 }
 0x296   : > { %v2984_v56 = vadd.f32 %v2983_v0, %v2940_v37  ;;  %v8206_v58 = vpop.f32.mrb[109].mxu0 }
 0x297   : > { %v2943_v16 = vpop.f32.mrb[110].mxu0  ;;  %8547 = vmatmul.mubr.msk.bf16.vlgmr.msra.gmra.mrb[220].mxu1 %vm246_vm2, %v10346_v61 }
 0x298   : > { %v8207_v62 = vpop.f32.mrb[111].mxu0  ;;  %8557 = vmatpush3.bf16.msra.mxu1 %v5759_v57  ;;  %8558 = vmatprep.mubr.msk.bf16.mxu1 %vm9066_vm0, %v9065_v4  ;;  %v6150_v57 = vsel %vm250_vm1, %v9935_v14, 0 }
 0x299   : > { %8568 = vmatprep.subr.bf16.mxu1 %v9065_v4 }
 0x29a   : > { %8529 = vmatmul.mubr.msk.bf16.vlgmr.msra.gmra.mrb[216].mxu0 %vm246_vm2, %v10127_v38  ;;  %v3173_v7 = vpop.f32.mrb[116].mxu1 }
 0x29b   : > { %8539 = vmatpush3.bf16.msra.mxu0 %v5614_v32  ;;  %8540 = vmatprep.mubr.msk.bf16.mxu0 %vm9066_vm0, %v9065_v4  ;;  %v8236_v8 = vpop.f32.mrb[117].mxu1 }
 0x29c   : > { %8550 = vmatprep.subr.bf16.mxu0 %v9065_v4  ;;  %v3176_v1 = vpop.f32.mrb[118].mxu1 }
 0x29d   : > { %v3028_v55 = vpop.f32.mrb[112].mxu0  ;;  %v8237_v51 = vpop.f32.mrb[119].mxu1  ;;  %v8855_v1 = vld [vmem:[%s9269_s30 + $0x1a] sm:$0x3] }
 0x29e   : > { %v3034_v6 = vadd.f32 %v3028_v55, %v2984_v56  ;;  %v8218_v34 = vpop.f32.mrb[113].mxu0 }
 0x29f   : > { %v3031_v29 = vpop.f32.mrb[114].mxu0  ;;  %8559 = vmatmul.mubr.msk.bf16.vlgmr.msra.gmra.mrb[224].mxu1 %vm246_vm2, %v10094_v24  ;;  %v8856_v34 = vld [vmem:[%s9269_s30 + $0x1e] sm:$0x3] }
 0x2a0   : > { %v3079_v26 = vadd.f32 %v3073_v27, %v3034_v6  ;;  %v8219_v20 = vpop.f32.mrb[115].mxu0  ;;  %8569 = vmatpush3.bf16.msra.mxu1 %v5859_v18  ;;  %8570 = vmatprep.mubr.msk.bf16.mxu1 %vm9066_vm0, %v9065_v4  ;;  %v6006_v18 = vsel %vm250_vm1, %v8855_v1, 0  ;;  %v6242_v29 = vsel %vm250_vm1, %v8856_v34, 0 }
 0x2a1   : > { %8580 = vmatprep.subr.bf16.mxu1 %v9065_v4  ;;  %v6194_v20 = vpop.permute.xlu1 %6193 }
 0x2a2   : > { %8541 = vmatmul.mubr.msk.bf16.vlgmr.msra.gmra.mrb[220].mxu0 %vm246_vm2, %v10143_v28  ;;  %v3273_v17 = vpop.f32.mrb[120].mxu1 }
 0x2a3   : > { %8551 = vmatpush3.bf16.msra.mxu0 %v5713_v41  ;;  %8552 = vmatprep.mubr.msk.bf16.mxu0 %vm9066_vm0, %v9065_v4  ;;  %v8248_v24 = vpop.f32.mrb[121].mxu1 }
 0x2a4   : > { %8562 = vmatprep.subr.bf16.mxu0 %v9065_v4  ;;  %v3276_v10 = vpop.f32.mrb[122].mxu1 }
 0x2a5   : > { %v3127_v63 = vpop.f32.mrb[116].mxu0  ;;  %v8249_v44 = vpop.f32.mrb[123].mxu1 }
 0x2a6   : > { %v3133_v0 = vadd.f32 %v3127_v63, %v3079_v26  ;;  %v8230_v54 = vpop.f32.mrb[117].mxu0 }
 0x2a7   : > { %v3130_v12 = vpop.f32.mrb[118].mxu0  ;;  %8571 = vmatmul.mubr.msk.bf16.vlgmr.msra.gmra.mrb[228].mxu1 %vm246_vm2, %v10111_v2 }
 0x2a8   : > { %v3179_v3 = vadd.f32 %v3173_v7, %v3133_v0  ;;  %v8231_v60 = vpop.f32.mrb[119].mxu0  ;;  %8581 = vmatpush3.bf16.msra.mxu1 %v5963_v43  ;;  %8582 = vmatprep.mubr.msk.bf16.mxu1 %vm9066_vm0, %v9065_v4  ;;  %v8857_v43 = vld [vmem:[%s9269_s30 + $0x1c] sm:$0x3]  ;;  %v6340_v0 = vpop.permute.xlu1 %6339 }
 0x2a9   : > { %8592 = vmatprep.subr.bf16.mxu1 %v9065_v4  ;;  %v6096_v63 = vsel %vm250_vm1, %v8857_v43, 0 }
 0x2aa   : > { %8553 = vmatmul.mubr.msk.bf16.vlgmr.msra.gmra.mrb[224].mxu0 %vm246_vm2, %v10159_v30  ;;  %v3377_v45 = vpop.f32.mrb[124].mxu1 }
 0x2ab   : > { %8563 = vmatpush3.bf16.msra.mxu0 %v5805_v33  ;;  %8564 = vmatprep.mubr.msk.bf16.mxu0 %vm9066_vm0, %v9065_v4  ;;  %v8260_v2 = vpop.f32.mrb[125].mxu1 }
 0x2ac   : > { %8574 = vmatprep.subr.bf16.mxu0 %v9065_v4  ;;  %v3380_v31 = vpop.f32.mrb[126].mxu1  ;;  %v6196_v2 = vsel %vm250_vm1, %v6194_v20, 0 }
 0x2ad   : > { %v3219_v47 = vpop.f32.mrb[120].mxu0  ;;  %v8261_v25 = vpop.f32.mrb[127].mxu1 }
 0x2ae   : > { %v3225_v59 = vadd.f32 %v3219_v47, %v3179_v3  ;;  %v8242_v49 = vpop.f32.mrb[121].mxu0  ;;  %v6342_v3 = vsel %vm250_vm1, %v6340_v0, 0 }
 0x2af   : > { %v3222_v27 = vpop.f32.mrb[122].mxu0  ;;  %8583 = vmatmul.mubr.msk.bf16.vlgmr.msra.gmra.mrb[232].mxu1 %vm246_vm2, %v10127_v38 }
 0x2b0   : > { %v3279_v35 = vadd.f32 %v3273_v17, %v3225_v59  ;;  %v8243_v5 = vpop.f32.mrb[123].mxu0  ;;  %8593 = vmatpush3.bf16.msra.mxu1 %v6051_v15  ;;  %8594 = vmatprep.mubr.msk.bf16.mxu1 %vm9066_vm0, %v9065_v4  ;;  %v8858_v59 = vld [vmem:[%s9269_s30 + $0x1c] sm:$0x3] }
 0x2b1   : > { %8604 = vmatprep.subr.bf16.mxu1 %v9065_v4  ;;  %v6443_v49 = vsel %vm250_vm1, %v8858_v59, 0 }
 0x2b2   : > { %8565 = vmatmul.mubr.msk.bf16.vlgmr.msra.gmra.mrb[228].mxu0 %vm246_vm2, %v10173_v42  ;;  %v3465_v37 = vpop.f32.mrb[128].mxu1 }
 0x2b3   : > { %8575 = vmatpush3.bf16.msra.mxu0 %v5905_v21  ;;  %8576 = vmatprep.mubr.msk.bf16.mxu0 %vm9066_vm0, %v9065_v4  ;;  %v8272_v38 = vpop.f32.mrb[129].mxu1  ;;  %v6296_v21 = vsel %vm250_vm1, %v9948_v19, 0 }
 0x2b4   : > { %8586 = vmatprep.subr.bf16.mxu0 %v9065_v4  ;;  %v3468_v50 = vpop.f32.mrb[130].mxu1 }
 0x2b5   : > { %v3319_v56 = vpop.f32.mrb[124].mxu0  ;;  %v8273_v58 = vpop.f32.mrb[131].mxu1  ;;  %v10490_v50 = vld [vmem:[#allocation5 + $0x14] sm:$0xf] }
 0x2b6   : > { %v3325_v16 = vadd.f32 %v3319_v56, %v3279_v35  ;;  %v8254_v62 = vpop.f32.mrb[125].mxu0 }
 0x2b7   : > { %v3322_v32 = vpop.f32.mrb[126].mxu0  ;;  %8595 = vmatmul.mubr.msk.bf16.vlgmr.msra.gmra.mrb[236].mxu1 %vm246_vm2, %v10143_v28 }
 0x2b8   : > { %v3326_v7 = vadd.f32 %v3325_v16, %v10037_v13  ;;  %v8255_v8 = vpop.f32.mrb[127].mxu0  ;;  %8605 = vmatpush3.bf16.msra.mxu1 %v6150_v57  ;;  %8606 = vmatprep.mubr.msk.bf16.mxu1 %vm9066_vm0, %v9065_v4  ;;  %v8860_v16 = vld [vmem:[%s9269_s30 + $0x1e] sm:$0x3] }
 0x2b9   : > { %8616 = vmatprep.subr.bf16.mxu1 %v9065_v4  ;;  %v6533_v62 = vsel %vm250_vm1, %v8860_v16, 0  ;;  %v6486_v8 = vpop.permute.xlu1 %6485 }
 0x2ba   : > { %7466 = vst.msk [vmem:[%s10050_s21 + $0x30] sm:$0xff] %vm705_vm3, %v3326_v7  ;;  %8577 = vmatmul.mubr.msk.bf16.vlgmr.msra.gmra.mrb[232].mxu0 %vm246_vm2, %v10192_v36  ;;  %v3564_v14 = vpop.f32.mrb[132].mxu1 }
 0x2bb   : > { %8587 = vmatpush3.bf16.msra.mxu0 %v6006_v18  ;;  %8588 = vmatprep.mubr.msk.bf16.mxu0 %vm9066_vm0, %v9065_v4  ;;  %v8284_v28 = vpop.f32.mrb[133].mxu1  ;;  %v6400_v18 = vsel %vm250_vm1, %v9961_v40, 0 }
 0x2bc   : > { %8598 = vmatprep.subr.bf16.mxu0 %v9065_v4  ;;  %v3567_v55 = vpop.f32.mrb[134].mxu1 }
 0x2bd   : > { %v3420_v51 = vpop.f32.mrb[128].mxu0  ;;  %v8285_v6 = vpop.f32.mrb[135].mxu1 }
 0x2be   : > { %v3421_v41 = vadd.f32 %v3420_v51, %v3377_v45  ;;  %v8266_v26 = vpop.f32.mrb[129].mxu0  ;;  %v10507_v51 = vld [vmem:[#allocation5 + $0x1c] sm:$0xf]  ;;  %v6631_v34 = vpop.permute.xlu1 %6630 }
 0x2bf   : > { %v3423_v17 = vpop.f32.mrb[130].mxu0  ;;  %8607 = vmatmul.mubr.msk.bf16.vlgmr.msra.gmra.mrb[240].mxu1 %vm246_vm2, %v10159_v30  ;;  %v6633_v20 = vsel %vm250_vm1, %v6631_v34, 0 }
 0x2c0   : > { %v3471_v24 = vadd.f32 %v3465_v37, %v3421_v41  ;;  %v8267_v10 = vpop.f32.mrb[131].mxu0  ;;  %8617 = vmatpush3.bf16.msra.mxu1 %v6242_v29  ;;  %8618 = vmatprep.mubr.msk.bf16.mxu1 %vm9066_vm0, %v9065_v4 }
 0x2c1   : > { %8628 = vmatprep.subr.bf16.mxu1 %v9065_v4 }
 0x2c2   : > { %8589 = vmatmul.mubr.msk.bf16.vlgmr.msra.gmra.mrb[236].mxu0 %vm246_vm2, %v10369_v9  ;;  %v3656_v44 = vpop.f32.mrb[136].mxu1 }
 0x2c3   : > { %8599 = vmatpush3.bf16.msra.mxu0 %v6096_v63  ;;  %8600 = vmatprep.mubr.msk.bf16.mxu0 %vm9066_vm0, %v9065_v4  ;;  %v8296_v30 = vpop.f32.mrb[137].mxu1  ;;  %v6488_v63 = vsel %vm250_vm1, %v6486_v8, 0 }
 0x2c4   : > { %8610 = vmatprep.subr.bf16.mxu0 %v9065_v4  ;;  %v3659_v54 = vpop.f32.mrb[138].mxu1 }
 0x2c5   : > { %v3510_v23 = vpop.f32.mrb[132].mxu0  ;;  %v8297_v12 = vpop.f32.mrb[139].mxu1 }
 0x2c6   : > { %v3516_v60 = vadd.f32 %v3510_v23, %v3471_v24  ;;  %v8278_v22 = vpop.f32.mrb[133].mxu0  ;;  %v6733_v23 = vsel %vm250_vm1, %v9988_v11, 0  ;;  %v8863_v11 = vld [vmem:[#allocation5 + $0x8] sm:$0xf] }
 0x2c7   : > { %v3513_v33 = vpop.f32.mrb[134].mxu0  ;;  %8619 = vmatmul.mubr.msk.bf16.vlgmr.msra.gmra.mrb[244].mxu1 %vm246_vm2, %v10173_v42 }
 0x2c8   : > { %v3570_v45 = vadd.f32 %v3564_v14, %v3516_v60  ;;  %v8279_v48 = vpop.f32.mrb[135].mxu0  ;;  %8629 = vmatpush3.bf16.msra.mxu1 %v6342_v3  ;;  %8630 = vmatprep.mubr.msk.bf16.mxu1 %vm9066_vm0, %v9065_v4 }
 0x2c9   : > { %8640 = vmatprep.subr.bf16.mxu1 %v9065_v4 }
 0x2ca   : > { %8601 = vmatmul.mubr.msk.bf16.vlgmr.msra.gmra.mrb[240].mxu0 %vm246_vm2, %v10346_v61  ;;  %v3756_v31 = vpop.f32.mrb[140].mxu1 }
 0x2cb   : > { %8611 = vmatpush3.bf16.msra.mxu0 %v6196_v2  ;;  %8612 = vmatprep.mubr.msk.bf16.mxu0 %vm9066_vm0, %v9065_v4  ;;  %v8308_v42 = vpop.f32.mrb[141].mxu1 }
 0x2cc   : > { %8622 = vmatprep.subr.bf16.mxu0 %v9065_v4  ;;  %v3759_v47 = vpop.f32.mrb[142].mxu1 }
 0x2cd   : > { %v3610_v25 = vpop.f32.mrb[136].mxu0  ;;  %v8309_v15 = vpop.f32.mrb[143].mxu1  ;;  %v6837_v47 = vsel %vm250_vm1, %v10002_v52, 0  ;;  %v8865_v52 = vld [vmem:[#allocation5 + $0x10] sm:$0xf] }
 0x2ce   : > { %v3616_v27 = vadd.f32 %v3610_v25, %v3570_v45  ;;  %v8290_v35 = vpop.f32.mrb[137].mxu0  ;;  %v6587_v45 = vsel %vm250_vm1, %v9973_v53, 0 }
 0x2cf   : > { %v3613_v5 = vpop.f32.mrb[138].mxu0  ;;  %8631 = vmatmul.mubr.msk.bf16.vlgmr.msra.gmra.mrb[248].mxu1 %vm246_vm2, %v10192_v36 }
 0x2d0   : > { %v3662_v37 = vadd.f32 %v3656_v44, %v3616_v27  ;;  %v8291_v38 = vpop.f32.mrb[139].mxu0  ;;  %8641 = vmatpush3.bf16.msra.mxu1 %v6443_v49  ;;  %8642 = vmatprep.mubr.msk.bf16.mxu1 %vm9066_vm0, %v9065_v4  ;;  %v8862_v44 = vld [vmem:[#allocation5 + $0x4] sm:$0xf]  ;;  %v6777_v27 = vpop.permute.xlu1 %6776 }
 0x2d1   : > { %8652 = vmatprep.subr.bf16.mxu1 %v9065_v4 }
 0x2d2   : > { %8613 = vmatmul.mubr.msk.bf16.vlgmr.msra.gmra.mrb[244].mxu0 %vm246_vm2, %v10490_v50  ;;  %v3857_v57 = vpop.f32.mrb[144].mxu1 }
 0x2d3   : > { %8623 = vmatpush3.bf16.msra.mxu0 %v6296_v21  ;;  %8624 = vmatprep.mubr.msk.bf16.mxu0 %vm9066_vm0, %v9065_v4  ;;  %v8320_v19 = vpop.f32.mrb[145].mxu1 }
 0x2d4   : > { %8634 = vmatprep.subr.bf16.mxu0 %v9065_v4  ;;  %v3860_v36 = vpop.f32.mrb[146].mxu1  ;;  %v6923_v19 = vpop.permute.xlu1 %6922 }
 0x2d5   : > { %v3710_v56 = vpop.f32.mrb[140].mxu0  ;;  %v8321_v58 = vpop.f32.mrb[147].mxu1 }
 0x2d6   : > { %v3716_v32 = vadd.f32 %v3710_v56, %v3662_v37  ;;  %v8302_v7 = vpop.f32.mrb[141].mxu0  ;;  %v8864_v37 = vld [vmem:[%s9269_s30 + $0x20] sm:$0x3] }
 0x2d7   : > { %v3713_v1 = vpop.f32.mrb[142].mxu0  ;;  %8643 = vmatmul.mubr.msk.bf16.vlgmr.msra.gmra.mrb[252].mxu1 %vm246_vm2, %v10369_v9  ;;  %v6679_v38 = vsel %vm250_vm1, %v8864_v37, 0 }
 0x2d8   : > { %v3762_v14 = vadd.f32 %v3756_v31, %v3716_v32  ;;  %v8303_v28 = vpop.f32.mrb[143].mxu0  ;;  %8653 = vmatpush3.bf16.msra.mxu1 %v6533_v62  ;;  %8654 = vmatprep.mubr.msk.bf16.mxu1 %vm9066_vm0, %v9065_v4  ;;  %v6925_v62 = vsel %vm250_vm1, %v6923_v19, 0 }
 0x2d9   : > { %8664 = vmatprep.subr.bf16.mxu1 %v9065_v4  ;;  %v8866_v28 = vld [vmem:[#allocation5 + $0x18] sm:$0xf] }
 0x2da   : > { %v3763_v55 = vadd.f32 %v3762_v14, %v10037_v13  ;;  %8625 = vmatmul.mubr.msk.bf16.vlgmr.msra.gmra.mrb[248].mxu0 %vm246_vm2, %v10507_v51  ;;  %v3947_v6 = vpop.f32.mrb[148].mxu1  ;;  %v6779_v14 = vsel %vm250_vm1, %v6777_v27, 0 }
 0x2db   : > { %8635 = vmatpush3.bf16.msra.mxu0 %v6400_v18  ;;  %8636 = vmatprep.mubr.msk.bf16.mxu0 %vm9066_vm0, %v9065_v4  ;;  %v8332_v40 = vpop.f32.mrb[149].mxu1 }
 0x2dc   : > { %7479 = vst.msk [vmem:[%s10050_s21 + $0x38] sm:$0xff] %vm705_vm3, %v3763_v55  ;;  %8646 = vmatprep.subr.bf16.mxu0 %v9065_v4  ;;  %v3950_v29 = vpop.f32.mrb[150].mxu1  ;;  %v7024_v40 = vsel %vm250_vm1, %v10013_v46, 0  ;;  %v8868_v46 = vld [vmem:[#allocation5 + $0x20] sm:$0xf] }
 0x2dd   : > { %v3814_v41 = vpop.f32.mrb[144].mxu0  ;;  %v8333_v26 = vpop.f32.mrb[151].mxu1 }
 0x2de   : > { %v3858_v17 = vadd.f32 %v3857_v57, %v3814_v41  ;;  %v8314_v24 = vpop.f32.mrb[145].mxu0 }
 0x2df   : > { %v3817_v10 = vpop.f32.mrb[146].mxu0  ;;  %8655 = vmatmul.mubr.msk.bf16.vlgmr.msra.gmra.mrb[0].mxu1 %vm246_vm2, %v10346_v61 }
 0x2e0   : > { %v8315_v43 = vpop.f32.mrb[147].mxu0  ;;  %8665 = vmatpush3.bf16.msra.mxu1 %v6633_v20  ;;  %8666 = vmatprep.mubr.msk.bf16.mxu1 %vm9066_vm0, %v9065_v4 }
 0x2e1   : > { %8676 = vmatprep.subr.bf16.mxu1 %v9065_v4  ;;  %v8867_v43 = vld [vmem:[%s9269_s30 + $0x1e] sm:$0x3] }
 0x2e2   : > { %8637 = vmatmul.mubr.msk.bf16.vlgmr.msra.gmra.mrb[252].mxu0 %vm246_vm2, %v8862_v44  ;;  %v4047_v0 = vpop.f32.mrb[152].mxu1 }
 0x2e3   : > { %8647 = vmatpush3.bf16.msra.mxu0 %v6488_v63  ;;  %8648 = vmatprep.mubr.msk.bf16.mxu0 %vm9066_vm0, %v9065_v4  ;;  %v8344_v30 = vpop.f32.mrb[153].mxu1  ;;  %v6880_v63 = vsel %vm250_vm1, %v8867_v43, 0 }
 0x2e4   : > { %8658 = vmatprep.subr.bf16.mxu0 %v9065_v4  ;;  %v4050_v54 = vpop.f32.mrb[154].mxu1 }
 0x2e5   : > { %v3902_v12 = vpop.f32.mrb[148].mxu0  ;;  %v8345_v3 = vpop.f32.mrb[155].mxu1 }
 0x2e6   : > { %v3908_v60 = vadd.f32 %v3902_v12, %v3858_v17  ;;  %v8326_v22 = vpop.f32.mrb[149].mxu0  ;;  %v8869_v12 = vld [vmem:[%s9269_s30 + $0x22] sm:$0x3] }
 0x2e7   : > { %v3905_v33 = vpop.f32.mrb[150].mxu0  ;;  %8667 = vmatmul.mubr.msk.bf16.vlgmr.msra.gmra.mrb[4].mxu1 %vm246_vm2, %v10490_v50  ;;  %v7116_v3 = vsel %vm250_vm1, %v8869_v12, 0 }
 0x2e8   : > { %v3953_v48 = vadd.f32 %v3947_v6, %v3908_v60  ;;  %v8327_v2 = vpop.f32.mrb[151].mxu0  ;;  %8677 = vmatpush3.bf16.msra.mxu1 %v6733_v23  ;;  %8678 = vmatprep.mubr.msk.bf16.mxu1 %vm9066_vm0, %v9065_v4  ;;  %v7068_v33 = vpop.permute.xlu1 %7067 }
 0x2e9   : > { %8688 = vmatprep.subr.bf16.mxu1 %v9065_v4  ;;  %v7070_v37 = vsel %vm250_vm1, %v7068_v33, 0 }
 0x2ea   : > { %8649 = vmatmul.mubr.msk.bf16.vlgmr.msra.gmra.mrb[0].mxu0 %vm246_vm2, %v8863_v11  ;;  %v4147_v31 = vpop.f32.mrb[156].mxu1 }
 0x2eb   : > { %8659 = vmatpush3.bf16.msra.mxu0 %v6587_v45  ;;  %8660 = vmatprep.mubr.msk.bf16.mxu0 %vm9066_vm0, %v9065_v4  ;;  %v8356_v42 = vpop.f32.mrb[157].mxu1 }
 0x2ec   : > { %8670 = vmatprep.subr.bf16.mxu0 %v9065_v4  ;;  %v4150_v53 = vpop.f32.mrb[158].mxu1 }
 0x2ed   : > { %v4001_v25 = vpop.f32.mrb[152].mxu0  ;;  %v8357_v15 = vpop.f32.mrb[159].mxu1 }
 0x2ee   : > { %v4007_v59 = vadd.f32 %v4001_v25, %v3953_v48  ;;  %v8338_v49 = vpop.f32.mrb[153].mxu0  ;;  %v7214_v53 = vpop.permute.xlu1 %7213 }
 0x2ef   : > { %v4004_v35 = vpop.f32.mrb[154].mxu0  ;;  %8679 = vmatmul.mubr.msk.bf16.vlgmr.msra.gmra.mrb[8].mxu1 %vm246_vm2, %v10507_v51  ;;  %v7216_v49 = vsel %vm250_vm1, %v7214_v53, 0 }
 0x2f0   : > { %v4053_v5 = vadd.f32 %v4047_v0, %v4007_v59  ;;  %v8339_v21 = vpop.f32.mrb[155].mxu0  ;;  %8689 = vmatpush3.bf16.msra.mxu1 %v6837_v47  ;;  %8690 = vmatprep.mubr.msk.bf16.mxu1 %vm9066_vm0, %v9065_v4 }
 0x2f1   : > { %8700 = vmatprep.subr.bf16.mxu1 %v9065_v4 }
 0x2f2   : > { %8661 = vmatmul.mubr.msk.bf16.vlgmr.msra.gmra.mrb[4].mxu0 %vm246_vm2, %v8865_v52  ;;  %v4251_v57 = vpop.f32.mrb[160].mxu1 }
 0x2f3   : > { %8671 = vmatpush3.bf16.msra.mxu0 %v6679_v38  ;;  %8672 = vmatprep.mubr.msk.bf16.mxu0 %vm9066_vm0, %v9065_v4  ;;  %v8368_v36 = vpop.f32.mrb[161].mxu1 }
 0x2f4   : > { %8682 = vmatprep.subr.bf16.mxu0 %v9065_v4  ;;  %v4254_v56 = vpop.f32.mrb[162].mxu1 }
 0x2f5   : > { %v4093_v58 = vpop.f32.mrb[156].mxu0  ;;  %v8369_v16 = vpop.f32.mrb[163].mxu1 }
 0x2f6   : > { %v4099_v32 = vadd.f32 %v4093_v58, %v4053_v5  ;;  %v8350_v7 = vpop.f32.mrb[157].mxu0 }
 0x2f7   : > { %v4096_v8 = vpop.f32.mrb[158].mxu0  ;;  %8691 = vmatmul.mubr.msk.bf16.vlgmr.msra.gmra.mrb[12].mxu1 %vm246_vm2, %v8862_v44 }
 0x2f8   : > { %v4153_v1 = vadd.f32 %v4147_v31, %v4099_v32  ;;  %v8351_v18 = vpop.f32.mrb[159].mxu0  ;;  %8701 = vmatpush3.bf16.msra.mxu1 %v6925_v62  ;;  %8702 = vmatprep.mubr.msk.bf16.mxu1 %vm9066_vm0, %v9065_v4  ;;  %v7170_v62 = vsel %vm250_vm1, %v10024_v39, 0 }
 0x2f9   : > { %8712 = vmatprep.subr.bf16.mxu1 %v9065_v4 }
 0x2fa   : > { %8673 = vmatmul.mubr.msk.bf16.vlgmr.msra.gmra.mrb[8].mxu0 %vm246_vm2, %v8866_v28  ;;  %v4339_v55 = vpop.f32.mrb[164].mxu1 }
 0x2fb   : > { %8683 = vmatpush3.bf16.msra.mxu0 %v6779_v14  ;;  %8684 = vmatprep.mubr.msk.bf16.mxu0 %vm9066_vm0, %v9065_v4  ;;  %v8380_v6 = vpop.f32.mrb[165].mxu1 }
 0x2fc   : > { %8694 = vmatprep.subr.bf16.mxu0 %v9065_v4  ;;  %v4342_v34 = vpop.f32.mrb[166].mxu1 }
 0x2fd   : > { %v4193_v29 = vpop.f32.mrb[160].mxu0  ;;  %v8381_v41 = vpop.f32.mrb[167].mxu1 }
 0x2fe   : > { %v4199_v26 = vadd.f32 %v4193_v29, %v4153_v1  ;;  %v8362_v20 = vpop.f32.mrb[161].mxu0 }
 0x2ff   : > { %v4196_v17 = vpop.f32.mrb[162].mxu0  ;;  %8703 = vmatmul.mubr.msk.bf16.vlgmr.msra.gmra.mrb[16].mxu1 %vm246_vm2, %v8863_v11  ;;  %v8870_v11 = vld [vmem:[%s9269_s30 + $0x20] sm:$0x3] }
 0x300   : > { %v4200_v24 = vadd.f32 %v4199_v26, %v10037_v13  ;;  %v8363_v10 = vpop.f32.mrb[163].mxu0  ;;  %8713 = vmatpush3.bf16.msra.mxu1 %v7024_v40  ;;  %8714 = vmatprep.mubr.msk.bf16.mxu1 %vm9066_vm0, %v9065_v4  ;;  %v6970_v31 = vsel %vm250_vm1, %v8870_v11, 0 }
 0x301   : > { %8724 = vmatprep.subr.bf16.mxu1 %v9065_v4 }
 0x302   : > { %7492 = vst.msk [vmem:[%s10050_s21 + $0x40] sm:$0xff] %vm705_vm3, %v4200_v24  ;;  %8685 = vmatmul.mubr.msk.bf16.vlgmr.msra.gmra.mrb[12].mxu0 %vm246_vm2, %v8868_v46  ;;  %v4438_v44 = vpop.f32.mrb[168].mxu1 }
 0x303   : > { %8695 = vmatpush3.bf16.msra.mxu0 %v6880_v63  ;;  %8696 = vmatprep.mubr.msk.bf16.mxu0 %vm9066_vm0, %v9065_v4  ;;  %v8392_v0 = vpop.f32.mrb[169].mxu1 }
 0x304   : > { %8706 = vmatprep.subr.bf16.mxu0 %v9065_v4  ;;  %v4441_v30 = vpop.f32.mrb[170].mxu1 }
 0x305   : > { %v4294_v54 = vpop.f32.mrb[164].mxu0  ;;  %v8393_v23 = vpop.f32.mrb[171].mxu1 }
 0x306   : > { %v4295_v60 = vadd.f32 %v4294_v54, %v4251_v57  ;;  %v8374_v22 = vpop.f32.mrb[165].mxu0 }
 0x307   : > { %v4297_v45 = vpop.f32.mrb[166].mxu0  ;;  %8715 = vmatmul.mubr.msk.bf16.vlgmr.msra.gmra.mrb[20].mxu1 %vm246_vm2, %v8865_v52 }
 0x308   : > { %v4345_v48 = vadd.f32 %v4339_v55, %v4295_v60  ;;  %v8375_v2 = vpop.f32.mrb[167].mxu0  ;;  %8725 = vmatpush3.bf16.msra.mxu1 %v7116_v3  ;;  %8726 = vmatprep.mubr.msk.bf16.mxu1 %vm9066_vm0, %v9065_v4 }
 0x309   : > { %8736 = vmatprep.subr.bf16.mxu1 %v9065_v4 }
 0x30a   : > { %8697 = vmatmul.mubr.msk.bf16.vlgmr.msra.gmra.mrb[16].mxu0 %vm246_vm2, %v10369_v9  ;;  %v4530_v42 = vpop.f32.mrb[172].mxu1 }
 0x30b   : > { %8707 = vmatpush3.bf16.msra.mxu0 %v6970_v31  ;;  %8708 = vmatprep.mubr.msk.bf16.mxu0 %vm9066_vm0, %v9065_v4  ;;  %v8404_v47 = vpop.f32.mrb[173].mxu1 }
 0x30c   : > { %8718 = vmatprep.subr.bf16.mxu0 %v9065_v4  ;;  %v4533_v25 = vpop.f32.mrb[174].mxu1 }
 0x30d   : > { %v4384_v15 = vpop.f32.mrb[168].mxu0  ;;  %v8405_v59 = vpop.f32.mrb[175].mxu1 }
 0x30e   : > { %v4390_v27 = vadd.f32 %v4384_v15, %v4345_v48  ;;  %v8386_v35 = vpop.f32.mrb[169].mxu0 }
 0x30f   : > { %v4387_v5 = vpop.f32.mrb[170].mxu0  ;;  %8727 = vmatmul.mubr.msk.bf16.vlgmr.msra.gmra.mrb[24].mxu1 %vm246_vm2, %v8866_v28 }
 0x310   : > { %v4444_v9 = vadd.f32 %v4438_v44, %v4390_v27  ;;  %v8387_v21 = vpop.f32.mrb[171].mxu0  ;;  %8737 = vmatpush3.bf16.msra.mxu1 %v7216_v49  ;;  %8738 = vmatprep.mubr.msk.bf16.mxu1 %vm9066_vm0, %v9065_v4 }
 0x312   : > { %8709 = vmatmul.mubr.msk.bf16.vlgmr.msra.gmra.mrb[20].mxu0 %vm246_vm2, %v10346_v61  ;;  %v4630_v38 = vpop.f32.mrb[176].mxu1 }
 0x313   : > { %8719 = vmatpush3.bf16.msra.mxu0 %v7070_v37  ;;  %8720 = vmatprep.mubr.msk.bf16.mxu0 %vm9066_vm0, %v9065_v4  ;;  %v8416_v52 = vpop.f32.mrb[177].mxu1 }
 0x314   : > { %8730 = vmatprep.subr.bf16.mxu0 %v9065_v4  ;;  %v4633_v57 = vpop.f32.mrb[178].mxu1 }
 0x315   : > { %v4484_v19 = vpop.f32.mrb[172].mxu0  ;;  %v8417_v36 = vpop.f32.mrb[179].mxu1 }
 0x316   : > { %v4490_v56 = vadd.f32 %v4484_v19, %v4444_v9  ;;  %v8398_v58 = vpop.f32.mrb[173].mxu0 }
 0x317   : > { %v4487_v16 = vpop.f32.mrb[174].mxu0  ;;  %8739 = vmatmul.mubr.msk.bf16.vlgmr.msra.gmra.mrb[28].mxu1 %vm246_vm2, %v8868_v46 }
 0x318   : > { %v4536_v61 = vadd.f32 %v4530_v42, %v4490_v56  ;;  %v8399_v32 = vpop.f32.mrb[175].mxu0 }
 0x31a   : > { %8721 = vmatmul.mubr.msk.bf16.vlgmr.msra.gmra.mrb[24].mxu0 %vm246_vm2, %v10490_v50  ;;  %v4731_v7 = vpop.f32.mrb[180].mxu1 }
 0x31b   : > { %8731 = vmatpush3.bf16.msra.mxu0 %v7170_v62  ;;  %8732 = vmatprep.mubr.msk.bf16.mxu0 %vm9066_vm0, %v9065_v4  ;;  %v8428_v8 = vpop.f32.mrb[181].mxu1 }
 0x31c   : > { %v4734_v1 = vpop.f32.mrb[182].mxu1 }
 0x31d   : > { %v4584_v18 = vpop.f32.mrb[176].mxu0  ;;  %v8429_v14 = vpop.f32.mrb[183].mxu1 }
 0x31e   : > { %v4590_v28 = vadd.f32 %v4584_v18, %v4536_v61  ;;  %v8410_v55 = vpop.f32.mrb[177].mxu0 }
 0x31f   : > { %v4587_v6 = vpop.f32.mrb[178].mxu0 }
 0x320   : > { %v4636_v34 = vadd.f32 %v4630_v38, %v4590_v28  ;;  %v8411_v39 = vpop.f32.mrb[179].mxu0 }
 0x322   : > { %v4637_v40 = vadd.f32 %v4636_v34, %v10037_v13  ;;  %8733 = vmatmul.mubr.msk.bf16.vlgmr.msra.gmra.mrb[28].mxu0 %vm246_vm2, %v10507_v51  ;;  %v4821_v50 = vpop.f32.mrb[184].mxu1 }
 0x323   : > { %v8440_v29 = vpop.f32.mrb[185].mxu1 }
 0x324   : > { %7505 = vst.msk [vmem:[%s10050_s21 + $0x48] sm:$0xff] %vm705_vm3, %v4637_v40  ;;  %v4824_v41 = vpop.f32.mrb[186].mxu1 }
 0x325   : > { %v4688_v4 = vpop.f32.mrb[180].mxu0  ;;  %v8441_v26 = vpop.f32.mrb[187].mxu1 }
 0x326   : > { %v4732_v20 = vadd.f32 %v4731_v7, %v4688_v4  ;;  %v8422_v17 = vpop.f32.mrb[181].mxu0 }
 0x327   : > { %v4691_v24 = vpop.f32.mrb[182].mxu0 }
 0x328   : > { %v8423_v10 = vpop.f32.mrb[183].mxu0 }
 0x32a   : > { %v4921_v43 = vpop.f32.mrb[188].mxu1 }
 0x32b   : > { %v8452_v63 = vpop.f32.mrb[189].mxu1 }
 0x32c   : > { %v4924_v46 = vpop.f32.mrb[190].mxu1 }
 0x32d   : > { %v4776_v44 = vpop.f32.mrb[184].mxu0  ;;  %v8453_v0 = vpop.f32.mrb[191].mxu1 }
 0x32e   : > { %v4782_v30 = vadd.f32 %v4776_v44, %v4732_v20  ;;  %v8434_v54 = vpop.f32.mrb[185].mxu0 }
 0x32f   : > { %v4779_v23 = vpop.f32.mrb[186].mxu0 }
 0x330   : > { %v4827_v51 = vadd.f32 %v4821_v50, %v4782_v30  ;;  %v8435_v12 = vpop.f32.mrb[187].mxu0 }
 0x332   : > { %v5021_v3 = vpop.f32.mrb[192].mxu1 }
 0x333   : > { %v8464_v60 = vpop.f32.mrb[193].mxu1 }
 0x334   : > { %v5024_v22 = vpop.f32.mrb[194].mxu1 }
 0x335   : > { %v4875_v33 = vpop.f32.mrb[188].mxu0  ;;  %v8465_v45 = vpop.f32.mrb[195].mxu1 }
 0x336   : > { %v4881_v48 = vadd.f32 %v4875_v33, %v4827_v51  ;;  %v8446_v2 = vpop.f32.mrb[189].mxu0 }
 0x337   : > { %v4878_v11 = vpop.f32.mrb[190].mxu0 }
 0x338   : > { %v4927_v31 = vadd.f32 %v4921_v43, %v4881_v48  ;;  %v8447_v42 = vpop.f32.mrb[191].mxu0 }
 0x33a   : > { %v5125_v53 = vpop.f32.mrb[196].mxu1 }
 0x33b   : > { %v8476_v47 = vpop.f32.mrb[197].mxu1 }
 0x33c   : > { %v5128_v25 = vpop.f32.mrb[198].mxu1 }
 0x33d   : > { %v4967_v15 = vpop.f32.mrb[192].mxu0  ;;  %v8477_v59 = vpop.f32.mrb[199].mxu1 }
 0x33e   : > { %v4973_v49 = vadd.f32 %v4967_v15, %v4927_v31  ;;  %v8458_v27 = vpop.f32.mrb[193].mxu0 }
 0x33f   : > { %v4970_v35 = vpop.f32.mrb[194].mxu0 }
 0x340   : > { %v5027_v5 = vadd.f32 %v5021_v3, %v4973_v49  ;;  %v8459_v9 = vpop.f32.mrb[195].mxu0 }
 0x342   : > { %v5213_v21 = vpop.f32.mrb[200].mxu1 }
 0x343   : > { %v8488_v37 = vpop.f32.mrb[201].mxu1 }
 0x344   : > { %v5216_v38 = vpop.f32.mrb[202].mxu1 }
 0x345   : > { %v5067_v52 = vpop.f32.mrb[196].mxu0  ;;  %v8489_v57 = vpop.f32.mrb[203].mxu1 }
 0x346   : > { %v5073_v19 = vadd.f32 %v5067_v52, %v5027_v5  ;;  %v8470_v36 = vpop.f32.mrb[197].mxu0 }
 0x347   : > { %v5070_v56 = vpop.f32.mrb[198].mxu0 }
 0x348   : > { %v5074_v58 = vadd.f32 %v5073_v19, %v10037_v13  ;;  %v8471_v16 = vpop.f32.mrb[199].mxu0 }
 0x34a   : > { %7518 = vst.msk [vmem:[%s10050_s21 + $0x50] sm:$0xff] %vm705_vm3, %v5074_v58  ;;  %v5312_v62 = vpop.f32.mrb[204].mxu1 }
 0x34b   : > { %v8500_v61 = vpop.f32.mrb[205].mxu1 }
 0x34c   : > { %v5315_v32 = vpop.f32.mrb[206].mxu1 }
 0x34d   : > { %v5168_v7 = vpop.f32.mrb[200].mxu0  ;;  %v8501_v8 = vpop.f32.mrb[207].mxu1 }
 0x34e   : > { %v5169_v1 = vadd.f32 %v5168_v7, %v5125_v53  ;;  %v8482_v18 = vpop.f32.mrb[201].mxu0 }
 0x34f   : > { %v5171_v14 = vpop.f32.mrb[202].mxu0 }
 0x350   : > { %v5219_v28 = vadd.f32 %v5213_v21, %v5169_v1  ;;  %v8483_v55 = vpop.f32.mrb[203].mxu0 }
 0x352   : > { %v5404_v6 = vpop.f32.mrb[208].mxu1 }
 0x353   : > { %v8512_v34 = vpop.f32.mrb[209].mxu1 }
 0x354   : > { %v5407_v39 = vpop.f32.mrb[210].mxu1 }
 0x355   : > { %v5258_v40 = vpop.f32.mrb[204].mxu0  ;;  %v8513_v50 = vpop.f32.mrb[211].mxu1 }
 0x356   : > { %v5264_v29 = vadd.f32 %v5258_v40, %v5219_v28  ;;  %v8494_v41 = vpop.f32.mrb[205].mxu0 }
 0x357   : > { %v5261_v4 = vpop.f32.mrb[206].mxu0 }
 0x358   : > { %v5318_v26 = vadd.f32 %v5312_v62, %v5264_v29  ;;  %v8495_v20 = vpop.f32.mrb[207].mxu0 }
 0x35a   : > { %v5504_v17 = vpop.f32.mrb[212].mxu1 }
 0x35b   : > { %v8524_v24 = vpop.f32.mrb[213].mxu1 }
 0x35c   : > { %v5507_v10 = vpop.f32.mrb[214].mxu1 }
 0x35d   : > { %v5358_v43 = vpop.f32.mrb[208].mxu0  ;;  %v8525_v63 = vpop.f32.mrb[215].mxu1 }
 0x35e   : > { %v5364_v46 = vadd.f32 %v5358_v43, %v5318_v26  ;;  %v8506_v44 = vpop.f32.mrb[209].mxu0 }
 0x35f   : > { %v5361_v0 = vpop.f32.mrb[210].mxu0 }
 0x360   : > { %v5410_v30 = vadd.f32 %v5404_v6, %v5364_v46  ;;  %v8507_v54 = vpop.f32.mrb[211].mxu0 }
 0x362   : > { %v5605_v23 = vpop.f32.mrb[216].mxu1 }
 0x363   : > { %v8536_v51 = vpop.f32.mrb[217].mxu1 }
 0x364   : > { %v5608_v12 = vpop.f32.mrb[218].mxu1 }
 0x365   : > { %v5458_v3 = vpop.f32.mrb[212].mxu0  ;;  %v8537_v60 = vpop.f32.mrb[219].mxu1 }
 0x366   : > { %v5464_v22 = vadd.f32 %v5458_v3, %v5410_v30  ;;  %v8518_v33 = vpop.f32.mrb[213].mxu0 }
 0x367   : > { %v5461_v45 = vpop.f32.mrb[214].mxu0 }
 0x368   : > { %v5510_v48 = vadd.f32 %v5504_v17, %v5464_v22  ;;  %v8519_v2 = vpop.f32.mrb[215].mxu0 }
 0x36a   : > { %v5511_v11 = vadd.f32 %v5510_v48, %v10037_v13  ;;  %v5695_v31 = vpop.f32.mrb[220].mxu1 }
 0x36b   : > { %v8548_v42 = vpop.f32.mrb[221].mxu1 }
 0x36c   : > { %7531 = vst.msk [vmem:[%s10050_s21 + $0x58] sm:$0xff] %vm705_vm3, %v5511_v11  ;;  %v5698_v53 = vpop.f32.mrb[222].mxu1 }
 0x36d   : > { %v5562_v47 = vpop.f32.mrb[216].mxu0  ;;  %v8549_v25 = vpop.f32.mrb[223].mxu1 }
 0x36e   : > { %v5606_v15 = vadd.f32 %v5605_v23, %v5562_v47  ;;  %v8530_v59 = vpop.f32.mrb[217].mxu0 }
 0x36f   : > { %v5565_v49 = vpop.f32.mrb[218].mxu0 }
 0x370   : > { %v8531_v27 = vpop.f32.mrb[219].mxu0 }
 0x372   : > { %v5795_v35 = vpop.f32.mrb[224].mxu1 }
 0x373   : > { %v8560_v5 = vpop.f32.mrb[225].mxu1 }
 0x374   : > { %v5798_v9 = vpop.f32.mrb[226].mxu1 }
 0x375   : > { %v5650_v21 = vpop.f32.mrb[220].mxu0  ;;  %v8561_v37 = vpop.f32.mrb[227].mxu1 }
 0x376   : > { %v5656_v38 = vadd.f32 %v5650_v21, %v5606_v15  ;;  %v8542_v52 = vpop.f32.mrb[221].mxu0 }
 0x377   : > { %v5653_v57 = vpop.f32.mrb[222].mxu0 }
 0x378   : > { %v5701_v19 = vadd.f32 %v5695_v31, %v5656_v38  ;;  %v8543_v36 = vpop.f32.mrb[223].mxu0 }
 0x37a   : > { %v5895_v56 = vpop.f32.mrb[228].mxu1 }
 0x37b   : > { %v8572_v58 = vpop.f32.mrb[229].mxu1 }
 0x37c   : > { %v5898_v16 = vpop.f32.mrb[230].mxu1 }
 0x37d   : > { %v5749_v62 = vpop.f32.mrb[224].mxu0  ;;  %v8573_v61 = vpop.f32.mrb[231].mxu1 }
 0x37e   : > { %v5755_v32 = vadd.f32 %v5749_v62, %v5701_v19  ;;  %v8554_v7 = vpop.f32.mrb[225].mxu0 }
 0x37f   : > { %v5752_v8 = vpop.f32.mrb[226].mxu0 }
 0x380   : > { %v5801_v1 = vadd.f32 %v5795_v35, %v5755_v32  ;;  %v8555_v18 = vpop.f32.mrb[227].mxu0 }
 0x382   : > { %v5999_v14 = vpop.f32.mrb[232].mxu1 }
 0x383   : > { %v8584_v28 = vpop.f32.mrb[233].mxu1 }
 0x384   : > { %v6002_v55 = vpop.f32.mrb[234].mxu1 }
 0x385   : > { %v5841_v6 = vpop.f32.mrb[228].mxu0  ;;  %v8585_v34 = vpop.f32.mrb[235].mxu1 }
 0x386   : > { %v5847_v39 = vadd.f32 %v5841_v6, %v5801_v1  ;;  %v8566_v40 = vpop.f32.mrb[229].mxu0 }
 0x387   : > { %v5844_v50 = vpop.f32.mrb[230].mxu0 }
 0x388   : > { %v5901_v29 = vadd.f32 %v5895_v56, %v5847_v39  ;;  %v8567_v41 = vpop.f32.mrb[231].mxu0 }
 0x38a   : > { %v6087_v4 = vpop.f32.mrb[236].mxu1 }
 0x38b   : > { %v8596_v26 = vpop.f32.mrb[237].mxu1 }
 0x38c   : > { %v6090_v20 = vpop.f32.mrb[238].mxu1 }
 0x38d   : > { %v5941_v17 = vpop.f32.mrb[232].mxu0  ;;  %v8597_v24 = vpop.f32.mrb[239].mxu1 }
 0x38e   : > { %v5947_v10 = vadd.f32 %v5941_v17, %v5901_v29  ;;  %v8578_v43 = vpop.f32.mrb[233].mxu0 }
 0x38f   : > { %v5944_v63 = vpop.f32.mrb[234].mxu0 }
 0x390   : > { %v5948_v46 = vadd.f32 %v5947_v10, %v10037_v13  ;;  %v8579_v44 = vpop.f32.mrb[235].mxu0 }
 0x392   : > { %7544 = vst.msk [vmem:[%s10050_s21 + $0x60] sm:$0xff] %vm705_vm3, %v5948_v46  ;;  %v6186_v0 = vpop.f32.mrb[240].mxu1 }
 0x393   : > { %v8608_v30 = vpop.f32.mrb[241].mxu1 }
 0x394   : > { %v6189_v54 = vpop.f32.mrb[242].mxu1 }
 0x395   : > { %v6042_v23 = vpop.f32.mrb[236].mxu0  ;;  %v8609_v51 = vpop.f32.mrb[243].mxu1 }
 0x396   : > { %v6043_v12 = vadd.f32 %v6042_v23, %v5999_v14  ;;  %v8590_v3 = vpop.f32.mrb[237].mxu0 }
 0x397   : > { %v6045_v60 = vpop.f32.mrb[238].mxu0 }
 0x398   : > { %v6093_v22 = vadd.f32 %v6087_v4, %v6043_v12  ;;  %v8591_v33 = vpop.f32.mrb[239].mxu0 }
 0x39a   : > { %v6278_v45 = vpop.f32.mrb[244].mxu1 }
 0x39b   : > { %v8620_v48 = vpop.f32.mrb[245].mxu1 }
 0x39c   : > { %v6281_v2 = vpop.f32.mrb[246].mxu1 }
 0x39d   : > { %v6132_v11 = vpop.f32.mrb[240].mxu0  ;;  %v8621_v31 = vpop.f32.mrb[247].mxu1 }
 0x39e   : > { %v6138_v42 = vadd.f32 %v6132_v11, %v6093_v22  ;;  %v8602_v53 = vpop.f32.mrb[241].mxu0 }
 0x39f   : > { %v6135_v47 = vpop.f32.mrb[242].mxu0 }
 0x3a0   : > { %v6192_v25 = vadd.f32 %v6186_v0, %v6138_v42  ;;  %v8603_v15 = vpop.f32.mrb[243].mxu0 }
 0x3a2   : > { %v6378_v59 = vpop.f32.mrb[248].mxu1 }
 0x3a3   : > { %v8632_v49 = vpop.f32.mrb[249].mxu1 }
 0x3a4   : > { %v6381_v27 = vpop.f32.mrb[250].mxu1 }
 0x3a5   : > { %v6232_v35 = vpop.f32.mrb[244].mxu0  ;;  %v8633_v5 = vpop.f32.mrb[251].mxu1 }
 0x3a6   : > { %v6238_v9 = vadd.f32 %v6232_v35, %v6192_v25  ;;  %v8614_v21 = vpop.f32.mrb[245].mxu0 }
 0x3a7   : > { %v6235_v37 = vpop.f32.mrb[246].mxu0 }
 0x3a8   : > { %v6284_v38 = vadd.f32 %v6278_v45, %v6238_v9  ;;  %v8615_v52 = vpop.f32.mrb[247].mxu0 }
 0x3aa   : > { %v6479_v57 = vpop.f32.mrb[252].mxu1 }
 0x3ab   : > { %v8644_v19 = vpop.f32.mrb[253].mxu1 }
 0x3ac   : > { %v6482_v36 = vpop.f32.mrb[254].mxu1 }
 0x3ad   : > { %v6332_v56 = vpop.f32.mrb[248].mxu0  ;;  %v8645_v58 = vpop.f32.mrb[255].mxu1 }
 0x3ae   : > { %v6338_v16 = vadd.f32 %v6332_v56, %v6284_v38  ;;  %v8626_v62 = vpop.f32.mrb[249].mxu0 }
 0x3af   : > { %v6335_v61 = vpop.f32.mrb[250].mxu0 }
 0x3b0   : > { %v6384_v32 = vadd.f32 %v6378_v59, %v6338_v16  ;;  %v8627_v7 = vpop.f32.mrb[251].mxu0 }
 0x3b2   : > { %v6385_v8 = vadd.f32 %v6384_v32, %v10037_v13  ;;  %v6569_v1 = vpop.f32.mrb[0].mxu1 }
 0x3b3   : > { %v8656_v18 = vpop.f32.mrb[1].mxu1 }
 0x3b4   : > { %7557 = vst.msk [vmem:[%s10050_s21 + $0x68] sm:$0xff] %vm705_vm3, %v6385_v8  ;;  %v6572_v14 = vpop.f32.mrb[2].mxu1 }
 0x3b5   : > { %v6436_v28 = vpop.f32.mrb[252].mxu0  ;;  %v8657_v55 = vpop.f32.mrb[3].mxu1 }
 0x3b6   : > { %v6480_v6 = vadd.f32 %v6479_v57, %v6436_v28  ;;  %v8638_v34 = vpop.f32.mrb[253].mxu0 }
 0x3b7   : > { %v6439_v39 = vpop.f32.mrb[254].mxu0 }
 0x3b8   : > { %v8639_v40 = vpop.f32.mrb[255].mxu0 }
 0x3ba   : > { %v6669_v50 = vpop.f32.mrb[4].mxu1 }
 0x3bb   : > { %v8668_v29 = vpop.f32.mrb[5].mxu1 }
 0x3bc   : > { %v6672_v41 = vpop.f32.mrb[6].mxu1 }
 0x3bd   : > { %v6524_v4 = vpop.f32.mrb[0].mxu0  ;;  %v8669_v26 = vpop.f32.mrb[7].mxu1 }
 0x3be   : > { %v6530_v20 = vadd.f32 %v6524_v4, %v6480_v6  ;;  %v8650_v17 = vpop.f32.mrb[1].mxu0 }
 0x3bf   : > { %v6527_v24 = vpop.f32.mrb[2].mxu0 }
 0x3c0   : > { %v6575_v10 = vadd.f32 %v6569_v1, %v6530_v20  ;;  %v8651_v43 = vpop.f32.mrb[3].mxu0 }
 0x3c2   : > { %v6769_v63 = vpop.f32.mrb[8].mxu1 }
 0x3c3   : > { %v8680_v46 = vpop.f32.mrb[9].mxu1 }
 0x3c4   : > { %v6772_v44 = vpop.f32.mrb[10].mxu1 }
 0x3c5   : > { %v6623_v0 = vpop.f32.mrb[4].mxu0  ;;  %v8681_v30 = vpop.f32.mrb[11].mxu1 }
 0x3c6   : > { %v6629_v54 = vadd.f32 %v6623_v0, %v6575_v10  ;;  %v8662_v23 = vpop.f32.mrb[5].mxu0 }
 0x3c7   : > { %v6626_v51 = vpop.f32.mrb[6].mxu0 }
 0x3c8   : > { %v6675_v12 = vadd.f32 %v6669_v50, %v6629_v54  ;;  %v8663_v3 = vpop.f32.mrb[7].mxu0 }
 0x3ca   : > { %v6873_v60 = vpop.f32.mrb[12].mxu1 }
 0x3cb   : > { %v8692_v22 = vpop.f32.mrb[13].mxu1 }
 0x3cc   : > { %v6876_v33 = vpop.f32.mrb[14].mxu1 }
 0x3cd   : > { %v6715_v45 = vpop.f32.mrb[8].mxu0  ;;  %v8693_v48 = vpop.f32.mrb[15].mxu1 }
 0x3ce   : > { %v6721_v2 = vadd.f32 %v6715_v45, %v6675_v12  ;;  %v8674_v11 = vpop.f32.mrb[9].mxu0 }
 0x3cf   : > { %v6718_v31 = vpop.f32.mrb[10].mxu0 }
 0x3d0   : > { %v6775_v42 = vadd.f32 %v6769_v63, %v6721_v2  ;;  %v8675_v53 = vpop.f32.mrb[11].mxu0 }
 0x3d2   : > { %v6961_v47 = vpop.f32.mrb[16].mxu1 }
 0x3d3   : > { %v8704_v25 = vpop.f32.mrb[17].mxu1 }
 0x3d4   : > { %v6964_v15 = vpop.f32.mrb[18].mxu1 }
 0x3d5   : > { %v6815_v59 = vpop.f32.mrb[12].mxu0  ;;  %v8705_v49 = vpop.f32.mrb[19].mxu1 }
 0x3d6   : > { %v6821_v27 = vadd.f32 %v6815_v59, %v6775_v42  ;;  %v8686_v35 = vpop.f32.mrb[13].mxu0 }
 0x3d7   : > { %v6818_v5 = vpop.f32.mrb[14].mxu0 }
 0x3d8   : > { %v6822_v9 = vadd.f32 %v6821_v27, %v10037_v13  ;;  %v8687_v21 = vpop.f32.mrb[15].mxu0 }
 0x3da   : > { %7570 = vst.msk [vmem:[%s10050_s21 + $0x70] sm:$0xff] %vm705_vm3, %v6822_v9  ;;  %v7060_v37 = vpop.f32.mrb[20].mxu1 }
 0x3db   : > { %v8716_v38 = vpop.f32.mrb[21].mxu1 }
 0x3dc   : > { %v7063_v52 = vpop.f32.mrb[22].mxu1 }
 0x3dd   : > { %v6916_v57 = vpop.f32.mrb[16].mxu0  ;;  %v8717_v19 = vpop.f32.mrb[23].mxu1 }
 0x3de   : > { %v6917_v36 = vadd.f32 %v6916_v57, %v6873_v60  ;;  %v8698_v56 = vpop.f32.mrb[17].mxu0 }
 0x3df   : > { %v6919_v58 = vpop.f32.mrb[18].mxu0 }
 0x3e0   : > { %v6967_v16 = vadd.f32 %v6961_v47, %v6917_v36  ;;  %v8699_v62 = vpop.f32.mrb[19].mxu0 }
 0x3e2   : > { %v7152_v61 = vpop.f32.mrb[24].mxu1 }
 0x3e3   : > { %v8728_v32 = vpop.f32.mrb[25].mxu1 }
 0x3e4   : > { %v7155_v7 = vpop.f32.mrb[26].mxu1 }
 0x3e5   : > { %v7006_v8 = vpop.f32.mrb[20].mxu0  ;;  %v8729_v1 = vpop.f32.mrb[27].mxu1 }
 0x3e6   : > { %v7012_v18 = vadd.f32 %v7006_v8, %v6967_v16  ;;  %v8710_v14 = vpop.f32.mrb[21].mxu0 }
 0x3e7   : > { %v7009_v28 = vpop.f32.mrb[22].mxu0 }
 0x3e8   : > { %v7066_v55 = vadd.f32 %v7060_v37, %v7012_v18  ;;  %v8711_v6 = vpop.f32.mrb[23].mxu0 }
 0x3ea   : > { %v7252_v34 = vpop.f32.mrb[28].mxu1 }
 0x3eb   : > { %v8740_v39 = vpop.f32.mrb[29].mxu1 }
 0x3ec   : > { %v7255_v40 = vpop.f32.mrb[30].mxu1 }
 0x3ed   : > { %v7106_v50 = vpop.f32.mrb[24].mxu0  ;;  %v8741_v29 = vpop.f32.mrb[31].mxu1 }
 0x3ee   : > { %v7112_v41 = vadd.f32 %v7106_v50, %v7066_v55  ;;  %v8722_v4 = vpop.f32.mrb[25].mxu0 }
 0x3ef   : > { %v7109_v26 = vpop.f32.mrb[26].mxu0 }
 0x3f0   : > { %v7158_v20 = vadd.f32 %v7152_v61, %v7112_v41  ;;  %v8723_v17 = vpop.f32.mrb[27].mxu0 }
 0x3f5   : > { %v7206_v24 = vpop.f32.mrb[28].mxu0 }
 0x3f6   : > { %v7212_v10 = vadd.f32 %v7206_v24, %v7158_v20  ;;  %v8734_v43 = vpop.f32.mrb[29].mxu0 }
 0x3f7   : > { %v7209_v63 = vpop.f32.mrb[30].mxu0 }
 0x3f8   : > { %v7258_v46 = vadd.f32 %v7252_v34, %v7212_v10  ;;  %v8735_v44 = vpop.f32.mrb[31].mxu0 }
 0x3fa   : > { %v7259_v0 = vadd.f32 %v7258_v46, %v10037_v13 }
 0x3fc   : > { %7583 = vst.msk [vmem:[%s10050_s21 + $0x78] sm:$0xff] %vm705_vm3, %v7259_v0 }
 0x3fd   : > { %8998 = shalt.err (!%p8995_p2)
}
 0x3fe   : > { %s8999_s24 = scalar_lea.hbm %s10633_s8, 2048  ;;  %s9003_s30 = scalar_lea.hbm %s10685_s3, 4096 }
 0x3ff   : > { %p9000_p13 = scmp.ne.s32.totalorder %s10633_s8, %s8999_s24  ;;  %p9004_p4 = scmp.lt.u32.totalorder %s10633_s8, %s10685_s3 }
 0x400   : > { %p9005_p5 = scmp.lt.u32.totalorder %s9003_s30, %s8999_s24  ;;  %p9007_p11 = scmp.lt.u32.totalorder %s8999_s24, %s10633_s8 }
 0x401   : > { %p9001_p6 = pnand %p9000_p13, %p10699_p0 }
 0x402   : > { %p9006_p8 = por %p9005_p5, %p9004_p4 }
 0x403   : > { %p9002_p10 = pneg %p9001_p6 }
 0x404   : > { %p9008_p1 = por %p9007_p11, %p9006_p8 }
 0x406   : > { %p9009_p3 = pnand %p9008_p1, %p9002_p10 }
 0x408   : > { %9012 = shalt.err (!%p9009_p3)
}
 0x409   : > { %s9071_s10 = smov 128   ;;  %s9072_s21 = smov 8  }
 0x40a   : > { %8755 = dma.vmem_to_hbm [thread:$0]  (%p10699_p0), %s10635_s27, 2048, %s10633_s8, %s7263_s9, %s9071_s10, %s9071_s10, %s9072_s21  }
 0x40b PF: > { %s7291_s26 = sand.u32 1, %s9043_s12   ;;  %p10700_p7 = scmp.ne.s32.totalorder %s10690_s19, 0 }
 0x40c   : > { %p10701_p9 = scmp.ge.s32.totalorder %s9055_s15, 2  ;;  %s7292_s23 = scalar_lea.sflag [#allocation4], %s7291_s26 }
 0x40e   : > { %p8769_p12 = pnand %p10701_p9, %p10700_p7 }
 0x410   : > { %9038 = dma.done.wait (!%p8769_p12), %s7292_s23, 2048  }
 0x411   : > { %9040 = vsyncadd (!%p8769_p12), %s7292_s23, 4294965248  ;;  %p17_p2 = scmp.ge.s32.totalorder %s9203_s4, 4   ;;  %s10702_s12 = smov %s9047_s13 }
 0x412   : > { %s10703_s13 = smov %s9051_s14  ;;  %s10704_s14 = smov %s9219_s7 }
 0x413   : > { %s10705_s15 = smov %s9203_s4  ;;  %19 = sbr.rel (!%p17_p2) target bundleno = 6 (0x6), region = 125 }
 0x41a   :  { %7297 = vsyncpa [#allocation3], 1 }
 0x41b   :  { %7299 = vsyncpa [#allocation3 + $0x1], 1 }
 0x41c   :  { %7300 = vsyncpa [#allocation6], 1 }
 0x41d   :  { %7301 = vsyncpa [#allocation4], 1 }
 0x41e   :  { %7303 = vsyncpa [#allocation4 + $0x1], 1 }

</bundles_post_ra>
